<compile_context>
chip_gen: v7x
topology: tpu7x:2x2x1
jax: 0.10.0
libtpu: 0.0.40
codegen_flags: <defaults>
</compile_context>

<pallas_src>
import jax
import jax.numpy as jnp
from jax.experimental import pallas as pl
from jax.experimental.pallas import tpu as pltpu


def _ae_fused_kernel(x_ref,
                     w0_ref, b0_ref, w1_ref, b1_ref, w2_ref, b2_ref,
                     w3_ref, b3_ref, w4_ref, b4_ref, w5_ref, b5_ref,
                     o_ref):
    """Entire encoder+decoder forward for one batch tile, all in VMEM."""
    x = x_ref[...]

    # encoder
    h = jnp.dot(x, w0_ref[...], preferred_element_type=jnp.float32) + b0_ref[...]
    h = jnp.maximum(h, 0.0)
    h = jnp.dot(h, w1_ref[...], preferred_element_type=jnp.float32) + b1_ref[...]
    h = jnp.maximum(h, 0.0)
    z = jnp.dot(h, w2_ref[...], preferred_element_type=jnp.float32) + b2_ref[...]

    # decoder
    h = jnp.dot(z, w3_ref[...], preferred_element_type=jnp.float32) + b3_ref[...]
    h = jnp.maximum(h, 0.0)
    h = jnp.dot(h, w4_ref[...], preferred_element_type=jnp.float32) + b4_ref[...]
    h = jnp.maximum(h, 0.0)
    y = jnp.dot(h, w5_ref[...], preferred_element_type=jnp.float32) + b5_ref[...]

    o_ref[...] = (1.0 / (1.0 + jnp.exp(-y))).astype(o_ref.dtype)


def ae_forward(params, x, *, block_m=256):
    """Fused AE forward: one pallas_call, weights resident in VMEM."""
    (w0, b0), (w1, b1), (w2, b2), (w3, b3), (w4, b4), (w5, b5) = params
    M, in_dim = x.shape
    out_dim = w5.shape[1]

    # Batch tile: whole batch if small, otherwise cap (keeps v7x VMEM bounded).
    tm = M if M <= block_m else block_m
    grid = (pl.cdiv(M, tm),)

    # Biases as (1, N) rows so the in-kernel broadcast is a plain vreg op.
    biases = [b.reshape(1, -1) for b in (b0, b1, b2, b3, b4, b5)]
    weights = (w0, w1, w2, w3, w4, w5)

    def full_spec(arr):
        # Whole-array block, constant index -> DMA'd into VMEM once and reused
        # across all batch tiles (Pallas skips re-fetch when the block index
        # does not change).
        return pl.BlockSpec(arr.shape, lambda i: (0,) * arr.ndim)

    in_specs = [pl.BlockSpec((tm, in_dim), lambda i: (i, 0))]   # x (batch-tiled)
    flat_params = []
    for w, b in zip(weights, biases):
        in_specs.append(full_spec(w))
        in_specs.append(full_spec(b))
        flat_params.extend([w, b])

    return pl.pallas_call(
        _ae_fused_kernel,
        out_shape=jax.ShapeDtypeStruct((M, out_dim), x.dtype),
        grid_spec=pltpu.PrefetchScalarGridSpec(
            num_scalar_prefetch=0,
            grid=grid,
            in_specs=in_specs,
            out_specs=pl.BlockSpec((tm, out_dim), lambda i: (i, 0)),
        ),
        compiler_params=pltpu.CompilerParams(
            dimension_semantics=("parallel",),
        ),
    )(x, *flat_params)


def init_ae_params(key, input_size, code_size):
    """Deterministic PyTorch-style (uniform +/-1/sqrt(fan_in)) Linear init."""
    dims = [
        (input_size, 1024),  # encoder.0
        (1024, 512),         # encoder.2
        (512, code_size),    # encoder.4
        (code_size, 512),    # decoder.0
        (512, 1024),         # decoder.2
        (1024, input_size),  # decoder.4
    ]
    params = []
    for (fan_in, fan_out) in dims:
        key, kw, kb = jax.random.split(key, 3)
        bound = 1.0 / jnp.sqrt(float(fan_in))
        w = jax.random.uniform(
            kw, (fan_in, fan_out), jnp.float32, minval=-bound, maxval=bound
        )
        b = jax.random.uniform(
            kb, (fan_out,), jnp.float32, minval=-bound, maxval=bound
        )
        params.append((w, b))
    return params


def ae_forward_ref(params, x):
    """Plain-JAX reference for a sanity check."""
    (w0, b0), (w1, b1), (w2, b2), (w3, b3), (w4, b4), (w5, b5) = params
    h = jnp.maximum(x @ w0 + b0, 0.0)
    h = jnp.maximum(h @ w1 + b1, 0.0)
    z = h @ w2 + b2
    h = jnp.maximum(z @ w3 + b3, 0.0)
    h = jnp.maximum(h @ w4 + b4, 0.0)
    return jax.nn.sigmoid(h @ w5 + b5)


if __name__ == "__main__":
    INPUT_SIZE = 256
    CODE_SIZE = 32
    BATCH = 8

    key = jax.random.PRNGKey(0)
    key, kx = jax.random.split(key)
    x = jax.random.normal(kx, (BATCH, INPUT_SIZE), jnp.float32)

    params = init_ae_params(key, INPUT_SIZE, CODE_SIZE)

    out = ae_forward(params, x)
    out = jax.block_until_ready(out)

    ref = jax.block_until_ready(ae_forward_ref(params, x))
    assert out.shape == (BATCH, INPUT_SIZE)
    assert jnp.allclose(out, ref, atol=1e-5, rtol=1e-5)

    print("KERNEL_OK")
</pallas_src>

<mosaic_0001>
module attributes {stable_mosaic.version = 11 : i64} {
  func.func @_ae_fused_kernel(%arg0: i32, %arg1: memref<8x256xf32, #tpu.memory_space<vmem>>, %arg2: memref<256x1024xf32, #tpu.memory_space<vmem>>, %arg3: memref<1x1024xf32, #tpu.memory_space<vmem>>, %arg4: memref<1024x512xf32, #tpu.memory_space<vmem>>, %arg5: memref<1x512xf32, #tpu.memory_space<vmem>>, %arg6: memref<512x32xf32, #tpu.memory_space<vmem>>, %arg7: memref<1x32xf32, #tpu.memory_space<vmem>>, %arg8: memref<32x512xf32, #tpu.memory_space<vmem>>, %arg9: memref<1x512xf32, #tpu.memory_space<vmem>>, %arg10: memref<512x1024xf32, #tpu.memory_space<vmem>>, %arg11: memref<1x1024xf32, #tpu.memory_space<vmem>>, %arg12: memref<1024x256xf32, #tpu.memory_space<vmem>>, %arg13: memref<1x256xf32, #tpu.memory_space<vmem>>, %arg14: memref<8x256xf32, #tpu.memory_space<vmem>>) attributes {dimension_semantics = [#tpu.dimension_semantics<parallel>], iteration_bounds = array<i64: 1>, scalar_prefetch = 0 : i64, scratch_operands = 0 : i64, tpu.core_type = #tpu.core_type<tc>, window_params = [{transform_indices = @transform_0, window_bounds = array<i64: 8, 256>}, {pipeline_mode = #tpu.pipeline_mode<synchronous>, transform_indices = @transform_1, window_bounds = array<i64: 256, 1024>}, {pipeline_mode = #tpu.pipeline_mode<synchronous>, transform_indices = @transform_2, window_bounds = array<i64: 1, 1024>}, {pipeline_mode = #tpu.pipeline_mode<synchronous>, transform_indices = @transform_3, window_bounds = array<i64: 1024, 512>}, {pipeline_mode = #tpu.pipeline_mode<synchronous>, transform_indices = @transform_4, window_bounds = array<i64: 1, 512>}, {pipeline_mode = #tpu.pipeline_mode<synchronous>, transform_indices = @transform_5, window_bounds = array<i64: 512, 32>}, {pipeline_mode = #tpu.pipeline_mode<synchronous>, transform_indices = @transform_6, window_bounds = array<i64: 1, 32>}, {pipeline_mode = #tpu.pipeline_mode<synchronous>, transform_indices = @transform_7, window_bounds = array<i64: 32, 512>}, {pipeline_mode = #tpu.pipeline_mode<synchronous>, transform_indices = @transform_8, window_bounds = array<i64: 1, 512>}, {pipeline_mode = #tpu.pipeline_mode<synchronous>, transform_indices = @transform_9, window_bounds = array<i64: 512, 1024>}, {pipeline_mode = #tpu.pipeline_mode<synchronous>, transform_indices = @transform_10, window_bounds = array<i64: 1, 1024>}, {pipeline_mode = #tpu.pipeline_mode<synchronous>, transform_indices = @transform_11, window_bounds = array<i64: 1024, 256>}, {pipeline_mode = #tpu.pipeline_mode<synchronous>, transform_indices = @transform_12, window_bounds = array<i64: 1, 256>}, {transform_indices = @transform_13, window_bounds = array<i64: 8, 256>}]} {
    %c0 = arith.constant 0 : index
    %c0_0 = arith.constant 0 : index
    %0 = vector.load %arg1[%c0, %c0_0] : memref<8x256xf32, #tpu.memory_space<vmem>>, vector<8x256xf32>
    %c0_1 = arith.constant 0 : index
    %c0_2 = arith.constant 0 : index
    %1 = vector.load %arg2[%c0_1, %c0_2] : memref<256x1024xf32, #tpu.memory_space<vmem>>, vector<256x1024xf32>
    %cst = arith.constant dense<0.000000e+00> : vector<8x1024xf32>
    %2 = tpu.matmul %0, %1, %cst {dimension_numbers = #tpu.dot_dimension_numbers<[1], [0], [0], [1], [0, 0, 1, 1], [], []>} : vector<8x256xf32>, vector<256x1024xf32>, vector<8x1024xf32> -> vector<8x1024xf32>
    %c0_3 = arith.constant 0 : index
    %c0_4 = arith.constant 0 : index
    %3 = vector.load %arg3[%c0_3, %c0_4] : memref<1x1024xf32, #tpu.memory_space<vmem>>, vector<1x1024xf32>
    %4 = vector.broadcast %3 : vector<1x1024xf32> to vector<8x1024xf32>
    %5 = arith.addf %2, %4 : vector<8x1024xf32>
    %cst_5 = arith.constant 0.000000e+00 : f32
    %6 = vector.broadcast %cst_5 : f32 to vector<8x1024xf32>
    %7 = arith.maximumf %5, %6 : vector<8x1024xf32>
    %c0_6 = arith.constant 0 : index
    %c0_7 = arith.constant 0 : index
    %8 = vector.load %arg4[%c0_6, %c0_7] : memref<1024x512xf32, #tpu.memory_space<vmem>>, vector<1024x512xf32>
    %cst_8 = arith.constant dense<0.000000e+00> : vector<8x512xf32>
    %9 = tpu.matmul %7, %8, %cst_8 {dimension_numbers = #tpu.dot_dimension_numbers<[1], [0], [0], [1], [0, 0, 1, 1], [], []>} : vector<8x1024xf32>, vector<1024x512xf32>, vector<8x512xf32> -> vector<8x512xf32>
    %c0_9 = arith.constant 0 : index
    %c0_10 = arith.constant 0 : index
    %10 = vector.load %arg5[%c0_9, %c0_10] : memref<1x512xf32, #tpu.memory_space<vmem>>, vector<1x512xf32>
    %11 = vector.broadcast %10 : vector<1x512xf32> to vector<8x512xf32>
    %12 = arith.addf %9, %11 : vector<8x512xf32>
    %cst_11 = arith.constant 0.000000e+00 : f32
    %13 = vector.broadcast %cst_11 : f32 to vector<8x512xf32>
    %14 = arith.maximumf %12, %13 : vector<8x512xf32>
    %c0_12 = arith.constant 0 : index
    %c0_13 = arith.constant 0 : index
    %15 = vector.load %arg6[%c0_12, %c0_13] : memref<512x32xf32, #tpu.memory_space<vmem>>, vector<512x32xf32>
    %cst_14 = arith.constant dense<0.000000e+00> : vector<8x32xf32>
    %16 = tpu.matmul %14, %15, %cst_14 {dimension_numbers = #tpu.dot_dimension_numbers<[1], [0], [0], [1], [0, 0, 1, 1], [], []>} : vector<8x512xf32>, vector<512x32xf32>, vector<8x32xf32> -> vector<8x32xf32>
    %c0_15 = arith.constant 0 : index
    %c0_16 = arith.constant 0 : index
    %17 = vector.load %arg7[%c0_15, %c0_16] : memref<1x32xf32, #tpu.memory_space<vmem>>, vector<1x32xf32>
    %18 = vector.broadcast %17 : vector<1x32xf32> to vector<8x32xf32>
    %19 = arith.addf %16, %18 : vector<8x32xf32>
    %c0_17 = arith.constant 0 : index
    %c0_18 = arith.constant 0 : index
    %20 = vector.load %arg8[%c0_17, %c0_18] : memref<32x512xf32, #tpu.memory_space<vmem>>, vector<32x512xf32>
    %cst_19 = arith.constant dense<0.000000e+00> : vector<8x512xf32>
    %21 = tpu.matmul %19, %20, %cst_19 {dimension_numbers = #tpu.dot_dimension_numbers<[1], [0], [0], [1], [0, 0, 1, 1], [], []>} : vector<8x32xf32>, vector<32x512xf32>, vector<8x512xf32> -> vector<8x512xf32>
    %c0_20 = arith.constant 0 : index
    %c0_21 = arith.constant 0 : index
    %22 = vector.load %arg9[%c0_20, %c0_21] : memref<1x512xf32, #tpu.memory_space<vmem>>, vector<1x512xf32>
    %23 = vector.broadcast %22 : vector<1x512xf32> to vector<8x512xf32>
    %24 = arith.addf %21, %23 : vector<8x512xf32>
    %cst_22 = arith.constant 0.000000e+00 : f32
    %25 = vector.broadcast %cst_22 : f32 to vector<8x512xf32>
    %26 = arith.maximumf %24, %25 : vector<8x512xf32>
    %c0_23 = arith.constant 0 : index
    %c0_24 = arith.constant 0 : index
    %27 = vector.load %arg10[%c0_23, %c0_24] : memref<512x1024xf32, #tpu.memory_space<vmem>>, vector<512x1024xf32>
    %cst_25 = arith.constant dense<0.000000e+00> : vector<8x1024xf32>
    %28 = tpu.matmul %26, %27, %cst_25 {dimension_numbers = #tpu.dot_dimension_numbers<[1], [0], [0], [1], [0, 0, 1, 1], [], []>} : vector<8x512xf32>, vector<512x1024xf32>, vector<8x1024xf32> -> vector<8x1024xf32>
    %c0_26 = arith.constant 0 : index
    %c0_27 = arith.constant 0 : index
    %29 = vector.load %arg11[%c0_26, %c0_27] : memref<1x1024xf32, #tpu.memory_space<vmem>>, vector<1x1024xf32>
    %30 = vector.broadcast %29 : vector<1x1024xf32> to vector<8x1024xf32>
    %31 = arith.addf %28, %30 : vector<8x1024xf32>
    %cst_28 = arith.constant 0.000000e+00 : f32
    %32 = vector.broadcast %cst_28 : f32 to vector<8x1024xf32>
    %33 = arith.maximumf %31, %32 : vector<8x1024xf32>
    %c0_29 = arith.constant 0 : index
    %c0_30 = arith.constant 0 : index
    %34 = vector.load %arg12[%c0_29, %c0_30] : memref<1024x256xf32, #tpu.memory_space<vmem>>, vector<1024x256xf32>
    %cst_31 = arith.constant dense<0.000000e+00> : vector<8x256xf32>
    %35 = tpu.matmul %33, %34, %cst_31 {dimension_numbers = #tpu.dot_dimension_numbers<[1], [0], [0], [1], [0, 0, 1, 1], [], []>} : vector<8x1024xf32>, vector<1024x256xf32>, vector<8x256xf32> -> vector<8x256xf32>
    %c0_32 = arith.constant 0 : index
    %c0_33 = arith.constant 0 : index
    %36 = vector.load %arg13[%c0_32, %c0_33] : memref<1x256xf32, #tpu.memory_space<vmem>>, vector<1x256xf32>
    %37 = vector.broadcast %36 : vector<1x256xf32> to vector<8x256xf32>
    %38 = arith.addf %35, %37 : vector<8x256xf32>
    %cst_34 = arith.constant 0.000000e+00 : f32
    %39 = vector.broadcast %cst_34 : f32 to vector<8x256xf32>
    %40 = arith.subf %39, %38 : vector<8x256xf32>
    %41 = math.exp %40 : vector<8x256xf32>
    %cst_35 = arith.constant 1.000000e+00 : f32
    %42 = vector.broadcast %cst_35 : f32 to vector<8x256xf32>
    %43 = arith.addf %42, %41 : vector<8x256xf32>
    %cst_36 = arith.constant 1.000000e+00 : f32
    %44 = vector.broadcast %cst_36 : f32 to vector<8x256xf32>
    %45 = arith.divf %44, %43 : vector<8x256xf32>
    %c0_37 = arith.constant 0 : index
    %c0_38 = arith.constant 0 : index
    %46 = vector.load %arg14[%c0_37, %c0_38] : memref<8x256xf32, #tpu.memory_space<vmem>>, vector<8x256xf32>
    tpu.vector_store %arg14[%c0_37, %c0_38], %45 {strides = array<i32>} : memref<8x256xf32, #tpu.memory_space<vmem>>, vector<8x256xf32>,
    return
  }
  func.func @transform_0(%arg0: i32) -> (i32, i32) {
    %c0_i32 = arith.constant 0 : i32
    %c0_i32_0 = arith.constant 0 : i32
    return %arg0, %c0_i32 : i32, i32
  }
  func.func @transform_1(%arg0: i32) -> (i32, i32) {
    %c0_i32 = arith.constant 0 : i32
    %c0_i32_0 = arith.constant 0 : i32
    %c0_i32_1 = arith.constant 0 : i32
    return %c0_i32, %c0_i32_0 : i32, i32
  }
  func.func @transform_2(%arg0: i32) -> (i32, i32) {
    %c0_i32 = arith.constant 0 : i32
    %c0_i32_0 = arith.constant 0 : i32
    %c0_i32_1 = arith.constant 0 : i32
    return %c0_i32, %c0_i32_0 : i32, i32
  }
  func.func @transform_3(%arg0: i32) -> (i32, i32) {
    %c0_i32 = arith.constant 0 : i32
    %c0_i32_0 = arith.constant 0 : i32
    %c0_i32_1 = arith.constant 0 : i32
    return %c0_i32, %c0_i32_0 : i32, i32
  }
  func.func @transform_4(%arg0: i32) -> (i32, i32) {
    %c0_i32 = arith.constant 0 : i32
    %c0_i32_0 = arith.constant 0 : i32
    %c0_i32_1 = arith.constant 0 : i32
    return %c0_i32, %c0_i32_0 : i32, i32
  }
  func.func @transform_5(%arg0: i32) -> (i32, i32) {
    %c0_i32 = arith.constant 0 : i32
    %c0_i32_0 = arith.constant 0 : i32
    %c0_i32_1 = arith.constant 0 : i32
    return %c0_i32, %c0_i32_0 : i32, i32
  }
  func.func @transform_6(%arg0: i32) -> (i32, i32) {
    %c0_i32 = arith.constant 0 : i32
    %c0_i32_0 = arith.constant 0 : i32
    %c0_i32_1 = arith.constant 0 : i32
    return %c0_i32, %c0_i32_0 : i32, i32
  }
  func.func @transform_7(%arg0: i32) -> (i32, i32) {
    %c0_i32 = arith.constant 0 : i32
    %c0_i32_0 = arith.constant 0 : i32
    %c0_i32_1 = arith.constant 0 : i32
    return %c0_i32, %c0_i32_0 : i32, i32
  }
  func.func @transform_8(%arg0: i32) -> (i32, i32) {
    %c0_i32 = arith.constant 0 : i32
    %c0_i32_0 = arith.constant 0 : i32
    %c0_i32_1 = arith.constant 0 : i32
    return %c0_i32, %c0_i32_0 : i32, i32
  }
  func.func @transform_9(%arg0: i32) -> (i32, i32) {
    %c0_i32 = arith.constant 0 : i32
    %c0_i32_0 = arith.constant 0 : i32
    %c0_i32_1 = arith.constant 0 : i32
    return %c0_i32, %c0_i32_0 : i32, i32
  }
  func.func @transform_10(%arg0: i32) -> (i32, i32) {
    %c0_i32 = arith.constant 0 : i32
    %c0_i32_0 = arith.constant 0 : i32
    %c0_i32_1 = arith.constant 0 : i32
    return %c0_i32, %c0_i32_0 : i32, i32
  }
  func.func @transform_11(%arg0: i32) -> (i32, i32) {
    %c0_i32 = arith.constant 0 : i32
    %c0_i32_0 = arith.constant 0 : i32
    %c0_i32_1 = arith.constant 0 : i32
    return %c0_i32, %c0_i32_0 : i32, i32
  }
  func.func @transform_12(%arg0: i32) -> (i32, i32) {
    %c0_i32 = arith.constant 0 : i32
    %c0_i32_0 = arith.constant 0 : i32
    %c0_i32_1 = arith.constant 0 : i32
    return %c0_i32, %c0_i32_0 : i32, i32
  }
  func.func @transform_13(%arg0: i32) -> (i32, i32) {
    %c0_i32 = arith.constant 0 : i32
    %c0_i32_0 = arith.constant 0 : i32
    return %arg0, %c0_i32 : i32, i32
  }
}

</mosaic_0001>

<bundles_post_ra>
// kernel: tpu_custom_call.1
= control target key start
LH: loop header
LB: loop body
LE: loop exit
PB: predicated region body
PF: predicated region fallthrough
CT: control target
= control target key end

     0   :  { %18 = vsyncpa [#allocation3], 0  ;;  %s6678_s0 = inlined_call_operand.hbm [shape: f32[8,256], index: 0, kind: input, shape index: {}]   ;;  %s6679_s1 = inlined_call_operand.hbm [shape: f32[256,1024], index: 1, kind: input, shape index: {}]   ;;  %s6680_s2 = inlined_call_operand.hbm [shape: f32[1,1024], index: 2, kind: input, shape index: {}]   ;;  %s6681_s3 = inlined_call_operand.hbm [shape: f32[1024,512], index: 3, kind: input, shape index: {}]   ;;  %s6682_s4 = inlined_call_operand.hbm [shape: f32[1,512], index: 4, kind: input, shape index: {}]   ;;  %s6683_s5 = inlined_call_operand.vmem [shape: f32[512,32], index: 5, kind: input, shape index: {}]   ;;  %s6684_s6 = inlined_call_operand.hbm [shape: f32[1,32], index: 6, kind: input, shape index: {}]   ;;  %s6685_s7 = inlined_call_operand.hbm [shape: f32[32,512], index: 7, kind: input, shape index: {}]   ;;  %s6686_s8 = inlined_call_operand.hbm [shape: f32[1,512], index: 8, kind: input, shape index: {}]   ;;  %s6687_s9 = inlined_call_operand.hbm [shape: f32[512,1024], index: 9, kind: input, shape index: {}]   ;;  %s6688_s10 = inlined_call_operand.hbm [shape: f32[1,1024], index: 10, kind: input, shape index: {}]   ;;  %s6689_s11 = inlined_call_operand.hbm [shape: f32[1024,256], index: 11, kind: input, shape index: {}]   ;;  %s6690_s12 = inlined_call_operand.hbm [shape: f32[1,256], index: 12, kind: input, shape index: {}]   ;;  %s6691_s13 = inlined_call_operand.hbm [shape: f32[8,256], index: 13, kind: output, shape index: {}]  }
   0x1   :  { %19 = vsyncpa [#allocation6], 0 }
   0x2   :  { %20 = vsyncpa [#allocation9], 0 }
   0x3   :  { %21 = vsyncpa [#allocation12], 0 }
   0x4   :  { %22 = vsyncpa [#allocation15], 0 }
   0x5   :  { %23 = vsyncpa [#allocation18], 0 }
   0x6   :  { %24 = vsyncpa [#allocation21], 0 }
   0x7   :  { %25 = vsyncpa [#allocation4], 0  ;;  %s6069_s25 = smov [#allocation5]   ;;  %s5767_s29 = scalar_lea.hbm %s6679_s1, 32768 }
   0x8   :  { %s41_s26 = sshll.u32 %s6069_s25, 4  ;;  %p5768_p0 = scmp.ne.s32.totalorder %s6679_s1, %s5767_s29  ;;  %s42_s26 = int_to_ptr.vmem [resolvable:$true] %s41_s26 }
   0x9   :  { %p5771_p1 = scmp.lt.u32.totalorder %s5767_s29, %s6679_s1 }
   0xb   :  { %p5773_p2 = pnand %p5771_p1, %p5768_p0 }
   0xd   :  { %5776 = shalt.err (!%p5773_p2)
}
   0xe   :  { %s5777_s17 = scalar_lea.vmem %s42_s26, 32768  ;;  %p5782_p4 = scmp.lt.s32.totalorder %s42_s26, %s42_s26 }
   0xf   :  { %p5778_p3 = scmp.ne.s32.totalorder %s42_s26, %s5777_s17  ;;  %p5783_p5 = scmp.lt.s32.totalorder %s5777_s17, %s5777_s17 }
  0x11   :  { %p5784_p6 = por %p5783_p5, %p5782_p4 }
  0x13   :  { %p5785_p7 = pnand %p5784_p6, %p5778_p3 }
  0x15   :  { %5788 = shalt.err (!%p5785_p7)
}
  0x16   :  { %s6070_s18 = smov 1024   ;;  %s6071_s19 = smov 64  }
  0x17   :  { %47 = dma.hbm_to_vmem [thread:$0]  %s6679_s1, 32768, %s42_s26, [#allocation6], %s6070_s18, %s6070_s18, %s6071_s19  }
  0x18   :  { %s6072_s22 = smov [#allocation8]   ;;  %s5789_s27 = scalar_lea.hbm %s6681_s3, 65536 }
  0x19   :  { %s63_s23 = sshll.u32 %s6072_s22, 4  ;;  %p5790_p8 = scmp.ne.s32.totalorder %s6681_s3, %s5789_s27  ;;  %s64_s23 = int_to_ptr.vmem [resolvable:$true] %s63_s23 }
  0x1a   :  { %p5793_p9 = scmp.lt.u32.totalorder %s5789_s27, %s6681_s3 }
  0x1c   :  { %p5795_p10 = pnand %p5793_p9, %p5790_p8 }
  0x1e   :  { %5798 = shalt.err (!%p5795_p10)
}
  0x1f   :  { %s5799_s15 = scalar_lea.vmem %s64_s23, 65536  ;;  %p5804_p12 = scmp.lt.s32.totalorder %s64_s23, %s64_s23 }
  0x20   :  { %p5800_p11 = scmp.ne.s32.totalorder %s64_s23, %s5799_s15  ;;  %p5805_p13 = scmp.lt.s32.totalorder %s5799_s15, %s5799_s15 }
  0x22   :  { %p5806_p0 = por %p5805_p13, %p5804_p12 }
  0x24   :  { %p5807_p1 = pnand %p5806_p0, %p5800_p11 }
  0x26   :  { %5810 = shalt.err (!%p5807_p1)
}
  0x27   :  { %s6073_s1 = smov 512   ;;  %s6074_s26 = smov 32  }
  0x28   :  { %69 = dma.hbm_to_vmem [thread:$0]  %s6681_s3, 65536, %s64_s23, [#allocation9], %s6073_s1, %s6073_s1, %s6074_s26  }
  0x29   :  { %s6075_s20 = smov [#allocation11]   ;;  %s6076_s22 = smov [#allocation14]  }
  0x2a   :  { %s88_s21 = sshll.u32 %s6075_s20, 4  ;;  %s110_s24 = sshll.u32 %s6076_s22, 4  ;;  %s89_s21 = int_to_ptr.vmem [resolvable:$true] %s88_s21  ;;  %s111_s24 = int_to_ptr.vmem [resolvable:$true] %s110_s24 }
  0x2b   :  { %s5811_s28 = scalar_lea.hbm %s6684_s6, 16 }
  0x2c   :  { %p5812_p2 = scmp.ne.s32.totalorder %s6684_s6, %s5811_s28  ;;  %p5815_p3 = scmp.lt.u32.totalorder %s5811_s28, %s6684_s6 }
  0x2e   :  { %p5817_p4 = pnand %p5815_p3, %p5812_p2 }
  0x30   :  { %5820 = shalt.err (!%p5817_p4)
}
  0x31   :  { %s5821_s3 = scalar_lea.vmem %s89_s21, 16  ;;  %s5825_s23 = scalar_lea.vmem %s89_s21, 32 }
  0x32   :  { %p5822_p5 = scmp.ne.s32.totalorder %s89_s21, %s5821_s3  ;;  %p5826_p6 = scmp.lt.s32.totalorder %s89_s21, %s89_s21 }
  0x33   :  { %p5827_p7 = scmp.lt.s32.totalorder %s5825_s23, %s5821_s3 }
  0x35   :  { %p5828_p8 = por %p5827_p7, %p5826_p6 }
  0x37   :  { %p5829_p9 = pnand %p5828_p8, %p5822_p5 }
  0x39   :  { %5832 = shalt.err (!%p5829_p9)
}
  0x3a   :  { %91 = dma.hbm_to_vmem [thread:$0]  %s6684_s6, 16, %s89_s21, [#allocation12]  }
  0x3b   :  { %s5833_s25 = scalar_lea.hbm %s6686_s8, 64 }
  0x3c   :  { %p5834_p10 = scmp.ne.s32.totalorder %s6686_s8, %s5833_s25  ;;  %p5837_p11 = scmp.lt.u32.totalorder %s5833_s25, %s6686_s8 }
  0x3e   :  { %p5839_p12 = pnand %p5837_p11, %p5834_p10 }
  0x40   :  { %5842 = shalt.err (!%p5839_p12)
}
  0x41   :  { %s5843_s14 = scalar_lea.vmem %s111_s24, 64  ;;  %p5848_p0 = scmp.lt.s32.totalorder %s111_s24, %s111_s24 }
  0x42   :  { %p5844_p13 = scmp.ne.s32.totalorder %s111_s24, %s5843_s14  ;;  %p5849_p1 = scmp.lt.s32.totalorder %s5843_s14, %s5843_s14 }
  0x44   :  { %p5850_p2 = por %p5849_p1, %p5848_p0 }
  0x46   :  { %p5851_p3 = pnand %p5850_p2, %p5844_p13 }
  0x48   :  { %5854 = shalt.err (!%p5851_p3)
}
  0x49   :  { %113 = dma.hbm_to_vmem [thread:$0]  %s6686_s8, 64, %s111_s24, [#allocation15]  }
  0x4a   :  { %s6077_s15 = smov [#allocation17]   ;;  %s6078_s23 = smov [#allocation2]  }
  0x4b   :  { %s132_s3 = sshll.u32 %s6077_s15, 4  ;;  %s32_s16 = sshll.u32 %s6078_s23, 4  ;;  %s133_s3 = int_to_ptr.vmem [resolvable:$true] %s132_s3  ;;  %s33_s16 = int_to_ptr.vmem [resolvable:$true] %s32_s16 }
  0x4c   :  { %s5855_s22 = scalar_lea.hbm %s6688_s10, 128 }
  0x4d   :  { %p5856_p4 = scmp.ne.s32.totalorder %s6688_s10, %s5855_s22  ;;  %p5859_p5 = scmp.lt.u32.totalorder %s5855_s22, %s6688_s10 }
  0x4f   :  { %p5861_p6 = pnand %p5859_p5, %p5856_p4 }
  0x51   :  { %5864 = shalt.err (!%p5861_p6)
}
  0x52   :  { %s5865_s8 = scalar_lea.vmem %s133_s3, 128  ;;  %p5870_p8 = scmp.lt.s32.totalorder %s133_s3, %s133_s3 }
  0x53   :  { %p5866_p7 = scmp.ne.s32.totalorder %s133_s3, %s5865_s8  ;;  %p5871_p9 = scmp.lt.s32.totalorder %s5865_s8, %s5865_s8 }
  0x55   :  { %p5872_p10 = por %p5871_p9, %p5870_p8 }
  0x57   :  { %p5873_p11 = pnand %p5872_p10, %p5866_p7 }
  0x59   :  { %5876 = shalt.err (!%p5873_p11)
}
  0x5a   :  { %135 = dma.hbm_to_vmem [thread:$0]  %s6688_s10, 128, %s133_s3, [#allocation18]  }
  0x5b   :  { %s5877_s21 = scalar_lea.hbm %s6678_s0, 256 }
  0x5c   :  { %p5878_p12 = scmp.ne.s32.totalorder %s6678_s0, %s5877_s21  ;;  %p5881_p13 = scmp.lt.u32.totalorder %s5877_s21, %s6678_s0 }
  0x5e   :  { %p5883_p0 = pnand %p5881_p13, %p5878_p12 }
  0x60   :  { %5886 = shalt.err (!%p5883_p0)
}
  0x61   :  { %s5887_s22 = scalar_lea.vmem %s33_s16, 256  ;;  %p5892_p2 = scmp.lt.s32.totalorder %s33_s16, %s33_s16 }
  0x62   :  { %p5888_p1 = scmp.ne.s32.totalorder %s33_s16, %s5887_s22  ;;  %p5893_p3 = scmp.lt.s32.totalorder %s5887_s22, %s5887_s22 }
  0x64   :  { %p5894_p4 = por %p5893_p3, %p5892_p2 }
  0x66   :  { %p5895_p5 = pnand %p5894_p4, %p5888_p1 }
  0x68   :  { %5898 = shalt.err (!%p5895_p5)
}
  0x69   :  { %35 = dma.hbm_to_vmem [thread:$0]  %s6678_s0, 256, %s33_s16, [#allocation3]  }
  0x6a   :  { %s6079_s25 = smov [#allocation7]   ;;  %s6080_s28 = smov [#allocation10]  }
  0x6b   :  { %s54_s27 = sshll.u32 %s6079_s25, 4  ;;  %s76_s29 = sshll.u32 %s6080_s28, 4  ;;  %s55_s27 = int_to_ptr.vmem [resolvable:$true] %s54_s27  ;;  %s77_s29 = int_to_ptr.vmem [resolvable:$true] %s76_s29 }
  0x6c   :  { %s5899_s30 = scalar_lea.hbm %s6680_s2, 128 }
  0x6d   :  { %p5900_p6 = scmp.ne.s32.totalorder %s6680_s2, %s5899_s30  ;;  %p5903_p7 = scmp.lt.u32.totalorder %s5899_s30, %s6680_s2 }
  0x6f   :  { %p5905_p8 = pnand %p5903_p7, %p5900_p6 }
  0x71   :  { %5908 = shalt.err (!%p5905_p8)
}
  0x72   :  { %s5909_s0 = scalar_lea.vmem %s55_s27, 128  ;;  %p5914_p10 = scmp.lt.s32.totalorder %s55_s27, %s55_s27 }
  0x73   :  { %p5910_p9 = scmp.ne.s32.totalorder %s55_s27, %s5909_s0  ;;  %p5915_p11 = scmp.lt.s32.totalorder %s5909_s0, %s5909_s0 }
  0x75   :  { %p5916_p12 = por %p5915_p11, %p5914_p10 }
  0x77   :  { %p5917_p13 = pnand %p5916_p12, %p5910_p9 }
  0x79   :  { %5920 = shalt.err (!%p5917_p13)
}
  0x7a   :  { %57 = dma.hbm_to_vmem [thread:$0]  %s6680_s2, 128, %s55_s27, [#allocation6]  }
  0x7b   :  { %s5921_s22 = scalar_lea.hbm %s6682_s4, 64 }
  0x7c   :  { %p5922_p0 = scmp.ne.s32.totalorder %s6682_s4, %s5921_s22  ;;  %p5925_p1 = scmp.lt.u32.totalorder %s5921_s22, %s6682_s4 }
  0x7e   :  { %p5927_p2 = pnand %p5925_p1, %p5922_p0 }
  0x80   :  { %5930 = shalt.err (!%p5927_p2)
}
  0x81   :  { %s5931_s8 = scalar_lea.vmem %s77_s29, 64  ;;  %p5936_p4 = scmp.lt.s32.totalorder %s77_s29, %s77_s29 }
  0x82   :  { %p5932_p3 = scmp.ne.s32.totalorder %s77_s29, %s5931_s8  ;;  %p5937_p5 = scmp.lt.s32.totalorder %s5931_s8, %s5931_s8 }
  0x84   :  { %p5938_p6 = por %p5937_p5, %p5936_p4 }
  0x86   :  { %p5939_p7 = pnand %p5938_p6, %p5932_p3 }
  0x88   :  { %5942 = shalt.err (!%p5939_p7)
}
  0x89   :  { %79 = dma.hbm_to_vmem [thread:$0]  %s6682_s4, 64, %s77_s29, [#allocation9]  }
  0x8a   :  { %s6081_s24 = smov [#allocation13]   ;;  %s6082_s14 = smov [#allocation16]  }
  0x8b   :  { %s97_s30 = sshll.u32 %s6081_s24, 4  ;;  %s119_s6 = sshll.u32 %s6082_s14, 4  ;;  %s98_s30 = int_to_ptr.vmem [resolvable:$true] %s97_s30  ;;  %s6261_s6 = int_to_ptr.vmem [resolvable:$true] %s119_s6 }
  0x8c   :  { %s5943_s0 = scalar_lea.hbm %s6685_s7, 2048 }
  0x8d   :  { %p5944_p8 = scmp.ne.s32.totalorder %s6685_s7, %s5943_s0  ;;  %p5947_p9 = scmp.lt.u32.totalorder %s5943_s0, %s6685_s7 }
  0x8f   :  { %p5949_p10 = pnand %p5947_p9, %p5944_p8 }
  0x91   :  { %5952 = shalt.err (!%p5949_p10)
}
  0x92   :  { %s5953_s4 = scalar_lea.vmem %s98_s30, 2048  ;;  %p5958_p12 = scmp.lt.s32.totalorder %s98_s30, %s98_s30 }
  0x93   :  { %p5954_p11 = scmp.ne.s32.totalorder %s98_s30, %s5953_s4  ;;  %p5959_p13 = scmp.lt.s32.totalorder %s5953_s4, %s5953_s4 }
  0x95   :  { %p5960_p0 = por %p5959_p13, %p5958_p12 }
  0x97   :  { %p5961_p1 = pnand %p5960_p0, %p5954_p11 }
  0x99   :  { %5964 = shalt.err (!%p5961_p1)
}
  0x9a   :  { %103 = dma.hbm_to_vmem [thread:$0]  %s6685_s7, 2048, %s98_s30, [#allocation12], %s6073_s1, %s6073_s1, %s6074_s26  }
  0x9b   :  { %s5965_s25 = scalar_lea.hbm %s6687_s9, 65536 }
  0x9c   :  { %p5966_p2 = scmp.ne.s32.totalorder %s6687_s9, %s5965_s25  ;;  %p5969_p3 = scmp.lt.u32.totalorder %s5965_s25, %s6687_s9 }
  0x9e   :  { %p5971_p4 = pnand %p5969_p3, %p5966_p2 }
  0xa0   :  { %5974 = shalt.err (!%p5971_p4)
}
  0xa1   :  { %s5975_s24 = scalar_lea.vmem %s6261_s6, 65536  ;;  %p5980_p6 = scmp.lt.s32.totalorder %s6261_s6, %s6261_s6 }
  0xa2   :  { %p5976_p5 = scmp.ne.s32.totalorder %s6261_s6, %s5975_s24  ;;  %p5981_p7 = scmp.lt.s32.totalorder %s5975_s24, %s5975_s24 }
  0xa4   :  { %p5982_p8 = por %p5981_p7, %p5980_p6 }
  0xa6   :  { %p5983_p9 = pnand %p5982_p8, %p5976_p5 }
  0xa8   :  { %5986 = shalt.err (!%p5983_p9)
}
  0xa9   :  { %125 = dma.hbm_to_vmem [thread:$0]  %s6687_s9, 65536, %s6261_s6, [#allocation15], %s6070_s18, %s6070_s18, %s6071_s19  }
  0xaa   :  { %s6083_s26 = smov [#allocation19]   ;;  %s5987_s15 = scalar_lea.hbm %s6689_s11, 32768 }
  0xab   :  { %s141_s30 = sshll.u32 %s6083_s26, 4  ;;  %p5988_p10 = scmp.ne.s32.totalorder %s6689_s11, %s5987_s15  ;;  %s142_s30 = int_to_ptr.vmem [resolvable:$true] %s141_s30 }
  0xac   :  { %p5991_p11 = scmp.lt.u32.totalorder %s5987_s15, %s6689_s11 }
  0xae   :  { %p5993_p12 = pnand %p5991_p11, %p5988_p10 }
  0xb0   :  { %5996 = shalt.err (!%p5993_p12)
}
  0xb1   :  { %s5997_s20 = scalar_lea.vmem %s142_s30, 32768  ;;  %p6002_p0 = scmp.lt.s32.totalorder %s142_s30, %s142_s30 }
  0xb2   :  { %p5998_p13 = scmp.ne.s32.totalorder %s142_s30, %s5997_s20  ;;  %p6003_p1 = scmp.lt.s32.totalorder %s5997_s20, %s5997_s20 }
  0xb4   :  { %p6004_p2 = por %p6003_p1, %p6002_p0 }
  0xb6   :  { %p6005_p3 = pnand %p6004_p2, %p5998_p13 }
  0xb8   :  { %6008 = shalt.err (!%p6005_p3)
}
  0xb9   :  { %s6084_s9 = smov 256   ;;  %s6085_s18 = smov 16  }
  0xba   :  { %147 = dma.hbm_to_vmem [thread:$0]  %s6689_s11, 32768, %s142_s30, [#allocation18], %s6084_s9, %s6084_s9, %s6085_s18  }
  0xbb   :  { %s6086_s4 = smov [#allocation20]   ;;  %s6009_s3 = scalar_lea.hbm %s6690_s12, 32 }
  0xbc   :  { %s154_s29 = sshll.u32 %s6086_s4, 4  ;;  %p6010_p4 = scmp.ne.s32.totalorder %s6690_s12, %s6009_s3  ;;  %s155_s29 = int_to_ptr.vmem [resolvable:$true] %s154_s29 }
  0xbd   :  { %p6013_p5 = scmp.lt.u32.totalorder %s6009_s3, %s6690_s12 }
  0xbf   :  { %p6015_p6 = pnand %p6013_p5, %p6010_p4 }
  0xc1   :  { %6018 = shalt.err (!%p6015_p6)
}
  0xc2   :  { %s6019_s27 = scalar_lea.vmem %s155_s29, 32  ;;  %p6024_p8 = scmp.lt.s32.totalorder %s155_s29, %s155_s29 }
  0xc3   :  { %p6020_p7 = scmp.ne.s32.totalorder %s155_s29, %s6019_s27  ;;  %p6025_p9 = scmp.lt.s32.totalorder %s6019_s27, %s6019_s27 }
  0xc5   :  { %p6026_p10 = por %p6025_p9, %p6024_p8 }
  0xc7   :  { %p6027_p11 = pnand %p6026_p10, %p6020_p7 }
  0xc9   :  { %6030 = shalt.err (!%p6027_p11)
}
  0xca   :  { %157 = dma.hbm_to_vmem [thread:$0]  %s6690_s12, 32, %s155_s29, [#allocation21]  }
  0xcb   :  { %6053 = dma.done.wait [#allocation3], 256  }
  0xcc   :  { %6054 = vsyncadd [#allocation3], 4294967040 }
  0xcd   :  { %6055 = dma.done.wait [#allocation6], 32896  }
  0xce   :  { %6056 = vsyncadd [#allocation6], 4294934400 }
  0xcf   :  { %6057 = dma.done.wait [#allocation9], 65600  }
  0xd0   :  { %6058 = vsyncadd [#allocation9], 4294901696 }
  0xd1   :  { %6059 = dma.done.wait [#allocation12], 2064  }
  0xd2   :  { %6060 = vsyncadd [#allocation12], 4294965232 }
  0xd3   :  { %6061 = dma.done.wait [#allocation15], 65600  }
  0xd4   :  { %6062 = vsyncadd [#allocation15], 4294901696 }
  0xd5   :  { %6063 = dma.done.wait [#allocation18], 32896  }
  0xd6   :  { %6064 = vsyncadd [#allocation18], 4294934400 }
  0xd7   :  { %6065 = dma.done.wait [#allocation21], 32  }
  0xd8   :  { %6066 = vsyncadd [#allocation21], 4294967264  ;;  %v197_v0 = vld [vmem:[#allocation5 + $0x8] sm:$0xff]  ;;  %v196_v2 = vld [vmem:[#allocation5] sm:$0xff]  ;;  %vm2141_vm0 = vcmask 261120  }
  0xd9   :  { %v205_v1 = vld [vmem:[#allocation5 + $0x48] sm:$0xff]  ;;  %v204_v4 = vld [vmem:[#allocation5 + $0x40] sm:$0xff]  ;;  %v6322_v41 = vld [vmem:[#allocation2 + $0x8] sm:$0xff] }
  0xda   :  { %v4081_v3 = vpack.c.bf16 %v205_v1, %v197_v0  ;;  %v213_v5 = vld [vmem:[#allocation5 + $0x88] sm:$0xff]  ;;  %v4083_v7 = vpack.c.bf16 %v204_v4, %v196_v2  ;;  %v212_v9 = vld [vmem:[#allocation5 + $0x80] sm:$0xff]  ;;  %558 = vmatprep.mubr.f32.mxu1 %v6322_v41 }
  0xdb   :  { %v221_v6 = vld [vmem:[#allocation5 + $0xc8] sm:$0xff]  ;;  %v220_v10 = vld [vmem:[#allocation5 + $0xc0] sm:$0xff] }
  0xdc   :  { %v4085_v8 = vpack.c.bf16 %v221_v6, %v213_v5  ;;  %v229_v11 = vld [vmem:[#allocation5 + $0x108] sm:$0xff]  ;;  %4082 = vmatprep.subr.bf16.mxu1 %v4081_v3  ;;  %v4087_v13 = vpack.c.bf16 %v220_v10, %v212_v9  ;;  %v228_v15 = vld [vmem:[#allocation5 + $0x100] sm:$0xff] }
  0xdd   :  { %v237_v12 = vld [vmem:[#allocation5 + $0x148] sm:$0xff]  ;;  %4084 = vmatpush1.bf16.msra.mxu1 %v4083_v7  ;;  %v236_v16 = vld [vmem:[#allocation5 + $0x140] sm:$0xff] }
  0xde   :  { %4086 = vmatprep.subr.bf16.mxu1 %v4085_v8  ;;  %v4089_v14 = vpack.c.bf16 %v237_v12, %v229_v11  ;;  %v245_v17 = vld [vmem:[#allocation5 + $0x188] sm:$0xff]  ;;  %v4091_v19 = vpack.c.bf16 %v236_v16, %v228_v15  ;;  %v244_v21 = vld [vmem:[#allocation5 + $0x180] sm:$0xff] }
  0xdf   :  { %v253_v18 = vld [vmem:[#allocation5 + $0x1c8] sm:$0xff]  ;;  %v252_v22 = vld [vmem:[#allocation5 + $0x1c0] sm:$0xff] }
  0xe0   :  { %v4093_v20 = vpack.c.bf16 %v253_v18, %v245_v17  ;;  %v261_v23 = vld [vmem:[#allocation5 + $0x208] sm:$0xff]  ;;  %v4095_v25 = vpack.c.bf16 %v252_v22, %v244_v21  ;;  %v260_v27 = vld [vmem:[#allocation5 + $0x200] sm:$0xff] }
  0xe1   :  { %4088 = vmatpush1.bf16.msra.mxu1 %v4087_v13  ;;  %v269_v24 = vld [vmem:[#allocation5 + $0x248] sm:$0xff]  ;;  %v268_v28 = vld [vmem:[#allocation5 + $0x240] sm:$0xff] }
  0xe2   :  { %4090 = vmatprep.subr.bf16.mxu1 %v4089_v14  ;;  %v4097_v26 = vpack.c.bf16 %v269_v24, %v261_v23  ;;  %v277_v29 = vld [vmem:[#allocation5 + $0x288] sm:$0xff]  ;;  %v4099_v31 = vpack.c.bf16 %v268_v28, %v260_v27  ;;  %v276_v33 = vld [vmem:[#allocation5 + $0x280] sm:$0xff] }
  0xe3   :  { %v285_v30 = vld [vmem:[#allocation5 + $0x2c8] sm:$0xff]  ;;  %v284_v34 = vld [vmem:[#allocation5 + $0x2c0] sm:$0xff] }
  0xe4   :  { %v4101_v32 = vpack.c.bf16 %v285_v30, %v277_v29  ;;  %v293_v35 = vld [vmem:[#allocation5 + $0x308] sm:$0xff]  ;;  %v4103_v37 = vpack.c.bf16 %v284_v34, %v276_v33  ;;  %v292_v39 = vld [vmem:[#allocation5 + $0x300] sm:$0xff]  ;;  %v207_v33 = vld [vmem:[#allocation5 + $0x58] sm:$0xff] }
  0xe5   :  { %4092 = vmatpush1.bf16.msra.mxu1 %v4091_v19  ;;  %v301_v36 = vld [vmem:[#allocation5 + $0x348] sm:$0xff]  ;;  %v300_v40 = vld [vmem:[#allocation5 + $0x340] sm:$0xff] }
  0xe6   :  { %4094 = vmatprep.subr.bf16.mxu1 %v4093_v20  ;;  %v4105_v38 = vpack.c.bf16 %v301_v36, %v293_v35  ;;  %v309_v42 = vld [vmem:[#allocation5 + $0x388] sm:$0xff]  ;;  %v4107_v44 = vpack.c.bf16 %v300_v40, %v292_v39  ;;  %v308_v46 = vld [vmem:[#allocation5 + $0x380] sm:$0xff]  ;;  %v198_v36 = vld [vmem:[#allocation5 + $0x10] sm:$0xff] }
  0xe7   :  { %v317_v43 = vld [vmem:[#allocation5 + $0x3c8] sm:$0xff]  ;;  %v316_v47 = vld [vmem:[#allocation5 + $0x3c0] sm:$0xff]  ;;  %v223_v39 = vld [vmem:[#allocation5 + $0xd8] sm:$0xff] }
  0xe8   :  { %v4109_v45 = vpack.c.bf16 %v317_v43, %v309_v42  ;;  %v325_v48 = vld [vmem:[#allocation5 + $0x408] sm:$0xff]  ;;  %v4111_v50 = vpack.c.bf16 %v316_v47, %v308_v46  ;;  %v324_v52 = vld [vmem:[#allocation5 + $0x400] sm:$0xff]  ;;  %v6325_v40 = vld [vmem:[#allocation2] sm:$0xff] }
  0xe9   :  { %4096 = vmatpush1.bf16.msra.mxu1 %v4095_v25  ;;  %v333_v49 = vld [vmem:[#allocation5 + $0x448] sm:$0xff]  ;;  %v332_v53 = vld [vmem:[#allocation5 + $0x440] sm:$0xff]  ;;  %v231_v46 = vld [vmem:[#allocation5 + $0x118] sm:$0xff] }
  0xea   :  { %4098 = vmatprep.subr.bf16.mxu1 %v4097_v26  ;;  %v4113_v51 = vpack.c.bf16 %v333_v49, %v325_v48  ;;  %v341_v54 = vld [vmem:[#allocation5 + $0x488] sm:$0xff]  ;;  %v4115_v56 = vpack.c.bf16 %v332_v53, %v324_v52  ;;  %v340_v58 = vld [vmem:[#allocation5 + $0x480] sm:$0xff]  ;;  %v239_v47 = vld [vmem:[#allocation5 + $0x158] sm:$0xff] }
  0xeb   :  { %v349_v55 = vld [vmem:[#allocation5 + $0x4c8] sm:$0xff]  ;;  %v348_v59 = vld [vmem:[#allocation5 + $0x4c0] sm:$0xff]  ;;  %v4153_v49 = vpack.c.bf16 %v239_v47, %v231_v46  ;;  %v247_v52 = vld [vmem:[#allocation5 + $0x198] sm:$0xff] }
  0xec   :  { %v4117_v57 = vpack.c.bf16 %v349_v55, %v341_v54  ;;  %v357_v60 = vld [vmem:[#allocation5 + $0x508] sm:$0xff]  ;;  %v4119_v62 = vpack.c.bf16 %v348_v59, %v340_v58  ;;  %v356_v0 = vld [vmem:[#allocation5 + $0x500] sm:$0xff]  ;;  %v255_v53 = vld [vmem:[#allocation5 + $0x1d8] sm:$0xff] }
  0xed   :  { %4100 = vmatpush1.bf16.msra.mxu1 %v4099_v31  ;;  %v365_v61 = vld [vmem:[#allocation5 + $0x548] sm:$0xff]  ;;  %v364_v1 = vld [vmem:[#allocation5 + $0x540] sm:$0xff]  ;;  %v4157_v55 = vpack.c.bf16 %v255_v53, %v247_v52  ;;  %v263_v58 = vld [vmem:[#allocation5 + $0x218] sm:$0xff] }
  0xee   :  { %4102 = vmatprep.subr.bf16.mxu1 %v4101_v32  ;;  %v4121_v63 = vpack.c.bf16 %v365_v61, %v357_v60  ;;  %v373_v2 = vld [vmem:[#allocation5 + $0x588] sm:$0xff]  ;;  %v4123_v4 = vpack.c.bf16 %v364_v1, %v356_v0  ;;  %v372_v6 = vld [vmem:[#allocation5 + $0x580] sm:$0xff]  ;;  %v199_v32 = vld [vmem:[#allocation5 + $0x18] sm:$0xff] }
  0xef   :  { %v381_v3 = vld [vmem:[#allocation5 + $0x5c8] sm:$0xff]  ;;  %v380_v7 = vld [vmem:[#allocation5 + $0x5c0] sm:$0xff]  ;;  %v4145_v35 = vpack.c.bf16 %v207_v33, %v199_v32  ;;  %v271_v59 = vld [vmem:[#allocation5 + $0x258] sm:$0xff] }
  0xf0   :  { %v4125_v5 = vpack.c.bf16 %v381_v3, %v373_v2  ;;  %v389_v8 = vld [vmem:[#allocation5 + $0x608] sm:$0xff]  ;;  %v4127_v10 = vpack.c.bf16 %v380_v7, %v372_v6  ;;  %v388_v12 = vld [vmem:[#allocation5 + $0x600] sm:$0xff]  ;;  %v4161_v61 = vpack.c.bf16 %v271_v59, %v263_v58  ;;  %v279_v0 = vld [vmem:[#allocation5 + $0x298] sm:$0xff] }
  0xf1   :  { %4104 = vmatpush1.bf16.msra.mxu1 %v4103_v37  ;;  %v397_v9 = vld [vmem:[#allocation5 + $0x648] sm:$0xff]  ;;  %v396_v13 = vld [vmem:[#allocation5 + $0x640] sm:$0xff]  ;;  %v206_v37 = vld [vmem:[#allocation5 + $0x50] sm:$0xff] }
  0xf2   :  { %4106 = vmatprep.subr.bf16.mxu1 %v4105_v38  ;;  %v4129_v11 = vpack.c.bf16 %v397_v9, %v389_v8  ;;  %v405_v14 = vld [vmem:[#allocation5 + $0x688] sm:$0xff]  ;;  %v4131_v16 = vpack.c.bf16 %v396_v13, %v388_v12  ;;  %v404_v18 = vld [vmem:[#allocation5 + $0x680] sm:$0xff]  ;;  %v215_v38 = vld [vmem:[#allocation5 + $0x98] sm:$0xff]  ;;  %v4147_v42 = vpack.c.bf16 %v206_v37, %v198_v36 }
  0xf3   :  { %v413_v15 = vld [vmem:[#allocation5 + $0x6c8] sm:$0xff]  ;;  %v412_v19 = vld [vmem:[#allocation5 + $0x6c0] sm:$0xff]  ;;  %v4149_v43 = vpack.c.bf16 %v223_v39, %v215_v38  ;;  %v287_v1 = vld [vmem:[#allocation5 + $0x2d8] sm:$0xff] }
  0xf4   :  { %v4133_v17 = vpack.c.bf16 %v413_v15, %v405_v14  ;;  %v421_v20 = vld [vmem:[#allocation5 + $0x708] sm:$0xff]  ;;  %v4135_v22 = vpack.c.bf16 %v412_v19, %v404_v18  ;;  %v420_v24 = vld [vmem:[#allocation5 + $0x700] sm:$0xff]  ;;  %v4165_v3 = vpack.c.bf16 %v287_v1, %v279_v0  ;;  %v295_v6 = vld [vmem:[#allocation5 + $0x318] sm:$0xff] }
  0xf5   :  { %4108 = vmatpush1.bf16.msra.mxu1 %v4107_v44  ;;  %v429_v21 = vld [vmem:[#allocation5 + $0x748] sm:$0xff]  ;;  %v428_v25 = vld [vmem:[#allocation5 + $0x740] sm:$0xff]  ;;  %v214_v44 = vld [vmem:[#allocation5 + $0x90] sm:$0xff] }
  0xf6   :  { %4110 = vmatprep.subr.bf16.mxu1 %v4109_v45  ;;  %v4137_v23 = vpack.c.bf16 %v429_v21, %v421_v20  ;;  %v437_v26 = vld [vmem:[#allocation5 + $0x788] sm:$0xff]  ;;  %v4139_v28 = vpack.c.bf16 %v428_v25, %v420_v24  ;;  %v436_v30 = vld [vmem:[#allocation5 + $0x780] sm:$0xff]  ;;  %v222_v45 = vld [vmem:[#allocation5 + $0xd0] sm:$0xff] }
  0xf7   :  { %v445_v27 = vld [vmem:[#allocation5 + $0x7c8] sm:$0xff]  ;;  %v444_v31 = vld [vmem:[#allocation5 + $0x7c0] sm:$0xff]  ;;  %v4151_v48 = vpack.c.bf16 %v222_v45, %v214_v44  ;;  %v303_v7 = vld [vmem:[#allocation5 + $0x358] sm:$0xff] }
  0xf8   :  { %v4141_v29 = vpack.c.bf16 %v445_v27, %v437_v26  ;;  %v4143_v34 = vpack.c.bf16 %v444_v31, %v436_v30  ;;  %v4169_v9 = vpack.c.bf16 %v303_v7, %v295_v6  ;;  %v311_v12 = vld [vmem:[#allocation5 + $0x398] sm:$0xff]  ;;  %v787_v20 = vld [vmem:[#allocation8 + $0x8] sm:$0xff]  ;;  %v790_v24 = vld [vmem:[#allocation8 + $0x20] sm:$0xff] }
  0xf9   :  { %4112 = vmatpush1.bf16.msra.mxu1 %v4111_v50  ;;  %v230_v50 = vld [vmem:[#allocation5 + $0x110] sm:$0xff]  ;;  %v319_v13 = vld [vmem:[#allocation5 + $0x3d8] sm:$0xff]  ;;  %v798_v36 = vld [vmem:[#allocation8 + $0x60] sm:$0xff] }
  0xfa   :  { %4114 = vmatprep.subr.bf16.mxu1 %v4113_v51  ;;  %v238_v51 = vld [vmem:[#allocation5 + $0x150] sm:$0xff]  ;;  %v4173_v15 = vpack.c.bf16 %v319_v13, %v311_v12  ;;  %v327_v18 = vld [vmem:[#allocation5 + $0x418] sm:$0xff] }
  0xfb   :  { %v4155_v54 = vpack.c.bf16 %v238_v51, %v230_v50  ;;  %v335_v19 = vld [vmem:[#allocation5 + $0x458] sm:$0xff]  ;;  %v791_v21 = vld [vmem:[#allocation8 + $0x28] sm:$0xff]  ;;  %v806_v50 = vld [vmem:[#allocation8 + $0xa0] sm:$0xff] }
  0xfc   :  { %v4177_v27 = vpack.c.bf16 %v335_v19, %v327_v18  ;;  %v343_v30 = vld [vmem:[#allocation5 + $0x498] sm:$0xff]  ;;  %v795_v32 = vld [vmem:[#allocation8 + $0x48] sm:$0xff] }
  0xfd   :  { %4116 = vmatpush1.bf16.msra.mxu1 %v4115_v56  ;;  %v246_v56 = vld [vmem:[#allocation5 + $0x190] sm:$0xff]  ;;  %v351_v31 = vld [vmem:[#allocation5 + $0x4d8] sm:$0xff] }
  0xfe   :  { %4118 = vmatprep.subr.bf16.mxu1 %v4117_v57  ;;  %v254_v57 = vld [vmem:[#allocation5 + $0x1d0] sm:$0xff]  ;;  %v4181_v39 = vpack.c.bf16 %v351_v31, %v343_v30  ;;  %v359_v44 = vld [vmem:[#allocation5 + $0x518] sm:$0xff] }
  0xff   :  { %v4159_v60 = vpack.c.bf16 %v254_v57, %v246_v56  ;;  %v799_v33 = vld [vmem:[#allocation8 + $0x68] sm:$0xff]  ;;  %v367_v45 = vld [vmem:[#allocation5 + $0x558] sm:$0xff] }
 0x100   :  { %v803_v46 = vld [vmem:[#allocation8 + $0x88] sm:$0xff]  ;;  %v4185_v53 = vpack.c.bf16 %v367_v45, %v359_v44  ;;  %v375_v56 = vld [vmem:[#allocation5 + $0x598] sm:$0xff] }
 0x101   :  { %4120 = vmatpush1.bf16.msra.mxu1 %v4119_v62  ;;  %v262_v62 = vld [vmem:[#allocation5 + $0x210] sm:$0xff]  ;;  %v383_v57 = vld [vmem:[#allocation5 + $0x5d8] sm:$0xff] }
 0x102   :  { %4122 = vmatprep.subr.bf16.mxu1 %v4121_v63  ;;  %v270_v63 = vld [vmem:[#allocation5 + $0x250] sm:$0xff]  ;;  %v4189_v1 = vpack.c.bf16 %v383_v57, %v375_v56 }
 0x103   :  { %v4163_v2 = vpack.c.bf16 %v270_v63, %v262_v62  ;;  %v807_v47 = vld [vmem:[#allocation8 + $0xa8] sm:$0xff]  ;;  %v814_v62 = vld [vmem:[#allocation8 + $0xe0] sm:$0xff] }
 0x104   :  { %v811_v58 = vld [vmem:[#allocation8 + $0xc8] sm:$0xff] }
 0x105   :  { %4124 = vmatpush1.bf16.msra.mxu1 %v4123_v4  ;;  %v278_v4 = vld [vmem:[#allocation5 + $0x290] sm:$0xff] }
 0x106   :  { %4126 = vmatprep.subr.bf16.mxu1 %v4125_v5  ;;  %v286_v5 = vld [vmem:[#allocation5 + $0x2d0] sm:$0xff] }
 0x107   :  { %v4167_v8 = vpack.c.bf16 %v286_v5, %v278_v4  ;;  %v815_v59 = vld [vmem:[#allocation8 + $0xe8] sm:$0xff]  ;;  %v391_v4 = vld [vmem:[#allocation5 + $0x618] sm:$0xff] }
 0x108   :  { %v399_v5 = vld [vmem:[#allocation5 + $0x658] sm:$0xff]  ;;  %v819_v6 = vld [vmem:[#allocation8 + $0x108] sm:$0xff] }
 0x109   :  { %4128 = vmatpush1.bf16.msra.mxu1 %v4127_v10  ;;  %v294_v10 = vld [vmem:[#allocation5 + $0x310] sm:$0xff]  ;;  %v4193_v13 = vpack.c.bf16 %v399_v5, %v391_v4 }
 0x10a   :  { %4130 = vmatprep.subr.bf16.mxu1 %v4129_v11  ;;  %v302_v11 = vld [vmem:[#allocation5 + $0x350] sm:$0xff] }
 0x10b   :  { %v4171_v14 = vpack.c.bf16 %v302_v11, %v294_v10  ;;  %v823_v7 = vld [vmem:[#allocation8 + $0x128] sm:$0xff]  ;;  %v822_v10 = vld [vmem:[#allocation8 + $0x120] sm:$0xff] }
 0x10c   :  { %v827_v18 = vld [vmem:[#allocation8 + $0x148] sm:$0xff] }
 0x10d   :  { %4132 = vmatpush1.bf16.msra.mxu1 %v4131_v16  ;;  %v310_v16 = vld [vmem:[#allocation5 + $0x390] sm:$0xff] }
 0x10e   :  { %4134 = vmatprep.subr.bf16.mxu1 %v4133_v17  ;;  %v318_v17 = vld [vmem:[#allocation5 + $0x3d0] sm:$0xff] }
 0x10f   :  { %v4175_v25 = vpack.c.bf16 %v318_v17, %v310_v16  ;;  %v407_v16 = vld [vmem:[#allocation5 + $0x698] sm:$0xff]  ;;  %v831_v19 = vld [vmem:[#allocation8 + $0x168] sm:$0xff] }
 0x110   :  { %v415_v17 = vld [vmem:[#allocation5 + $0x6d8] sm:$0xff]  ;;  %v835_v30 = vld [vmem:[#allocation8 + $0x188] sm:$0xff] }
 0x111   :  { %4136 = vmatpush1.bf16.msra.mxu1 %v4135_v22  ;;  %v4337_v22 = vpack.c.bf16 %v791_v21, %v787_v20  ;;  %v4357_v20 = vpack.c.bf16 %v831_v19, %v827_v18  ;;  %v826_v21 = vld [vmem:[#allocation8 + $0x140] sm:$0xff]  ;;  %v839_v31 = vld [vmem:[#allocation8 + $0x1a8] sm:$0xff] }
 0x112   :  { %4138 = vmatprep.subr.bf16.mxu1 %v4137_v23  ;;  %v786_v23 = vld [vmem:[#allocation8] sm:$0xff]  ;;  %v843_v44 = vld [vmem:[#allocation8 + $0x1c8] sm:$0xff] }
 0x113   :  { %v4339_v26 = vpack.c.bf16 %v790_v24, %v786_v23  ;;  %4338 = vmatprep.subr.bf16.mxu0 %v4337_v22  ;;  %v830_v22 = vld [vmem:[#allocation8 + $0x160] sm:$0xff]  ;;  %v847_v45 = vld [vmem:[#allocation8 + $0x1e8] sm:$0xff] }
 0x114   :  { %v4359_v24 = vpack.c.bf16 %v830_v22, %v826_v21  ;;  %v851_v56 = vld [vmem:[#allocation8 + $0x208] sm:$0xff]  ;;  %v866_v19 = vld [vmem:[#allocation8 + $0x280] sm:$0xff] }
 0x115   :  { %4140 = vmatpush1.bf16.msra.mxu1 %v4139_v28  ;;  %v326_v28 = vld [vmem:[#allocation5 + $0x410] sm:$0xff]  ;;  %4340 = vmatpush1.bf16.msra.mxu0 %v4339_v26 }
 0x116   :  { %4142 = vmatprep.subr.bf16.mxu1 %v4141_v29  ;;  %v334_v29 = vld [vmem:[#allocation5 + $0x450] sm:$0xff] }
 0x117   :  { %v4179_v37 = vpack.c.bf16 %v334_v29, %v326_v28  ;;  %v406_v26 = vld [vmem:[#allocation5 + $0x690] sm:$0xff]  ;;  %v423_v28 = vld [vmem:[#allocation5 + $0x718] sm:$0xff] }
 0x118   :  { %v431_v29 = vld [vmem:[#allocation5 + $0x758] sm:$0xff]  ;;  %v855_v57 = vld [vmem:[#allocation8 + $0x228] sm:$0xff] }
 0x119   :  { %4144 = vmatpush1.bf16.msra.mxu1 %v4143_v34  ;;  %v4341_v34 = vpack.c.bf16 %v799_v33, %v795_v32  ;;  %v4361_v32 = vpack.c.bf16 %v839_v31, %v835_v30  ;;  %v834_v33 = vld [vmem:[#allocation8 + $0x180] sm:$0xff]  ;;  %v859_v4 = vld [vmem:[#allocation8 + $0x248] sm:$0xff] }
 0x11a   :  { %4146 = vmatprep.subr.bf16.mxu1 %v4145_v35  ;;  %v794_v35 = vld [vmem:[#allocation8 + $0x40] sm:$0xff]  ;;  %v863_v5 = vld [vmem:[#allocation8 + $0x268] sm:$0xff] }
 0x11b   :  { %v4343_v38 = vpack.c.bf16 %v798_v36, %v794_v35  ;;  %4342 = vmatprep.subr.bf16.mxu0 %v4341_v34  ;;  %v838_v34 = vld [vmem:[#allocation8 + $0x1a0] sm:$0xff] }
 0x11c   :  { %559 = vmatmul.mubr.f32.vlgmr.msra.gmra.mrb[0].mxu1 %v6325_v40  ;;  %v4363_v36 = vpack.c.bf16 %v838_v34, %v834_v33  ;;  %v874_v31 = vld [vmem:[#allocation8 + $0x2c0] sm:$0xff] }
 0x11d   :  { %4148 = vmatpush1.bf16.msra.mxu1 %v4147_v42  ;;  %629 = vmatprep.mubr.f32.mxu1 %v6322_v41  ;;  %v342_v42 = vld [vmem:[#allocation5 + $0x490] sm:$0xff] }
 0x11e   :  { %4150 = vmatprep.subr.bf16.mxu1 %v4149_v43  ;;  %v350_v43 = vld [vmem:[#allocation5 + $0x4d0] sm:$0xff]  ;;  %4344 = vmatpush1.bf16.msra.mxu0 %v4343_v38 }
 0x11f   :  { %v4183_v51 = vpack.c.bf16 %v350_v43, %v342_v42  ;;  %v422_v38 = vld [vmem:[#allocation5 + $0x710] sm:$0xff]  ;;  %v439_v42 = vld [vmem:[#allocation5 + $0x798] sm:$0xff] }
 0x120   :  { %v447_v43 = vld [vmem:[#allocation5 + $0x7d8] sm:$0xff] }
 0x121   :  { %4152 = vmatpush1.bf16.msra.mxu1 %v4151_v48  ;;  %v4345_v48 = vpack.c.bf16 %v807_v47, %v803_v46  ;;  %v4365_v46 = vpack.c.bf16 %v847_v45, %v843_v44  ;;  %v842_v47 = vld [vmem:[#allocation8 + $0x1c0] sm:$0xff] }
 0x122   :  { %4154 = vmatprep.subr.bf16.mxu1 %v4153_v49  ;;  %v802_v49 = vld [vmem:[#allocation8 + $0x80] sm:$0xff] }
 0x123   :  { %v4347_v52 = vpack.c.bf16 %v806_v50, %v802_v49  ;;  %4346 = vmatprep.subr.bf16.mxu0 %v4345_v48  ;;  %v846_v48 = vld [vmem:[#allocation8 + $0x1e0] sm:$0xff] }
 0x124   :  { %v4367_v50 = vpack.c.bf16 %v846_v48, %v842_v47  ;;  %v882_v45 = vld [vmem:[#allocation8 + $0x300] sm:$0xff] }
 0x125   :  { %4156 = vmatpush1.bf16.msra.mxu1 %v4155_v54  ;;  %v358_v54 = vld [vmem:[#allocation5 + $0x510] sm:$0xff]  ;;  %4348 = vmatpush1.bf16.msra.mxu0 %v4347_v52 }
 0x126   :  { %4158 = vmatprep.subr.bf16.mxu1 %v4157_v55  ;;  %v366_v55 = vld [vmem:[#allocation5 + $0x550] sm:$0xff] }
 0x127   :  { %v4187_v63 = vpack.c.bf16 %v366_v55, %v358_v54  ;;  %v438_v52 = vld [vmem:[#allocation5 + $0x790] sm:$0xff]  ;;  %v201_v54 = vld [vmem:[#allocation5 + $0x28] sm:$0xff] }
 0x128   :  { %v209_v55 = vld [vmem:[#allocation5 + $0x68] sm:$0xff] }
 0x129   :  { %4160 = vmatpush1.bf16.msra.mxu1 %v4159_v60  ;;  %v4349_v60 = vpack.c.bf16 %v815_v59, %v811_v58  ;;  %v4369_v58 = vpack.c.bf16 %v855_v57, %v851_v56  ;;  %v850_v59 = vld [vmem:[#allocation8 + $0x200] sm:$0xff] }
 0x12a   :  { %4162 = vmatprep.subr.bf16.mxu1 %v4161_v61  ;;  %v810_v61 = vld [vmem:[#allocation8 + $0xc0] sm:$0xff] }
 0x12b   :  { %v4351_v0 = vpack.c.bf16 %v814_v62, %v810_v61  ;;  %4350 = vmatprep.subr.bf16.mxu0 %v4349_v60  ;;  %v854_v60 = vld [vmem:[#allocation8 + $0x220] sm:$0xff] }
 0x12c   :  { %v4371_v62 = vpack.c.bf16 %v854_v60, %v850_v59  ;;  %v890_v57 = vld [vmem:[#allocation8 + $0x340] sm:$0xff] }
 0x12d   :  { %4164 = vmatpush1.bf16.msra.mxu1 %v4163_v2  ;;  %v374_v2 = vld [vmem:[#allocation5 + $0x590] sm:$0xff]  ;;  %4352 = vmatpush1.bf16.msra.mxu0 %v4351_v0  ;;  %v200_v0 = vld [vmem:[#allocation5 + $0x20] sm:$0xff] }
 0x12e   :  { %4166 = vmatprep.subr.bf16.mxu1 %v4165_v3  ;;  %v382_v3 = vld [vmem:[#allocation5 + $0x5d0] sm:$0xff] }
 0x12f   :  { %v4191_v11 = vpack.c.bf16 %v382_v3, %v374_v2  ;;  %v217_v2 = vld [vmem:[#allocation5 + $0xa8] sm:$0xff] }
 0x130   :  { %v225_v3 = vld [vmem:[#allocation5 + $0xe8] sm:$0xff] }
 0x131   :  { %4168 = vmatpush1.bf16.msra.mxu1 %v4167_v8  ;;  %v4353_v8 = vpack.c.bf16 %v823_v7, %v819_v6  ;;  %v4373_v6 = vpack.c.bf16 %v863_v5, %v859_v4  ;;  %v858_v7 = vld [vmem:[#allocation8 + $0x240] sm:$0xff] }
 0x132   :  { %4170 = vmatprep.subr.bf16.mxu1 %v4169_v9  ;;  %v818_v9 = vld [vmem:[#allocation8 + $0x100] sm:$0xff] }
 0x133   :  { %v4355_v12 = vpack.c.bf16 %v822_v10, %v818_v9  ;;  %4354 = vmatprep.subr.bf16.mxu0 %v4353_v8  ;;  %v862_v8 = vld [vmem:[#allocation8 + $0x260] sm:$0xff] }
 0x134   :  { %v4375_v10 = vpack.c.bf16 %v862_v8, %v858_v7  ;;  %v898_v5 = vld [vmem:[#allocation8 + $0x380] sm:$0xff] }
 0x135   :  { %4172 = vmatpush1.bf16.msra.mxu1 %v4171_v14  ;;  %v390_v14 = vld [vmem:[#allocation5 + $0x610] sm:$0xff]  ;;  %4356 = vmatpush1.bf16.msra.mxu0 %v4355_v12  ;;  %v216_v12 = vld [vmem:[#allocation5 + $0xa0] sm:$0xff] }
 0x136   :  { %4174 = vmatprep.subr.bf16.mxu1 %v4173_v15  ;;  %v398_v15 = vld [vmem:[#allocation5 + $0x650] sm:$0xff]  ;;  %4358 = vmatprep.subr.bf16.mxu0 %v4357_v20  ;;  %v870_v20 = vld [vmem:[#allocation8 + $0x2a0] sm:$0xff] }
 0x137   :  { %v4195_v23 = vpack.c.bf16 %v398_v15, %v390_v14  ;;  %v233_v14 = vld [vmem:[#allocation5 + $0x128] sm:$0xff]  ;;  %v4379_v22 = vpack.c.bf16 %v870_v20, %v866_v19 }
 0x138   :  { %v241_v15 = vld [vmem:[#allocation5 + $0x168] sm:$0xff] }
 0x139   :  { %4176 = vmatpush1.bf16.msra.mxu1 %v4175_v25  ;;  %v4197_v25 = vpack.c.bf16 %v415_v17, %v407_v16  ;;  %4360 = vmatpush1.bf16.msra.mxu0 %v4359_v24  ;;  %v867_v16 = vld [vmem:[#allocation8 + $0x288] sm:$0xff]  ;;  %v232_v24 = vld [vmem:[#allocation5 + $0x120] sm:$0xff] }
 0x13a   :  { %4178 = vmatprep.subr.bf16.mxu1 %v4177_v27  ;;  %v414_v27 = vld [vmem:[#allocation5 + $0x6d0] sm:$0xff]  ;;  %4362 = vmatprep.subr.bf16.mxu0 %v4361_v32  ;;  %v878_v32 = vld [vmem:[#allocation8 + $0x2e0] sm:$0xff] }
 0x13b   :  { %v4199_v35 = vpack.c.bf16 %v414_v27, %v406_v26  ;;  %v871_v17 = vld [vmem:[#allocation8 + $0x2a8] sm:$0xff]  ;;  %v249_v26 = vld [vmem:[#allocation5 + $0x1a8] sm:$0xff]  ;;  %v4383_v34 = vpack.c.bf16 %v878_v32, %v874_v31  ;;  %v328_v31 = vld [vmem:[#allocation5 + $0x420] sm:$0xff] }
 0x13c   :  { %v4377_v18 = vpack.c.bf16 %v871_v17, %v867_v16  ;;  %v257_v27 = vld [vmem:[#allocation5 + $0x1e8] sm:$0xff]  ;;  %v336_v32 = vld [vmem:[#allocation5 + $0x460] sm:$0xff] }
 0x13d   :  { %4180 = vmatpush1.bf16.msra.mxu1 %v4179_v37  ;;  %v4201_v37 = vpack.c.bf16 %v431_v29, %v423_v28  ;;  %4364 = vmatpush1.bf16.msra.mxu0 %v4363_v36  ;;  %v875_v28 = vld [vmem:[#allocation8 + $0x2c8] sm:$0xff]  ;;  %v248_v36 = vld [vmem:[#allocation5 + $0x1a0] sm:$0xff]  ;;  %v906_v17 = vld [vmem:[#allocation8 + $0x3c0] sm:$0xff] }
 0x13e   :  { %4182 = vmatprep.subr.bf16.mxu1 %v4181_v39  ;;  %v430_v39 = vld [vmem:[#allocation5 + $0x750] sm:$0xff]  ;;  %4366 = vmatprep.subr.bf16.mxu0 %v4365_v46  ;;  %v886_v46 = vld [vmem:[#allocation8 + $0x320] sm:$0xff] }
 0x13f   :  { %v4203_v49 = vpack.c.bf16 %v430_v39, %v422_v38  ;;  %v879_v29 = vld [vmem:[#allocation8 + $0x2e8] sm:$0xff]  ;;  %v265_v38 = vld [vmem:[#allocation5 + $0x228] sm:$0xff]  ;;  %v4387_v48 = vpack.c.bf16 %v886_v46, %v882_v45  ;;  %v360_v45 = vld [vmem:[#allocation5 + $0x520] sm:$0xff] }
 0x140   :  { %v4381_v30 = vpack.c.bf16 %v879_v29, %v875_v28  ;;  %v273_v39 = vld [vmem:[#allocation5 + $0x268] sm:$0xff]  ;;  %v368_v46 = vld [vmem:[#allocation5 + $0x560] sm:$0xff] }
 0x141   :  { %4184 = vmatpush1.bf16.msra.mxu1 %v4183_v51  ;;  %v4205_v51 = vpack.c.bf16 %v447_v43, %v439_v42  ;;  %4368 = vmatpush1.bf16.msra.mxu0 %v4367_v50  ;;  %v883_v42 = vld [vmem:[#allocation8 + $0x308] sm:$0xff]  ;;  %v264_v50 = vld [vmem:[#allocation5 + $0x220] sm:$0xff] }
 0x142   :  { %4186 = vmatprep.subr.bf16.mxu1 %v4185_v53  ;;  %v446_v53 = vld [vmem:[#allocation5 + $0x7d0] sm:$0xff]  ;;  %4370 = vmatprep.subr.bf16.mxu0 %v4369_v58  ;;  %v894_v58 = vld [vmem:[#allocation8 + $0x360] sm:$0xff] }
 0x143   :  { %v4207_v61 = vpack.c.bf16 %v446_v53, %v438_v52  ;;  %v887_v43 = vld [vmem:[#allocation8 + $0x328] sm:$0xff]  ;;  %v281_v52 = vld [vmem:[#allocation5 + $0x2a8] sm:$0xff]  ;;  %v4391_v60 = vpack.c.bf16 %v894_v58, %v890_v57  ;;  %v392_v57 = vld [vmem:[#allocation5 + $0x620] sm:$0xff] }
 0x144   :  { %v4385_v44 = vpack.c.bf16 %v887_v43, %v883_v42  ;;  %v289_v53 = vld [vmem:[#allocation5 + $0x2e8] sm:$0xff]  ;;  %v400_v58 = vld [vmem:[#allocation5 + $0x660] sm:$0xff] }
 0x145   :  { %4188 = vmatpush1.bf16.msra.mxu1 %v4187_v63  ;;  %v4209_v63 = vpack.c.bf16 %v209_v55, %v201_v54  ;;  %4372 = vmatpush1.bf16.msra.mxu0 %v4371_v62  ;;  %v891_v54 = vld [vmem:[#allocation8 + $0x348] sm:$0xff]  ;;  %v280_v62 = vld [vmem:[#allocation5 + $0x2a0] sm:$0xff]  ;;  %v369_v42 = vld [vmem:[#allocation5 + $0x568] sm:$0xff] }
 0x146   :  { %4190 = vmatprep.subr.bf16.mxu1 %v4189_v1  ;;  %v208_v1 = vld [vmem:[#allocation5 + $0x60] sm:$0xff]  ;;  %4374 = vmatprep.subr.bf16.mxu0 %v4373_v6  ;;  %v895_v55 = vld [vmem:[#allocation8 + $0x368] sm:$0xff]  ;;  %v902_v6 = vld [vmem:[#allocation8 + $0x3a0] sm:$0xff] }
 0x147   :  { %v4211_v9 = vpack.c.bf16 %v208_v1, %v200_v0  ;;  %v4389_v56 = vpack.c.bf16 %v895_v55, %v891_v54  ;;  %v297_v0 = vld [vmem:[#allocation5 + $0x328] sm:$0xff]  ;;  %v4395_v8 = vpack.c.bf16 %v902_v6, %v898_v5  ;;  %v424_v5 = vld [vmem:[#allocation5 + $0x720] sm:$0xff] }
 0x148   :  { %v305_v1 = vld [vmem:[#allocation5 + $0x368] sm:$0xff]  ;;  %v432_v6 = vld [vmem:[#allocation5 + $0x760] sm:$0xff] }
 0x149   :  { %4192 = vmatpush1.bf16.msra.mxu1 %v4191_v11  ;;  %v4213_v11 = vpack.c.bf16 %v225_v3, %v217_v2  ;;  %4376 = vmatpush1.bf16.msra.mxu0 %v4375_v10  ;;  %v899_v2 = vld [vmem:[#allocation8 + $0x388] sm:$0xff]  ;;  %v296_v10 = vld [vmem:[#allocation5 + $0x320] sm:$0xff]  ;;  %v401_v54 = vld [vmem:[#allocation5 + $0x668] sm:$0xff] }
 0x14a   :  { %4194 = vmatprep.subr.bf16.mxu1 %v4193_v13  ;;  %v224_v13 = vld [vmem:[#allocation5 + $0xe0] sm:$0xff]  ;;  %4378 = vmatprep.subr.bf16.mxu0 %v4377_v18  ;;  %v903_v3 = vld [vmem:[#allocation8 + $0x3a8] sm:$0xff]  ;;  %v910_v18 = vld [vmem:[#allocation8 + $0x3e0] sm:$0xff] }
 0x14b   :  { %v4215_v21 = vpack.c.bf16 %v224_v13, %v216_v12  ;;  %v4393_v4 = vpack.c.bf16 %v903_v3, %v899_v2  ;;  %v313_v12 = vld [vmem:[#allocation5 + $0x3a8] sm:$0xff]  ;;  %v4399_v20 = vpack.c.bf16 %v910_v18, %v906_v17  ;;  %v202_v17 = vld [vmem:[#allocation5 + $0x30] sm:$0xff] }
 0x14c   :  { %v321_v13 = vld [vmem:[#allocation5 + $0x3e8] sm:$0xff]  ;;  %v210_v18 = vld [vmem:[#allocation5 + $0x70] sm:$0xff] }
 0x14d   :  { %4196 = vmatpush1.bf16.msra.mxu1 %v4195_v23  ;;  %v4217_v23 = vpack.c.bf16 %v241_v15, %v233_v14  ;;  %4380 = vmatpush1.bf16.msra.mxu0 %v4379_v22  ;;  %v907_v14 = vld [vmem:[#allocation8 + $0x3c8] sm:$0xff]  ;;  %v312_v22 = vld [vmem:[#allocation5 + $0x3a0] sm:$0xff]  ;;  %v433_v2 = vld [vmem:[#allocation5 + $0x768] sm:$0xff] }
 0x14e   :  { %4198 = vmatprep.subr.bf16.mxu1 %v4197_v25  ;;  %v240_v25 = vld [vmem:[#allocation5 + $0x160] sm:$0xff]  ;;  %4382 = vmatprep.subr.bf16.mxu0 %v4381_v30  ;;  %v911_v15 = vld [vmem:[#allocation8 + $0x3e8] sm:$0xff] }
 0x14f   :  { %v4219_v33 = vpack.c.bf16 %v240_v25, %v232_v24  ;;  %v4397_v16 = vpack.c.bf16 %v911_v15, %v907_v14  ;;  %v329_v24 = vld [vmem:[#allocation5 + $0x428] sm:$0xff]  ;;  %v211_v14 = vld [vmem:[#allocation5 + $0x78] sm:$0xff] }
 0x150   :  { %v337_v25 = vld [vmem:[#allocation5 + $0x468] sm:$0xff] }
 0x151   :  { %4200 = vmatpush1.bf16.msra.mxu1 %v4199_v35  ;;  %v4221_v35 = vpack.c.bf16 %v257_v27, %v249_v26  ;;  %4384 = vmatpush1.bf16.msra.mxu0 %v4383_v34  ;;  %v915_v26 = vld [vmem:[#allocation8 + $0x408] sm:$0xff]  ;;  %v4241_v30 = vpack.c.bf16 %v337_v25, %v329_v24  ;;  %v353_v34 = vld [vmem:[#allocation5 + $0x4e8] sm:$0xff]  ;;  %v235_v25 = vld [vmem:[#allocation5 + $0x138] sm:$0xff] }
 0x152   :  { %4202 = vmatprep.subr.bf16.mxu1 %v4201_v37  ;;  %v256_v37 = vld [vmem:[#allocation5 + $0x1e0] sm:$0xff]  ;;  %4386 = vmatprep.subr.bf16.mxu0 %v4385_v44  ;;  %v919_v27 = vld [vmem:[#allocation8 + $0x428] sm:$0xff] }
 0x153   :  { %v4223_v47 = vpack.c.bf16 %v256_v37, %v248_v36  ;;  %v4401_v29 = vpack.c.bf16 %v919_v27, %v915_v26  ;;  %v344_v37 = vld [vmem:[#allocation5 + $0x4a0] sm:$0xff]  ;;  %v226_v24 = vld [vmem:[#allocation5 + $0xf0] sm:$0xff]  ;;  %v243_v26 = vld [vmem:[#allocation5 + $0x178] sm:$0xff] }
 0x155   :  { %4204 = vmatpush1.bf16.msra.mxu1 %v4203_v49  ;;  %v4225_v49 = vpack.c.bf16 %v273_v39, %v265_v38  ;;  %4388 = vmatpush1.bf16.msra.mxu0 %v4387_v48  ;;  %v352_v38 = vld [vmem:[#allocation5 + $0x4e0] sm:$0xff]  ;;  %v361_v39 = vld [vmem:[#allocation5 + $0x528] sm:$0xff] }
 0x156   :  { %4206 = vmatprep.subr.bf16.mxu1 %v4205_v51  ;;  %v272_v51 = vld [vmem:[#allocation5 + $0x260] sm:$0xff]  ;;  %4390 = vmatprep.subr.bf16.mxu0 %v4389_v56  ;;  %v4247_v43 = vpack.c.bf16 %v352_v38, %v344_v37  ;;  %v4249_v44 = vpack.c.bf16 %v369_v42, %v361_v39  ;;  %v385_v48 = vld [vmem:[#allocation5 + $0x5e8] sm:$0xff]  ;;  %v267_v37 = vld [vmem:[#allocation5 + $0x238] sm:$0xff] }
 0x157   :  { %v4227_v59 = vpack.c.bf16 %v272_v51, %v264_v50  ;;  %v376_v51 = vld [vmem:[#allocation5 + $0x5a0] sm:$0xff]  ;;  %v275_v38 = vld [vmem:[#allocation5 + $0x278] sm:$0xff]  ;;  %v266_v42 = vld [vmem:[#allocation5 + $0x230] sm:$0xff] }
 0x158   :  { %v4289_v39 = vpack.c.bf16 %v275_v38, %v267_v37  ;;  %v426_v37 = vld [vmem:[#allocation5 + $0x730] sm:$0xff] }
 0x159   :  { %4208 = vmatpush1.bf16.msra.mxu1 %v4207_v61  ;;  %v4229_v61 = vpack.c.bf16 %v289_v53, %v281_v52  ;;  %4392 = vmatpush1.bf16.msra.mxu0 %v4391_v60  ;;  %v384_v52 = vld [vmem:[#allocation5 + $0x5e0] sm:$0xff]  ;;  %v393_v53 = vld [vmem:[#allocation5 + $0x628] sm:$0xff]  ;;  %v434_v38 = vld [vmem:[#allocation5 + $0x770] sm:$0xff] }
 0x15a   :  { %4210 = vmatprep.subr.bf16.mxu1 %v4209_v63  ;;  %v288_v63 = vld [vmem:[#allocation5 + $0x2e0] sm:$0xff]  ;;  %4394 = vmatprep.subr.bf16.mxu0 %v4393_v4  ;;  %v4255_v55 = vpack.c.bf16 %v384_v52, %v376_v51  ;;  %v4257_v56 = vpack.c.bf16 %v401_v54, %v393_v53  ;;  %v417_v60 = vld [vmem:[#allocation5 + $0x6e8] sm:$0xff]  ;;  %v298_v53 = vld [vmem:[#allocation5 + $0x330] sm:$0xff] }
 0x15b   :  { %v4231_v7 = vpack.c.bf16 %v288_v63, %v280_v62  ;;  %v408_v63 = vld [vmem:[#allocation5 + $0x6a0] sm:$0xff]  ;;  %v306_v54 = vld [vmem:[#allocation5 + $0x370] sm:$0xff] }
 0x15c   :  { %630 = vmatmul.mubr.f32.vlgmr.msra.gmra.mrb[2].mxu1 %v6325_v40 }
 0x15d   :  { %4212 = vmatpush1.bf16.msra.mxu1 %v4211_v9  ;;  %700 = vmatprep.mubr.f32.mxu1 %v6322_v41  ;;  %v4233_v9 = vpack.c.bf16 %v305_v1, %v297_v0  ;;  %v416_v0 = vld [vmem:[#allocation5 + $0x6e0] sm:$0xff]  ;;  %v425_v1 = vld [vmem:[#allocation5 + $0x728] sm:$0xff] }
 0x15e   :  { %4214 = vmatprep.subr.bf16.mxu1 %v4213_v11  ;;  %v304_v11 = vld [vmem:[#allocation5 + $0x360] sm:$0xff]  ;;  %4396 = vmatpush1.bf16.msra.mxu0 %v4395_v8  ;;  %v4263_v3 = vpack.c.bf16 %v416_v0, %v408_v63  ;;  %v4265_v4 = vpack.c.bf16 %v433_v2, %v425_v1  ;;  %v449_v8 = vld [vmem:[#allocation5 + $0x7e8] sm:$0xff]  ;;  %v330_v1 = vld [vmem:[#allocation5 + $0x430] sm:$0xff] }
 0x15f   :  { %v4235_v19 = vpack.c.bf16 %v304_v11, %v296_v10  ;;  %4398 = vmatprep.subr.bf16.mxu0 %v4397_v16  ;;  %v440_v11 = vld [vmem:[#allocation5 + $0x7a0] sm:$0xff]  ;;  %v338_v2 = vld [vmem:[#allocation5 + $0x470] sm:$0xff] }
 0x161   :  { %4216 = vmatpush1.bf16.msra.mxu1 %v4215_v21  ;;  %v4237_v21 = vpack.c.bf16 %v321_v13, %v313_v12  ;;  %v448_v12 = vld [vmem:[#allocation5 + $0x7e0] sm:$0xff]  ;;  %v203_v13 = vld [vmem:[#allocation5 + $0x38] sm:$0xff] }
 0x162   :  { %4218 = vmatprep.subr.bf16.mxu1 %v4217_v23  ;;  %v320_v23 = vld [vmem:[#allocation5 + $0x3e0] sm:$0xff]  ;;  %4400 = vmatpush1.bf16.msra.mxu0 %v4399_v20  ;;  %v4271_v15 = vpack.c.bf16 %v448_v12, %v440_v11  ;;  %v4273_v16 = vpack.c.bf16 %v211_v14, %v203_v13  ;;  %v227_v20 = vld [vmem:[#allocation5 + $0xf8] sm:$0xff]  ;;  %v362_v13 = vld [vmem:[#allocation5 + $0x530] sm:$0xff] }
 0x163   :  { %v4239_v28 = vpack.c.bf16 %v320_v23, %v312_v22  ;;  %4402 = vmatprep.subr.bf16.mxu0 %v4401_v29  ;;  %v218_v23 = vld [vmem:[#allocation5 + $0xb0] sm:$0xff] }
 0x164   :  { %v4279_v27 = vpack.c.bf16 %v226_v24, %v218_v23  ;;  %v234_v29 = vld [vmem:[#allocation5 + $0x130] sm:$0xff] }
 0x165   :  { %4220 = vmatpush1.bf16.msra.mxu1 %v4219_v33  ;;  %v345_v33 = vld [vmem:[#allocation5 + $0x4a8] sm:$0xff]  ;;  %v370_v14 = vld [vmem:[#allocation5 + $0x570] sm:$0xff] }
 0x166   :  { %4222 = vmatprep.subr.bf16.mxu1 %v4221_v35  ;;  %v4243_v35 = vpack.c.bf16 %v336_v32, %v328_v31  ;;  %v4245_v36 = vpack.c.bf16 %v353_v34, %v345_v33  ;;  %v251_v31 = vld [vmem:[#allocation5 + $0x1b8] sm:$0xff] }
 0x167   :  { %v259_v32 = vld [vmem:[#allocation5 + $0x1f8] sm:$0xff] }
 0x168   :  { %v4285_v34 = vpack.c.bf16 %v259_v32, %v251_v31  ;;  %v410_v31 = vld [vmem:[#allocation5 + $0x6b0] sm:$0xff] }
 0x169   :  { %4224 = vmatpush1.bf16.msra.mxu1 %v4223_v47  ;;  %v377_v47 = vld [vmem:[#allocation5 + $0x5a8] sm:$0xff]  ;;  %v418_v32 = vld [vmem:[#allocation5 + $0x6f0] sm:$0xff] }
 0x16a   :  { %4226 = vmatprep.subr.bf16.mxu1 %v4225_v49  ;;  %v4251_v49 = vpack.c.bf16 %v368_v46, %v360_v45  ;;  %v4253_v50 = vpack.c.bf16 %v385_v48, %v377_v47  ;;  %v282_v47 = vld [vmem:[#allocation5 + $0x2b0] sm:$0xff] }
 0x16b   :  { %v290_v48 = vld [vmem:[#allocation5 + $0x2f0] sm:$0xff] }
 0x16c   :  { %v4295_v51 = vpack.c.bf16 %v290_v48, %v282_v47 }
 0x16d   :  { %4228 = vmatpush1.bf16.msra.mxu1 %v4227_v59  ;;  %v409_v59 = vld [vmem:[#allocation5 + $0x6a8] sm:$0xff] }
 0x16e   :  { %4230 = vmatprep.subr.bf16.mxu1 %v4229_v61  ;;  %v4259_v61 = vpack.c.bf16 %v400_v58, %v392_v57  ;;  %v4261_v62 = vpack.c.bf16 %v417_v60, %v409_v59  ;;  %v4299_v57 = vpack.c.bf16 %v306_v54, %v298_v53  ;;  %v314_v59 = vld [vmem:[#allocation5 + $0x3b0] sm:$0xff] }
 0x16f   :  { %v322_v60 = vld [vmem:[#allocation5 + $0x3f0] sm:$0xff] }
 0x170   :  { %v4303_v63 = vpack.c.bf16 %v322_v60, %v314_v59  ;;  %v5765_v59 = vld [vmem:[#allocation2] sm:$0xff] }
 0x171   :  { %4232 = vmatpush1.bf16.msra.mxu1 %v4231_v7  ;;  %v441_v7 = vld [vmem:[#allocation5 + $0x7a8] sm:$0xff] }
 0x172   :  { %4234 = vmatprep.subr.bf16.mxu1 %v4233_v9  ;;  %v4267_v9 = vpack.c.bf16 %v432_v6, %v424_v5  ;;  %v4269_v10 = vpack.c.bf16 %v449_v8, %v441_v7  ;;  %v4307_v5 = vpack.c.bf16 %v338_v2, %v330_v1  ;;  %v346_v7 = vld [vmem:[#allocation5 + $0x4b0] sm:$0xff]  ;;  %v817_v1 = vld [vmem:[#allocation8 + $0xf8] sm:$0xff]  ;;  %v454_v2 = vlaneseq }
 0x173   :  { %v354_v8 = vld [vmem:[#allocation5 + $0x4f0] sm:$0xff] }
 0x174   :  { %v4311_v11 = vpack.c.bf16 %v354_v8, %v346_v7  ;;  %v821_v7 = vld [vmem:[#allocation8 + $0x118] sm:$0xff] }
 0x175   :  { %4236 = vmatpush1.bf16.msra.mxu1 %v4235_v19  ;;  %v219_v19 = vld [vmem:[#allocation5 + $0xb8] sm:$0xff]  ;;  %v825_v8 = vld [vmem:[#allocation8 + $0x138] sm:$0xff] }
 0x176   :  { %4238 = vmatprep.subr.bf16.mxu1 %v4237_v21  ;;  %v4275_v21 = vpack.c.bf16 %v210_v18, %v202_v17  ;;  %v4277_v22 = vpack.c.bf16 %v227_v20, %v219_v19  ;;  %v4315_v17 = vpack.c.bf16 %v370_v14, %v362_v13  ;;  %v378_v19 = vld [vmem:[#allocation5 + $0x5b0] sm:$0xff]  ;;  %v824_v13 = vld [vmem:[#allocation8 + $0x130] sm:$0xff]  ;;  %v829_v14 = vld [vmem:[#allocation8 + $0x158] sm:$0xff] }
 0x177   :  { %v386_v20 = vld [vmem:[#allocation5 + $0x5f0] sm:$0xff] }
 0x178   :  { %v4319_v23 = vpack.c.bf16 %v386_v20, %v378_v19 }
 0x179   :  { %4240 = vmatpush1.bf16.msra.mxu1 %v4239_v28  ;;  %v4281_v28 = vpack.c.bf16 %v243_v26, %v235_v25  ;;  %v394_v25 = vld [vmem:[#allocation5 + $0x630] sm:$0xff] }
 0x17a   :  { %4242 = vmatprep.subr.bf16.mxu1 %v4241_v30  ;;  %v242_v30 = vld [vmem:[#allocation5 + $0x170] sm:$0xff] }
 0x17b   :  { %v4283_v33 = vpack.c.bf16 %v242_v30, %v234_v29  ;;  %v402_v26 = vld [vmem:[#allocation5 + $0x670] sm:$0xff] }
 0x17c   :  { %v4323_v29 = vpack.c.bf16 %v402_v26, %v394_v25 }
 0x17d   :  { %4244 = vmatpush1.bf16.msra.mxu1 %v4243_v35  ;;  %v250_v35 = vld [vmem:[#allocation5 + $0x1b0] sm:$0xff] }
 0x17e   :  { %4246 = vmatprep.subr.bf16.mxu1 %v4245_v36  ;;  %v258_v36 = vld [vmem:[#allocation5 + $0x1f0] sm:$0xff] }
 0x181   :  { %4248 = vmatpush1.bf16.msra.mxu1 %v4247_v43  ;;  %v283_v43 = vld [vmem:[#allocation5 + $0x2b8] sm:$0xff] }
 0x182   :  { %4250 = vmatprep.subr.bf16.mxu1 %v4249_v44  ;;  %v291_v44 = vld [vmem:[#allocation5 + $0x2f8] sm:$0xff] }
 0x183   :  { %v4293_v46 = vpack.c.bf16 %v291_v44, %v283_v43  ;;  %v442_v43 = vld [vmem:[#allocation5 + $0x7b0] sm:$0xff] }
 0x184   :  { %v450_v44 = vld [vmem:[#allocation5 + $0x7f0] sm:$0xff] }
 0x185   :  { %4252 = vmatpush1.bf16.msra.mxu1 %v4251_v49  ;;  %v299_v49 = vld [vmem:[#allocation5 + $0x338] sm:$0xff]  ;;  %v4335_v47 = vpack.c.bf16 %v450_v44, %v442_v43 }
 0x186   :  { %4254 = vmatprep.subr.bf16.mxu1 %v4253_v50  ;;  %v307_v50 = vld [vmem:[#allocation5 + $0x378] sm:$0xff] }
 0x187   :  { %v4297_v52 = vpack.c.bf16 %v307_v50, %v299_v49  ;;  %v788_v49 = vld [vmem:[#allocation8 + $0x10] sm:$0xff] }
 0x188   :  { %v792_v50 = vld [vmem:[#allocation8 + $0x30] sm:$0xff] }
 0x189   :  { %4256 = vmatpush1.bf16.msra.mxu1 %v4255_v55  ;;  %v315_v55 = vld [vmem:[#allocation5 + $0x3b8] sm:$0xff]  ;;  %v4595_v53 = vpack.c.bf16 %v792_v50, %v788_v49  ;;  %v857_v49 = vld [vmem:[#allocation8 + $0x238] sm:$0xff] }
 0x18a   :  { %4258 = vmatprep.subr.bf16.mxu1 %v4257_v56  ;;  %v323_v56 = vld [vmem:[#allocation5 + $0x3f8] sm:$0xff] }
 0x18b   :  { %v4301_v58 = vpack.c.bf16 %v323_v56, %v315_v55  ;;  %v796_v55 = vld [vmem:[#allocation8 + $0x50] sm:$0xff] }
 0x18c   :  { %v800_v56 = vld [vmem:[#allocation8 + $0x70] sm:$0xff] }
 0x18d   :  { %4260 = vmatpush1.bf16.msra.mxu1 %v4259_v61  ;;  %v331_v61 = vld [vmem:[#allocation5 + $0x438] sm:$0xff]  ;;  %v4599_v60 = vpack.c.bf16 %v800_v56, %v796_v55  ;;  %v935_v55 = vld [vmem:[#allocation8 + $0x4a8] sm:$0xff] }
 0x18e   :  { %4262 = vmatprep.subr.bf16.mxu1 %v4261_v62  ;;  %v339_v62 = vld [vmem:[#allocation5 + $0x478] sm:$0xff] }
 0x18f   :  { %v4305_v0 = vpack.c.bf16 %v339_v62, %v331_v61  ;;  %v804_v62 = vld [vmem:[#allocation8 + $0x90] sm:$0xff] }
 0x190   :  { %v844_v43 = vld [vmem:[#allocation8 + $0x1d0] sm:$0xff] }
 0x191   :  { %4264 = vmatpush1.bf16.msra.mxu1 %v4263_v3  ;;  %v347_v3 = vld [vmem:[#allocation5 + $0x4b8] sm:$0xff] }
 0x192   :  { %4266 = vmatprep.subr.bf16.mxu1 %v4265_v4  ;;  %v355_v4 = vld [vmem:[#allocation5 + $0x4f8] sm:$0xff] }
 0x193   :  { %v4309_v6 = vpack.c.bf16 %v355_v4, %v347_v3  ;;  %v848_v44 = vld [vmem:[#allocation8 + $0x1f0] sm:$0xff] }
 0x195   :  { %4268 = vmatpush1.bf16.msra.mxu1 %v4267_v9  ;;  %v363_v9 = vld [vmem:[#allocation5 + $0x538] sm:$0xff] }
 0x196   :  { %4270 = vmatprep.subr.bf16.mxu1 %v4269_v10  ;;  %v371_v10 = vld [vmem:[#allocation5 + $0x578] sm:$0xff] }
 0x197   :  { %v4313_v12 = vpack.c.bf16 %v371_v10, %v363_v9  ;;  %v6333_v9 = vshrl.u32 %v454_v2, 7  ;;  %v939_v2 = vld [vmem:[#allocation8 + $0x4c8] sm:$0xff] }
 0x199   :  { %4272 = vmatpush1.bf16.msra.mxu1 %v4271_v15  ;;  %v379_v15 = vld [vmem:[#allocation5 + $0x5b8] sm:$0xff]  ;;  %v6341_v19 = vsub.s32 1, %v6333_v9 }
 0x19a   :  { %4274 = vmatprep.subr.bf16.mxu1 %v4273_v16  ;;  %v387_v16 = vld [vmem:[#allocation5 + $0x5f8] sm:$0xff] }
 0x19b   :  { %v4317_v18 = vpack.c.bf16 %v387_v16, %v379_v15  ;;  %v833_v15 = vld [vmem:[#allocation8 + $0x178] sm:$0xff]  ;;  %v6336_v16 = vsub.s32 0, %v6333_v9 }
 0x19c   :  { %701 = vmatmul.mubr.f32.vlgmr.msra.gmra.mrb[4].mxu1 %v6325_v40  ;;  %v4287_v40 = vpack.c.bf16 %v258_v36, %v250_v35  ;;  %v4327_v35 = vpack.c.bf16 %v418_v32, %v410_v31  ;;  %v4613_v20 = vpack.c.bf16 %v833_v15, %v829_v14  ;;  %v914_v32 = vld [vmem:[#allocation8 + $0x400] sm:$0xff]  ;;  %v947_v15 = vld [vmem:[#allocation8 + $0x508] sm:$0xff] }
 0x19d   :  { %4276 = vmatpush1.bf16.msra.mxu1 %v4275_v21  ;;  %771 = vmatprep.mubr.f32.mxu1 %v6322_v41  ;;  %v274_v41 = vld [vmem:[#allocation5 + $0x270] sm:$0xff]  ;;  %v395_v21 = vld [vmem:[#allocation5 + $0x638] sm:$0xff] }
 0x19e   :  { %4278 = vmatprep.subr.bf16.mxu1 %v4277_v22  ;;  %v4291_v45 = vpack.c.bf16 %v274_v41, %v266_v42  ;;  %v403_v22 = vld [vmem:[#allocation5 + $0x678] sm:$0xff]  ;;  %v4331_v42 = vpack.c.bf16 %v434_v38, %v426_v37  ;;  %v849_v37 = vld [vmem:[#allocation8 + $0x1f8] sm:$0xff] }
 0x19f   :  { %v4321_v24 = vpack.c.bf16 %v403_v22, %v395_v21  ;;  %v828_v21 = vld [vmem:[#allocation8 + $0x150] sm:$0xff] }
 0x1a0   :  { %v832_v22 = vld [vmem:[#allocation8 + $0x170] sm:$0xff] }
 0x1a1   :  { %4280 = vmatpush1.bf16.msra.mxu1 %v4279_v27  ;;  %v411_v27 = vld [vmem:[#allocation5 + $0x6b8] sm:$0xff] }
 0x1a2   :  { %4282 = vmatprep.subr.bf16.mxu1 %v4281_v28  ;;  %v419_v28 = vld [vmem:[#allocation5 + $0x6f8] sm:$0xff] }
 0x1a3   :  { %v4325_v30 = vpack.c.bf16 %v419_v28, %v411_v27  ;;  %v4615_v27 = vpack.c.bf16 %v832_v22, %v828_v21  ;;  %v868_v21 = vld [vmem:[#allocation8 + $0x290] sm:$0xff] }
 0x1a4   :  { %v872_v22 = vld [vmem:[#allocation8 + $0x2b0] sm:$0xff] }
 0x1a5   :  { %4284 = vmatpush1.bf16.msra.mxu1 %v4283_v33  ;;  %v427_v33 = vld [vmem:[#allocation5 + $0x738] sm:$0xff] }
 0x1a6   :  { %4286 = vmatprep.subr.bf16.mxu1 %v4285_v34  ;;  %v435_v34 = vld [vmem:[#allocation5 + $0x778] sm:$0xff] }
 0x1a7   :  { %v4329_v36 = vpack.c.bf16 %v435_v34, %v427_v33 }
 0x1a9   :  { %4288 = vmatpush1.bf16.msra.mxu1 %v4287_v40  ;;  %v443_v40 = vld [vmem:[#allocation5 + $0x7b8] sm:$0xff] }
 0x1aa   :  { %4290 = vmatprep.subr.bf16.mxu1 %v4289_v39  ;;  %v451_v39 = vld [vmem:[#allocation5 + $0x7f8] sm:$0xff] }
 0x1ab   :  { %v4333_v41 = vpack.c.bf16 %v451_v39, %v443_v40  ;;  %v923_v39 = vld [vmem:[#allocation8 + $0x448] sm:$0xff] }
 0x1ad   :  { %4292 = vmatpush1.bf16.msra.mxu1 %v4291_v45  ;;  %v789_v45 = vld [vmem:[#allocation8 + $0x18] sm:$0xff] }
 0x1ae   :  { %4294 = vmatprep.subr.bf16.mxu1 %v4293_v46  ;;  %v793_v46 = vld [vmem:[#allocation8 + $0x38] sm:$0xff] }
 0x1af   :  { %v4593_v48 = vpack.c.bf16 %v793_v46, %v789_v45 }
 0x1b1   :  { %4296 = vmatpush1.bf16.msra.mxu1 %v4295_v51  ;;  %v797_v51 = vld [vmem:[#allocation8 + $0x58] sm:$0xff] }
 0x1b2   :  { %4298 = vmatprep.subr.bf16.mxu1 %v4297_v52  ;;  %v801_v52 = vld [vmem:[#allocation8 + $0x78] sm:$0xff] }
 0x1b3   :  { %v4597_v54 = vpack.c.bf16 %v801_v52, %v797_v51  ;;  %v922_v51 = vld [vmem:[#allocation8 + $0x440] sm:$0xff] }
 0x1b4   :  { %v926_v52 = vld [vmem:[#allocation8 + $0x460] sm:$0xff] }
 0x1b5   :  { %4300 = vmatpush1.bf16.msra.mxu1 %v4299_v57  ;;  %v805_v57 = vld [vmem:[#allocation8 + $0x98] sm:$0xff] }
 0x1b6   :  { %4302 = vmatprep.subr.bf16.mxu1 %v4301_v58  ;;  %v809_v58 = vld [vmem:[#allocation8 + $0xb8] sm:$0xff] }
 0x1b7   :  { %v4601_v61 = vpack.c.bf16 %v809_v58, %v805_v57  ;;  %v852_v57 = vld [vmem:[#allocation8 + $0x210] sm:$0xff] }
 0x1b8   :  { %v856_v58 = vld [vmem:[#allocation8 + $0x230] sm:$0xff] }
 0x1b9   :  { %4304 = vmatpush1.bf16.msra.mxu1 %v4303_v63  ;;  %v808_v63 = vld [vmem:[#allocation8 + $0xb0] sm:$0xff] }
 0x1ba   :  { %4306 = vmatprep.subr.bf16.mxu1 %v4305_v0  ;;  %v813_v0 = vld [vmem:[#allocation8 + $0xd8] sm:$0xff]  ;;  %v4603_v3 = vpack.c.bf16 %v808_v63, %v804_v62  ;;  %v930_v63 = vld [vmem:[#allocation8 + $0x480] sm:$0xff] }
 0x1bb   :  { %v4605_v4 = vpack.c.bf16 %v817_v1, %v813_v0  ;;  %v934_v0 = vld [vmem:[#allocation8 + $0x4a0] sm:$0xff]  ;;  %v4627_v1 = vpack.c.bf16 %v856_v58, %v852_v57  ;;  %v975_v57 = vld [vmem:[#allocation8 + $0x5e8] sm:$0xff] }
 0x1bd   :  { %4308 = vmatpush1.bf16.msra.mxu1 %v4307_v5  ;;  %v812_v5 = vld [vmem:[#allocation8 + $0xd0] sm:$0xff] }
 0x1be   :  { %4310 = vmatprep.subr.bf16.mxu1 %v4309_v6  ;;  %v816_v6 = vld [vmem:[#allocation8 + $0xf0] sm:$0xff] }
 0x1bf   :  { %v4607_v10 = vpack.c.bf16 %v816_v6, %v812_v5  ;;  %v860_v5 = vld [vmem:[#allocation8 + $0x250] sm:$0xff] }
 0x1c0   :  { %v864_v6 = vld [vmem:[#allocation8 + $0x270] sm:$0xff] }
 0x1c1   :  { %4312 = vmatpush1.bf16.msra.mxu1 %v4311_v11  ;;  %v4609_v11 = vpack.c.bf16 %v825_v8, %v821_v7  ;;  %v4411_v7 = vpack.c.bf16 %v934_v0, %v930_v63  ;;  %v869_v8 = vld [vmem:[#allocation8 + $0x298] sm:$0xff]  ;;  %v4631_v14 = vpack.c.bf16 %v864_v6, %v860_v5  ;;  %v983_v5 = vld [vmem:[#allocation8 + $0x628] sm:$0xff] }
 0x1c2   :  { %4314 = vmatprep.subr.bf16.mxu1 %v4313_v12  ;;  %v820_v12 = vld [vmem:[#allocation8 + $0x110] sm:$0xff]  ;;  %v905_v63 = vld [vmem:[#allocation8 + $0x3b8] sm:$0xff] }
 0x1c5   :  { %4316 = vmatpush1.bf16.msra.mxu1 %v4315_v17  ;;  %v4611_v17 = vpack.c.bf16 %v824_v13, %v820_v12  ;;  %v938_v12 = vld [vmem:[#allocation8 + $0x4c0] sm:$0xff] }
 0x1c6   :  { %4318 = vmatprep.subr.bf16.mxu1 %v4317_v18  ;;  %v6338_v18 = vld [vmem:[#allocation7] sm:$0xff]  ;;  %v942_v13 = vld [vmem:[#allocation8 + $0x4e0] sm:$0xff] }
 0x1c7   :  { %v457_v25 = vrot.slane %v6338_v18, %v6336_v16  ;;  %v461_v26 = vrot.slane %v6338_v18, %v6341_v19 }
 0x1c9   :  { %4320 = vmatpush1.bf16.msra.mxu1 %v4319_v23  ;;  %v837_v23 = vld [vmem:[#allocation8 + $0x198] sm:$0xff] }
 0x1ca   :  { %4322 = vmatprep.subr.bf16.mxu1 %v4321_v24  ;;  %v841_v24 = vld [vmem:[#allocation8 + $0x1b8] sm:$0xff] }
 0x1cb   :  { %v4617_v28 = vpack.c.bf16 %v841_v24, %v837_v23  ;;  %v4415_v23 = vpack.c.bf16 %v942_v13, %v938_v12  ;;  %v877_v24 = vld [vmem:[#allocation8 + $0x2d8] sm:$0xff] }
 0x1cc   :  { %v913_v12 = vld [vmem:[#allocation8 + $0x3f8] sm:$0xff] }
 0x1cd   :  { %4324 = vmatpush1.bf16.msra.mxu1 %v4323_v29  ;;  %v836_v29 = vld [vmem:[#allocation8 + $0x190] sm:$0xff] }
 0x1ce   :  { %4326 = vmatprep.subr.bf16.mxu1 %v4325_v30  ;;  %v840_v30 = vld [vmem:[#allocation8 + $0x1b0] sm:$0xff] }
 0x1cf   :  { %v4619_v40 = vpack.c.bf16 %v840_v30, %v836_v29  ;;  %v4635_v29 = vpack.c.bf16 %v872_v22, %v868_v21  ;;  %v955_v30 = vld [vmem:[#allocation8 + $0x548] sm:$0xff] }
 0x1d0   :  { %v991_v21 = vld [vmem:[#allocation8 + $0x668] sm:$0xff] }
 0x1d1   :  { %4328 = vmatpush1.bf16.msra.mxu1 %v4327_v35  ;;  %v918_v35 = vld [vmem:[#allocation8 + $0x420] sm:$0xff] }
 0x1d2   :  { %4330 = vmatprep.subr.bf16.mxu1 %v4329_v36  ;;  %v845_v36 = vld [vmem:[#allocation8 + $0x1d8] sm:$0xff]  ;;  %v4403_v46 = vpack.c.bf16 %v918_v35, %v914_v32  ;;  %v880_v35 = vld [vmem:[#allocation8 + $0x2f0] sm:$0xff] }
 0x1d5   :  { %4332 = vmatpush1.bf16.msra.mxu1 %v4331_v42  ;;  %v927_v42 = vld [vmem:[#allocation8 + $0x468] sm:$0xff] }
 0x1d6   :  { %4334 = vmatprep.subr.bf16.mxu1 %v4333_v41  ;;  %v4405_v50 = vpack.c.bf16 %v927_v42, %v923_v39  ;;  %v954_v39 = vld [vmem:[#allocation8 + $0x540] sm:$0xff] }
 0x1d7   :  { %v958_v42 = vld [vmem:[#allocation8 + $0x560] sm:$0xff] }
 0x1d9   :  { %4336 = vmatpush1.bf16.msra.mxu1 %v4335_v47  ;;  %v4621_v47 = vpack.c.bf16 %v849_v37, %v845_v36  ;;  %v885_v37 = vld [vmem:[#allocation8 + $0x318] sm:$0xff] }
 0x1da   :  { %4594 = vmatprep.subr.bf16.mxu1 %v4593_v48  ;;  %v853_v48 = vld [vmem:[#allocation8 + $0x218] sm:$0xff] }
 0x1db   :  { %v4625_v56 = vpack.c.bf16 %v857_v49, %v853_v48  ;;  %v888_v48 = vld [vmem:[#allocation8 + $0x330] sm:$0xff]  ;;  %v4423_v49 = vpack.c.bf16 %v958_v42, %v954_v39  ;;  %v929_v39 = vld [vmem:[#allocation8 + $0x478] sm:$0xff] }
 0x1dc   :  { %772 = vmatmul.mubr.f32.vlgmr.msra.gmra.mrb[6].mxu1 %v5765_v59  ;;  %v4407_v59 = vpack.c.bf16 %v926_v52, %v922_v51  ;;  %v897_v51 = vld [vmem:[#allocation8 + $0x378] sm:$0xff] }
 0x1dd   :  { %4596 = vmatpush1.bf16.msra.mxu1 %v4595_v53  ;;  %v4623_v53 = vpack.c.bf16 %v848_v44, %v844_v43  ;;  %v963_v44 = vld [vmem:[#allocation8 + $0x588] sm:$0xff] }
 0x1de   :  { %4598 = vmatprep.subr.bf16.mxu1 %v4597_v54  ;;  %v931_v54 = vld [vmem:[#allocation8 + $0x488] sm:$0xff] }
 0x1df   :  { %v4409_v62 = vpack.c.bf16 %v935_v55, %v931_v54  ;;  %v966_v54 = vld [vmem:[#allocation8 + $0x5a0] sm:$0xff] }
 0x1e1   :  { %4600 = vmatpush1.bf16.msra.mxu1 %v4599_v60  ;;  %v861_v60 = vld [vmem:[#allocation8 + $0x258] sm:$0xff] }
 0x1e2   :  { %4602 = vmatprep.subr.bf16.mxu1 %v4601_v61  ;;  %v865_v61 = vld [vmem:[#allocation8 + $0x278] sm:$0xff] }
 0x1e5   :  { %4604 = vmatpush1.bf16.msra.mxu1 %v4603_v3  ;;  %v943_v3 = vld [vmem:[#allocation8 + $0x4e8] sm:$0xff] }
 0x1e6   :  { %4606 = vmatprep.subr.bf16.mxu1 %v4605_v4  ;;  %v4629_v4 = vpack.c.bf16 %v865_v61, %v861_v60  ;;  %v896_v60 = vld [vmem:[#allocation8 + $0x370] sm:$0xff] }
 0x1e9   :  { %4608 = vmatpush1.bf16.msra.mxu1 %v4607_v10  ;;  %v873_v10 = vld [vmem:[#allocation8 + $0x2b8] sm:$0xff] }
 0x1ea   :  { %4610 = vmatprep.subr.bf16.mxu1 %v4609_v11  ;;  %v4413_v11 = vpack.c.bf16 %v943_v3, %v939_v2  ;;  %v974_v2 = vld [vmem:[#allocation8 + $0x5e0] sm:$0xff] }
 0x1ed   :  { %4612 = vmatpush1.bf16.msra.mxu1 %v4611_v17  ;;  %v951_v17 = vld [vmem:[#allocation8 + $0x528] sm:$0xff] }
 0x1ee   :  { %4614 = vmatprep.subr.bf16.mxu1 %v4613_v20  ;;  %v4633_v20 = vpack.c.bf16 %v873_v10, %v869_v8  ;;  %v904_v8 = vld [vmem:[#allocation8 + $0x3b0] sm:$0xff] }
 0x1ef   :  { %v560_v31 = vpop.f32.mrb[0].mxu1 }
 0x1f0   :  { %v6347_v33 = vadd.f32 %v560_v31, %v457_v25  ;;  %v562_v34 = vpop.f32.mrb[1].mxu1  ;;  %v881_v25 = vld [vmem:[#allocation8 + $0x2f8] sm:$0xff]  ;;  %v959_v31 = vld [vmem:[#allocation8 + $0x568] sm:$0xff] }
 0x1f1   :  { %v563_v38 = vadd.f32 %v562_v34, %v461_v26  ;;  %4616 = vmatpush1.bf16.msra.mxu1 %v4615_v27  ;;  %v4417_v26 = vpack.c.bf16 %v951_v17, %v947_v15  ;;  %v946_v27 = vld [vmem:[#allocation8 + $0x500] sm:$0xff]  ;;  %v4637_v32 = vpack.c.bf16 %v881_v25, %v877_v24  ;;  %v876_v34 = vld [vmem:[#allocation8 + $0x2d0] sm:$0xff] }
 0x1f2   :  { %v778_v41 = vmax.f32 %v6347_v33, 0.0  ;;  %4618 = vmatprep.subr.bf16.mxu1 %v4617_v28  ;;  %v950_v28 = vld [vmem:[#allocation8 + $0x520] sm:$0xff]  ;;  %v4639_v43 = vpack.c.bf16 %v880_v35, %v876_v34  ;;  %v912_v24 = vld [vmem:[#allocation8 + $0x3f0] sm:$0xff]  ;;  %v999_v34 = vld [vmem:[#allocation8 + $0x6a8] sm:$0xff] }
 0x1f3   :  { %v779_v45 = vmax.f32 %v563_v38, 0.0  ;;  %v4419_v36 = vpack.c.bf16 %v950_v28, %v946_v27  ;;  %v889_v38 = vld [vmem:[#allocation8 + $0x338] sm:$0xff]  ;;  %v982_v15 = vld [vmem:[#allocation8 + $0x620] sm:$0xff] }
 0x1f4   :  { %v921_v27 = vld [vmem:[#allocation8 + $0x438] sm:$0xff]  ;;  %v1010_v33 = vld [vmem:[#allocation8 + $0x700] sm:$0xff] }
 0x1f5   :  { %1384 = vmatprep.mubr.f32.mxu0 %v779_v45  ;;  %4620 = vmatpush1.bf16.msra.mxu1 %v4619_v40  ;;  %v4421_v40 = vpack.c.bf16 %v959_v31, %v955_v30  ;;  %v990_v30 = vld [vmem:[#allocation8 + $0x660] sm:$0xff] }
 0x1f6   :  { %1668 = vmatprep.mubr.f32.mxu1 %v779_v45  ;;  %1385 = vmatmul.mubr.f32.vlgmr.msra.gmra.mrb[0].mxu0 %v778_v41  ;;  %v967_v45 = vld [vmem:[#allocation8 + $0x5a8] sm:$0xff] }
 0x1f7   :  { %4404 = vmatpush1.bf16.msra.mxu0 %v4403_v46  ;;  %4622 = vmatprep.subr.bf16.mxu1 %v4621_v47  ;;  %v4641_v46 = vpack.c.bf16 %v889_v38, %v885_v37  ;;  %v884_v47 = vld [vmem:[#allocation8 + $0x310] sm:$0xff]  ;;  %v4425_v52 = vpack.c.bf16 %v967_v45, %v963_v44  ;;  %v998_v44 = vld [vmem:[#allocation8 + $0x6a0] sm:$0xff] }
 0x1f8   :  { %4406 = vmatprep.subr.bf16.mxu0 %v4405_v50  ;;  %v893_v50 = vld [vmem:[#allocation8 + $0x358] sm:$0xff]  ;;  %v4643_v55 = vpack.c.bf16 %v888_v48, %v884_v47  ;;  %v920_v37 = vld [vmem:[#allocation8 + $0x430] sm:$0xff]  ;;  %v1007_v47 = vld [vmem:[#allocation8 + $0x6e8] sm:$0xff] }
 0x1f9   :  { %4624 = vmatpush1.bf16.msra.mxu1 %v4623_v53  ;;  %v962_v53 = vld [vmem:[#allocation8 + $0x580] sm:$0xff]  ;;  %v4645_v58 = vpack.c.bf16 %v897_v51, %v893_v50  ;;  %v928_v50 = vld [vmem:[#allocation8 + $0x470] sm:$0xff] }
 0x1fa   :  { %4626 = vmatprep.subr.bf16.mxu1 %v4625_v56  ;;  %v971_v56 = vld [vmem:[#allocation8 + $0x5c8] sm:$0xff]  ;;  %v4427_v61 = vpack.c.bf16 %v966_v54, %v962_v53  ;;  %v937_v53 = vld [vmem:[#allocation8 + $0x4b8] sm:$0xff] }
 0x1fb   :  { %4408 = vmatpush1.bf16.msra.mxu0 %v4407_v59  ;;  %v892_v59 = vld [vmem:[#allocation8 + $0x350] sm:$0xff]  ;;  %v4429_v0 = vpack.c.bf16 %v975_v57, %v971_v56  ;;  %v1006_v56 = vld [vmem:[#allocation8 + $0x6e0] sm:$0xff] }
 0x1fc   :  { %4410 = vmatprep.subr.bf16.mxu0 %v4409_v62  ;;  %v901_v62 = vld [vmem:[#allocation8 + $0x398] sm:$0xff]  ;;  %v4647_v3 = vpack.c.bf16 %v896_v60, %v892_v59  ;;  %v1015_v59 = vld [vmem:[#allocation8 + $0x728] sm:$0xff] }
 0x1fd   :  { %4628 = vmatpush1.bf16.msra.mxu1 %v4627_v1  ;;  %v970_v1 = vld [vmem:[#allocation8 + $0x5c0] sm:$0xff]  ;;  %v4649_v6 = vpack.c.bf16 %v905_v63, %v901_v62  ;;  %v936_v62 = vld [vmem:[#allocation8 + $0x4b0] sm:$0xff] }
 0x1fe   :  { %4630 = vmatprep.subr.bf16.mxu1 %v4629_v4  ;;  %v979_v4 = vld [vmem:[#allocation8 + $0x608] sm:$0xff]  ;;  %v4431_v10 = vpack.c.bf16 %v974_v2, %v970_v1  ;;  %v945_v1 = vld [vmem:[#allocation8 + $0x4f8] sm:$0xff] }
 0x1ff   :  { %4412 = vmatpush1.bf16.msra.mxu0 %v4411_v7  ;;  %v900_v7 = vld [vmem:[#allocation8 + $0x390] sm:$0xff]  ;;  %v4433_v13 = vpack.c.bf16 %v983_v5, %v979_v4  ;;  %v1019_v4 = vld [vmem:[#allocation8 + $0x748] sm:$0xff] }
 0x200   :  { %4414 = vmatprep.subr.bf16.mxu0 %v4413_v11  ;;  %v909_v11 = vld [vmem:[#allocation8 + $0x3d8] sm:$0xff]  ;;  %v4651_v17 = vpack.c.bf16 %v904_v8, %v900_v7  ;;  %v1023_v5 = vld [vmem:[#allocation8 + $0x768] sm:$0xff]  ;;  %v940_v7 = vld [vmem:[#allocation8 + $0x4d0] sm:$0xff] }
 0x201   :  { %4632 = vmatpush1.bf16.msra.mxu1 %v4631_v14  ;;  %v978_v14 = vld [vmem:[#allocation8 + $0x600] sm:$0xff]  ;;  %v4653_v22 = vpack.c.bf16 %v913_v12, %v909_v11  ;;  %v944_v8 = vld [vmem:[#allocation8 + $0x4f0] sm:$0xff]  ;;  %v949_v11 = vld [vmem:[#allocation8 + $0x518] sm:$0xff] }
 0x202   :  { %4634 = vmatprep.subr.bf16.mxu1 %v4633_v20  ;;  %v987_v20 = vld [vmem:[#allocation8 + $0x648] sm:$0xff]  ;;  %v4435_v25 = vpack.c.bf16 %v982_v15, %v978_v14  ;;  %v953_v12 = vld [vmem:[#allocation8 + $0x538] sm:$0xff]  ;;  %v1018_v14 = vld [vmem:[#allocation8 + $0x740] sm:$0xff] }
 0x203   :  { %4416 = vmatpush1.bf16.msra.mxu0 %v4415_v23  ;;  %v908_v23 = vld [vmem:[#allocation8 + $0x3d0] sm:$0xff]  ;;  %v4437_v28 = vpack.c.bf16 %v991_v21, %v987_v20  ;;  %v1022_v15 = vld [vmem:[#allocation8 + $0x760] sm:$0xff]  ;;  %v1027_v20 = vld [vmem:[#allocation8 + $0x788] sm:$0xff] }
 0x204   :  { %4418 = vmatprep.subr.bf16.mxu0 %v4417_v26  ;;  %v917_v26 = vld [vmem:[#allocation8 + $0x418] sm:$0xff]  ;;  %v4655_v31 = vpack.c.bf16 %v912_v24, %v908_v23  ;;  %v1031_v21 = vld [vmem:[#allocation8 + $0x7a8] sm:$0xff]  ;;  %v948_v23 = vld [vmem:[#allocation8 + $0x510] sm:$0xff] }
 0x205   :  { %4636 = vmatpush1.bf16.msra.mxu1 %v4635_v29  ;;  %v986_v29 = vld [vmem:[#allocation8 + $0x640] sm:$0xff]  ;;  %v4657_v35 = vpack.c.bf16 %v921_v27, %v917_v26  ;;  %v952_v24 = vld [vmem:[#allocation8 + $0x530] sm:$0xff]  ;;  %v957_v26 = vld [vmem:[#allocation8 + $0x558] sm:$0xff] }
 0x206   :  { %4638 = vmatprep.subr.bf16.mxu1 %v4637_v32  ;;  %v995_v32 = vld [vmem:[#allocation8 + $0x688] sm:$0xff]  ;;  %v4439_v38 = vpack.c.bf16 %v990_v30, %v986_v29  ;;  %v961_v27 = vld [vmem:[#allocation8 + $0x578] sm:$0xff]  ;;  %v6355_v29 = vsub.s32 2, %v6333_v9  ;;  %v1026_v30 = vld [vmem:[#allocation8 + $0x780] sm:$0xff] }
 0x207   :  { %4420 = vmatpush1.bf16.msra.mxu0 %v4419_v36  ;;  %v916_v36 = vld [vmem:[#allocation8 + $0x410] sm:$0xff]  ;;  %v4441_v42 = vpack.c.bf16 %v999_v34, %v995_v32  ;;  %v4675_v32 = vpack.c.bf16 %v952_v24, %v948_v23  ;;  %v6358_v34 = vsub.s32 3, %v6333_v9  ;;  %v989_v23 = vld [vmem:[#allocation8 + $0x658] sm:$0xff] }
 0x208   :  { %4422 = vmatprep.subr.bf16.mxu0 %v4421_v40  ;;  %v925_v40 = vld [vmem:[#allocation8 + $0x458] sm:$0xff]  ;;  %v4659_v45 = vpack.c.bf16 %v920_v37, %v916_v36  ;;  %v1039_v36 = vld [vmem:[#allocation8 + $0x7e8] sm:$0xff]  ;;  %v4677_v37 = vpack.c.bf16 %v961_v27, %v957_v26  ;;  %v1058_v26 = vld [vmem:[#allocation8 + $0x880] sm:$0xff] }
 0x209   :  { %4640 = vmatpush1.bf16.msra.mxu1 %v4639_v43  ;;  %v994_v43 = vld [vmem:[#allocation8 + $0x680] sm:$0xff]  ;;  %v4661_v48 = vpack.c.bf16 %v929_v39, %v925_v40  ;;  %v960_v40 = vld [vmem:[#allocation8 + $0x570] sm:$0xff]  ;;  %v993_v24 = vld [vmem:[#allocation8 + $0x678] sm:$0xff] }
 0x20a   :  { %4642 = vmatprep.subr.bf16.mxu1 %v4641_v46  ;;  %v1003_v46 = vld [vmem:[#allocation8 + $0x6c8] sm:$0xff]  ;;  %v4443_v51 = vpack.c.bf16 %v998_v44, %v994_v43  ;;  %v969_v43 = vld [vmem:[#allocation8 + $0x5b8] sm:$0xff]  ;;  %v465_v44 = vrot.slane %v6338_v18, %v6355_v29  ;;  %v1062_v27 = vld [vmem:[#allocation8 + $0x8a0] sm:$0xff] }
 0x20b   :  { %4424 = vmatpush1.bf16.msra.mxu0 %v4423_v49  ;;  %v924_v49 = vld [vmem:[#allocation8 + $0x450] sm:$0xff]  ;;  %v4445_v54 = vpack.c.bf16 %v1007_v47, %v1003_v46  ;;  %v1034_v46 = vld [vmem:[#allocation8 + $0x7c0] sm:$0xff] }
 0x20c   :  { %4426 = vmatprep.subr.bf16.mxu0 %v4425_v52  ;;  %v933_v52 = vld [vmem:[#allocation8 + $0x498] sm:$0xff]  ;;  %v4663_v57 = vpack.c.bf16 %v928_v50, %v924_v49  ;;  %v1038_v47 = vld [vmem:[#allocation8 + $0x7e0] sm:$0xff]  ;;  %v1043_v50 = vld [vmem:[#allocation8 + $0x808] sm:$0xff] }
 0x20d   :  { %4644 = vmatpush1.bf16.msra.mxu1 %v4643_v55  ;;  %v1002_v55 = vld [vmem:[#allocation8 + $0x6c0] sm:$0xff]  ;;  %v4665_v60 = vpack.c.bf16 %v937_v53, %v933_v52  ;;  %v964_v53 = vld [vmem:[#allocation8 + $0x590] sm:$0xff] }
 0x20e   :  { %4646 = vmatprep.subr.bf16.mxu1 %v4645_v58  ;;  %v1011_v58 = vld [vmem:[#allocation8 + $0x708] sm:$0xff]  ;;  %v4447_v63 = vpack.c.bf16 %v1006_v56, %v1002_v55  ;;  %v4463_v56 = vpack.c.bf16 %v1038_v47, %v1034_v46 }
 0x20f   :  { %4428 = vmatpush1.bf16.msra.mxu0 %v4427_v61  ;;  %v932_v61 = vld [vmem:[#allocation8 + $0x490] sm:$0xff]  ;;  %v4449_v2 = vpack.c.bf16 %v1015_v59, %v1011_v58  ;;  %v1079_v46 = vld [vmem:[#allocation8 + $0x928] sm:$0xff] }
 0x210   :  { %4430 = vmatprep.subr.bf16.mxu0 %v4429_v0  ;;  %v941_v0 = vld [vmem:[#allocation8 + $0x4d8] sm:$0xff] }
 0x211   :  { %4648 = vmatpush1.bf16.msra.mxu1 %v4647_v3  ;;  %v4667_v3 = vpack.c.bf16 %v936_v62, %v932_v61  ;;  %v1046_v61 = vld [vmem:[#allocation8 + $0x820] sm:$0xff]  ;;  %v973_v62 = vld [vmem:[#allocation8 + $0x5d8] sm:$0xff] }
 0x212   :  { %4650 = vmatprep.subr.bf16.mxu1 %v4649_v6  ;;  %v4669_v6 = vpack.c.bf16 %v945_v1, %v941_v0  ;;  %v1051_v1 = vld [vmem:[#allocation8 + $0x848] sm:$0xff] }
 0x213   :  { %4432 = vmatpush1.bf16.msra.mxu0 %v4431_v10 }
 0x214   :  { %4434 = vmatprep.subr.bf16.mxu0 %v4433_v13  ;;  %v4453_v13 = vpack.c.bf16 %v1023_v5, %v1019_v4 }
 0x215   :  { %4652 = vmatpush1.bf16.msra.mxu1 %v4651_v17  ;;  %v4671_v17 = vpack.c.bf16 %v944_v8, %v940_v7  ;;  %v981_v7 = vld [vmem:[#allocation8 + $0x618] sm:$0xff] }
 0x216   :  { %4654 = vmatprep.subr.bf16.mxu1 %v4653_v22  ;;  %v4673_v22 = vpack.c.bf16 %v953_v12, %v949_v11  ;;  %v985_v8 = vld [vmem:[#allocation8 + $0x638] sm:$0xff]  ;;  %v1050_v11 = vld [vmem:[#allocation8 + $0x840] sm:$0xff] }
 0x217   :  { %4436 = vmatpush1.bf16.msra.mxu0 %v4435_v25  ;;  %v4455_v25 = vpack.c.bf16 %v1022_v15, %v1018_v14  ;;  %v1054_v12 = vld [vmem:[#allocation8 + $0x860] sm:$0xff]  ;;  %v1059_v14 = vld [vmem:[#allocation8 + $0x888] sm:$0xff] }
 0x218   :  { %4438 = vmatprep.subr.bf16.mxu0 %v4437_v28  ;;  %v4457_v28 = vpack.c.bf16 %v1031_v21, %v1027_v20  ;;  %v1063_v15 = vld [vmem:[#allocation8 + $0x8a8] sm:$0xff]  ;;  %v980_v20 = vld [vmem:[#allocation8 + $0x610] sm:$0xff] }
 0x219   :  { %4656 = vmatpush1.bf16.msra.mxu1 %v4655_v31  ;;  %v1030_v31 = vld [vmem:[#allocation8 + $0x7a0] sm:$0xff]  ;;  %v984_v21 = vld [vmem:[#allocation8 + $0x630] sm:$0xff] }
 0x21a   :  { %4658 = vmatprep.subr.bf16.mxu1 %v4657_v35  ;;  %v1035_v35 = vld [vmem:[#allocation8 + $0x7c8] sm:$0xff]  ;;  %v4459_v39 = vpack.c.bf16 %v1030_v31, %v1026_v30 }
 0x21b   :  { %4440 = vmatpush1.bf16.msra.mxu0 %v4439_v38  ;;  %v956_v38 = vld [vmem:[#allocation8 + $0x550] sm:$0xff]  ;;  %v1067_v30 = vld [vmem:[#allocation8 + $0x8c8] sm:$0xff] }
 0x21c   :  { %1669 = vmatmul.mubr.f32.vlgmr.msra.gmra.mrb[8].mxu1 %v778_v41  ;;  %4442 = vmatprep.subr.bf16.mxu0 %v4441_v42  ;;  %v1014_v41 = vld [vmem:[#allocation8 + $0x720] sm:$0xff]  ;;  %v965_v42 = vld [vmem:[#allocation8 + $0x598] sm:$0xff]  ;;  %v4679_v49 = vpack.c.bf16 %v960_v40, %v956_v38  ;;  %v1071_v31 = vld [vmem:[#allocation8 + $0x8e8] sm:$0xff] }
 0x21d   :  { %4660 = vmatpush1.bf16.msra.mxu1 %v4659_v45  ;;  %v4451_v10 = vpack.c.bf16 %v1014_v41, %v1010_v33  ;;  %v4461_v45 = vpack.c.bf16 %v1039_v36, %v1035_v35  ;;  %v4681_v52 = vpack.c.bf16 %v969_v43, %v965_v42  ;;  %v972_v41 = vld [vmem:[#allocation8 + $0x5d0] sm:$0xff]  ;;  %v997_v38 = vld [vmem:[#allocation8 + $0x698] sm:$0xff]  ;;  %v1066_v42 = vld [vmem:[#allocation8 + $0x8c0] sm:$0xff] }
 0x21e   :  { %4662 = vmatprep.subr.bf16.mxu1 %v4661_v48  ;;  %v469_v48 = vrot.slane %v6338_v18, %v6358_v34  ;;  %v988_v35 = vld [vmem:[#allocation8 + $0x650] sm:$0xff]  ;;  %v1001_v40 = vld [vmem:[#allocation8 + $0x6b8] sm:$0xff]  ;;  %v1070_v43 = vld [vmem:[#allocation8 + $0x8e0] sm:$0xff] }
 0x21f   :  { %4444 = vmatpush1.bf16.msra.mxu0 %v4443_v51  ;;  %v1047_v51 = vld [vmem:[#allocation8 + $0x828] sm:$0xff]  ;;  %v992_v36 = vld [vmem:[#allocation8 + $0x670] sm:$0xff]  ;;  %v4697_v47 = vpack.c.bf16 %v1001_v40, %v997_v38 }
 0x220   :  { %4446 = vmatprep.subr.bf16.mxu0 %v4445_v54  ;;  %v968_v54 = vld [vmem:[#allocation8 + $0x5b0] sm:$0xff] }
 0x221   :  { %4664 = vmatpush1.bf16.msra.mxu1 %v4663_v57  ;;  %v1042_v57 = vld [vmem:[#allocation8 + $0x800] sm:$0xff]  ;;  %v4683_v0 = vpack.c.bf16 %v968_v54, %v964_v53  ;;  %v1028_v38 = vld [vmem:[#allocation8 + $0x790] sm:$0xff] }
 0x222   :  { %4666 = vmatprep.subr.bf16.mxu1 %v4665_v60  ;;  %v4465_v60 = vpack.c.bf16 %v1047_v51, %v1043_v50  ;;  %v4467_v5 = vpack.c.bf16 %v1046_v61, %v1042_v57  ;;  %v4479_v50 = vpack.c.bf16 %v1070_v43, %v1066_v42  ;;  %v1005_v51 = vld [vmem:[#allocation8 + $0x6d8] sm:$0xff]  ;;  %v1074_v54 = vld [vmem:[#allocation8 + $0x900] sm:$0xff]  ;;  %v1083_v57 = vld [vmem:[#allocation8 + $0x948] sm:$0xff] }
 0x223   :  { %4448 = vmatpush1.bf16.msra.mxu0 %v4447_v63  ;;  %v977_v63 = vld [vmem:[#allocation8 + $0x5f8] sm:$0xff]  ;;  %v1004_v61 = vld [vmem:[#allocation8 + $0x6d0] sm:$0xff] }
 0x224   :  { %4450 = vmatprep.subr.bf16.mxu0 %v4449_v2  ;;  %v1055_v2 = vld [vmem:[#allocation8 + $0x868] sm:$0xff]  ;;  %v1032_v40 = vld [vmem:[#allocation8 + $0x7b0] sm:$0xff]  ;;  %v1037_v42 = vld [vmem:[#allocation8 + $0x7d8] sm:$0xff] }
 0x225   :  { %4668 = vmatpush1.bf16.msra.mxu1 %v4667_v3  ;;  %v976_v3 = vld [vmem:[#allocation8 + $0x5f0] sm:$0xff]  ;;  %v1041_v43 = vld [vmem:[#allocation8 + $0x7f8] sm:$0xff] }
 0x226   :  { %4670 = vmatprep.subr.bf16.mxu1 %v4669_v6  ;;  %v4685_v6 = vpack.c.bf16 %v977_v63, %v973_v62  ;;  %v1008_v62 = vld [vmem:[#allocation8 + $0x6f0] sm:$0xff] }
 0x227   :  { %4452 = vmatpush1.bf16.msra.mxu0 %v4451_v10  ;;  %v4469_v10 = vpack.c.bf16 %v1055_v2, %v1051_v1  ;;  %v1082_v2 = vld [vmem:[#allocation8 + $0x940] sm:$0xff] }
 0x228   :  { %4454 = vmatprep.subr.bf16.mxu0 %v4453_v13  ;;  %v4687_v13 = vpack.c.bf16 %v976_v3, %v972_v41  ;;  %v1086_v41 = vld [vmem:[#allocation8 + $0x960] sm:$0xff]  ;;  %v4703_v3 = vpack.c.bf16 %v1008_v62, %v1004_v61  ;;  %v1123_v61 = vld [vmem:[#allocation8 + $0xa88] sm:$0xff] }
 0x229   :  { %4672 = vmatpush1.bf16.msra.mxu1 %v4671_v17  ;;  %v4689_v17 = vpack.c.bf16 %v985_v8, %v981_v7  ;;  %v1012_v7 = vld [vmem:[#allocation8 + $0x710] sm:$0xff]  ;;  %v1127_v62 = vld [vmem:[#allocation8 + $0xaa8] sm:$0xff] }
 0x22a   :  { %4674 = vmatprep.subr.bf16.mxu1 %v4673_v22  ;;  %v4471_v22 = vpack.c.bf16 %v1054_v12, %v1050_v11  ;;  %v1016_v8 = vld [vmem:[#allocation8 + $0x730] sm:$0xff]  ;;  %v1021_v11 = vld [vmem:[#allocation8 + $0x758] sm:$0xff] }
 0x22b   :  { %4456 = vmatpush1.bf16.msra.mxu0 %v4455_v25  ;;  %v4473_v25 = vpack.c.bf16 %v1063_v15, %v1059_v14  ;;  %v1025_v12 = vld [vmem:[#allocation8 + $0x778] sm:$0xff]  ;;  %v1090_v14 = vld [vmem:[#allocation8 + $0x980] sm:$0xff] }
 0x22c   :  { %4458 = vmatprep.subr.bf16.mxu0 %v4457_v28  ;;  %v4691_v28 = vpack.c.bf16 %v984_v21, %v980_v20  ;;  %v1094_v15 = vld [vmem:[#allocation8 + $0x9a0] sm:$0xff]  ;;  %v1099_v20 = vld [vmem:[#allocation8 + $0x9c8] sm:$0xff] }
 0x22d   :  { %4676 = vmatpush1.bf16.msra.mxu1 %v4675_v32  ;;  %v4693_v32 = vpack.c.bf16 %v993_v24, %v989_v23  ;;  %v1103_v21 = vld [vmem:[#allocation8 + $0x9e8] sm:$0xff]  ;;  %v1020_v23 = vld [vmem:[#allocation8 + $0x750] sm:$0xff] }
 0x22e   :  { %4678 = vmatprep.subr.bf16.mxu1 %v4677_v37  ;;  %v4475_v37 = vpack.c.bf16 %v1062_v27, %v1058_v26  ;;  %v1024_v24 = vld [vmem:[#allocation8 + $0x770] sm:$0xff]  ;;  %v1029_v26 = vld [vmem:[#allocation8 + $0x798] sm:$0xff] }
 0x22f   :  { %v631_v55 = vpop.f32.mrb[2].mxu1  ;;  %4460 = vmatpush1.bf16.msra.mxu0 %v4459_v39  ;;  %v4477_v39 = vpack.c.bf16 %v1071_v31, %v1067_v30  ;;  %v1033_v27 = vld [vmem:[#allocation8 + $0x7b8] sm:$0xff]  ;;  %v1098_v30 = vld [vmem:[#allocation8 + $0x9c0] sm:$0xff] }
 0x230   :  { %v6364_v58 = vadd.f32 %v631_v55, %v465_v44  ;;  %v633_v59 = vpop.f32.mrb[3].mxu1  ;;  %4462 = vmatprep.subr.bf16.mxu0 %v4461_v45  ;;  %v4695_v44 = vpack.c.bf16 %v992_v36, %v988_v35  ;;  %v1075_v45 = vld [vmem:[#allocation8 + $0x908] sm:$0xff]  ;;  %v1078_v55 = vld [vmem:[#allocation8 + $0x920] sm:$0xff] }
 0x231   :  { %v634_v18 = vadd.f32 %v633_v59, %v469_v48  ;;  %4680 = vmatpush1.bf16.msra.mxu1 %v4679_v49  ;;  %v996_v48 = vld [vmem:[#allocation8 + $0x690] sm:$0xff]  ;;  %v4481_v53 = vpack.c.bf16 %v1079_v46, %v1075_v45  ;;  %v1087_v59 = vld [vmem:[#allocation8 + $0x968] sm:$0xff]  ;;  %v4483_v63 = vpack.c.bf16 %v1078_v55, %v1074_v54  ;;  %v1102_v31 = vld [vmem:[#allocation8 + $0x9e0] sm:$0xff] }
 0x232   :  { %v780_v33 = vmax.f32 %v6364_v58, 0.0  ;;  %4682 = vmatprep.subr.bf16.mxu1 %v4681_v52  ;;  %v1000_v49 = vld [vmem:[#allocation8 + $0x6b0] sm:$0xff]  ;;  %v1009_v52 = vld [vmem:[#allocation8 + $0x6f8] sm:$0xff]  ;;  %v4485_v1 = vpack.c.bf16 %v1087_v59, %v1083_v57  ;;  %v1107_v35 = vld [vmem:[#allocation8 + $0xa08] sm:$0xff] }
 0x233   :  { %v781_v4 = vmax.f32 %v634_v18, 0.0  ;;  %4464 = vmatpush1.bf16.msra.mxu0 %v4463_v56  ;;  %v4699_v56 = vpack.c.bf16 %v1000_v49, %v996_v48  ;;  %v1013_v18 = vld [vmem:[#allocation8 + $0x718] sm:$0xff]  ;;  %v1111_v36 = vld [vmem:[#allocation8 + $0xa28] sm:$0xff]  ;;  %v1106_v45 = vld [vmem:[#allocation8 + $0xa00] sm:$0xff] }
 0x234   :  { %4466 = vmatprep.subr.bf16.mxu0 %v4465_v60  ;;  %v4701_v60 = vpack.c.bf16 %v1009_v52, %v1005_v51  ;;  %v1110_v46 = vld [vmem:[#allocation8 + $0xa20] sm:$0xff]  ;;  %v1115_v48 = vld [vmem:[#allocation8 + $0xa48] sm:$0xff]  ;;  %v1036_v51 = vld [vmem:[#allocation8 + $0x7d0] sm:$0xff] }
 0x235   :  { %1455 = vmatprep.mubr.f32.mxu0 %v781_v4  ;;  %4684 = vmatpush1.bf16.msra.mxu1 %v4683_v0  ;;  %v1017_v0 = vld [vmem:[#allocation8 + $0x738] sm:$0xff]  ;;  %v1119_v49 = vld [vmem:[#allocation8 + $0xa68] sm:$0xff]  ;;  %v1040_v52 = vld [vmem:[#allocation8 + $0x7f0] sm:$0xff] }
 0x236   :  { %1739 = vmatprep.mubr.f32.mxu1 %v781_v4  ;;  %1456 = vmatmul.mubr.f32.vlgmr.msra.gmra.mrb[0].mxu0 %v780_v33  ;;  %v1091_v4 = vld [vmem:[#allocation8 + $0x988] sm:$0xff]  ;;  %v1045_v54 = vld [vmem:[#allocation8 + $0x818] sm:$0xff]  ;;  %v1114_v57 = vld [vmem:[#allocation8 + $0xa40] sm:$0xff] }
 0x237   :  { %4468 = vmatpush1.bf16.msra.mxu0 %v4467_v5  ;;  %4686 = vmatprep.subr.bf16.mxu1 %v4685_v6  ;;  %v1095_v5 = vld [vmem:[#allocation8 + $0x9a8] sm:$0xff]  ;;  %v4705_v6 = vpack.c.bf16 %v1017_v0, %v1013_v18  ;;  %v1049_v55 = vld [vmem:[#allocation8 + $0x838] sm:$0xff]  ;;  %v1118_v59 = vld [vmem:[#allocation8 + $0xa60] sm:$0xff] }
 0x238   :  { %4470 = vmatprep.subr.bf16.mxu0 %v4469_v10  ;;  %v4487_v10 = vpack.c.bf16 %v1086_v41, %v1082_v2  ;;  %v1044_v18 = vld [vmem:[#allocation8 + $0x810] sm:$0xff]  ;;  %v1053_v2 = vld [vmem:[#allocation8 + $0x858] sm:$0xff]  ;;  %v1138_v58 = vld [vmem:[#allocation8 + $0xb00] sm:$0xff] }
 0x239   :  { %4688 = vmatpush1.bf16.msra.mxu1 %v4687_v13  ;;  %v4489_v13 = vpack.c.bf16 %v1095_v5, %v1091_v4  ;;  %v1048_v0 = vld [vmem:[#allocation8 + $0x830] sm:$0xff]  ;;  %v1057_v41 = vld [vmem:[#allocation8 + $0x878] sm:$0xff]  ;;  %v1122_v4 = vld [vmem:[#allocation8 + $0xa80] sm:$0xff] }
 0x23a   :  { %4690 = vmatprep.subr.bf16.mxu1 %v4689_v17  ;;  %v4707_v17 = vpack.c.bf16 %v1016_v8, %v1012_v7  ;;  %v1126_v5 = vld [vmem:[#allocation8 + $0xaa0] sm:$0xff]  ;;  %v1131_v7 = vld [vmem:[#allocation8 + $0xac8] sm:$0xff] }
 0x23b   :  { %4472 = vmatpush1.bf16.msra.mxu0 %v4471_v22  ;;  %v4709_v22 = vpack.c.bf16 %v1025_v12, %v1021_v11  ;;  %v1135_v8 = vld [vmem:[#allocation8 + $0xae8] sm:$0xff]  ;;  %v1052_v11 = vld [vmem:[#allocation8 + $0x850] sm:$0xff] }
 0x23c   :  { %4474 = vmatprep.subr.bf16.mxu0 %v4473_v25  ;;  %v4491_v25 = vpack.c.bf16 %v1094_v15, %v1090_v14  ;;  %v1056_v12 = vld [vmem:[#allocation8 + $0x870] sm:$0xff]  ;;  %v1061_v14 = vld [vmem:[#allocation8 + $0x898] sm:$0xff] }
 0x23d   :  { %4692 = vmatpush1.bf16.msra.mxu1 %v4691_v28  ;;  %v4493_v28 = vpack.c.bf16 %v1103_v21, %v1099_v20  ;;  %v1065_v15 = vld [vmem:[#allocation8 + $0x8b8] sm:$0xff]  ;;  %v1130_v20 = vld [vmem:[#allocation8 + $0xac0] sm:$0xff] }
 0x23e   :  { %4694 = vmatprep.subr.bf16.mxu1 %v4693_v32  ;;  %v4711_v32 = vpack.c.bf16 %v1024_v24, %v1020_v23  ;;  %v1134_v21 = vld [vmem:[#allocation8 + $0xae0] sm:$0xff]  ;;  %v1139_v23 = vld [vmem:[#allocation8 + $0xb08] sm:$0xff] }
 0x23f   :  { %4476 = vmatpush1.bf16.msra.mxu0 %v4475_v37  ;;  %v4713_v37 = vpack.c.bf16 %v1033_v27, %v1029_v26  ;;  %v1143_v24 = vld [vmem:[#allocation8 + $0xb28] sm:$0xff]  ;;  %v1060_v26 = vld [vmem:[#allocation8 + $0x890] sm:$0xff] }
 0x240   :  { %4478 = vmatprep.subr.bf16.mxu0 %v4477_v39  ;;  %v4495_v39 = vpack.c.bf16 %v1102_v31, %v1098_v30  ;;  %v1064_v27 = vld [vmem:[#allocation8 + $0x8b0] sm:$0xff]  ;;  %v1069_v30 = vld [vmem:[#allocation8 + $0x8d8] sm:$0xff] }
 0x241   :  { %4696 = vmatpush1.bf16.msra.mxu1 %v4695_v44  ;;  %v4497_v44 = vpack.c.bf16 %v1111_v36, %v1107_v35  ;;  %v1073_v31 = vld [vmem:[#allocation8 + $0x8f8] sm:$0xff]  ;;  %v4731_v35 = vpack.c.bf16 %v1064_v27, %v1060_v26  ;;  %v1147_v36 = vld [vmem:[#allocation8 + $0xb48] sm:$0xff] }
 0x242   :  { %4698 = vmatprep.subr.bf16.mxu1 %v4697_v47  ;;  %v4715_v47 = vpack.c.bf16 %v1032_v40, %v1028_v38  ;;  %v4733_v38 = vpack.c.bf16 %v1073_v31, %v1069_v30  ;;  %v1068_v40 = vld [vmem:[#allocation8 + $0x8d0] sm:$0xff]  ;;  %v1101_v30 = vld [vmem:[#allocation8 + $0x9d8] sm:$0xff] }
 0x243   :  { %4480 = vmatpush1.bf16.msra.mxu0 %v4479_v50  ;;  %v4717_v50 = vpack.c.bf16 %v1041_v43, %v1037_v42  ;;  %v1077_v43 = vld [vmem:[#allocation8 + $0x918] sm:$0xff] }
 0x244   :  { %4482 = vmatprep.subr.bf16.mxu0 %v4481_v53  ;;  %v4499_v53 = vpack.c.bf16 %v1110_v46, %v1106_v45  ;;  %v1146_v46 = vld [vmem:[#allocation8 + $0xb40] sm:$0xff]  ;;  %v1105_v31 = vld [vmem:[#allocation8 + $0x9f8] sm:$0xff] }
 0x245   :  { %4700 = vmatpush1.bf16.msra.mxu1 %v4699_v56  ;;  %v4501_v56 = vpack.c.bf16 %v1119_v49, %v1115_v48  ;;  %v1155_v49 = vld [vmem:[#allocation8 + $0xb88] sm:$0xff] }
 0x246   :  { %4702 = vmatprep.subr.bf16.mxu1 %v4701_v60  ;;  %v4719_v60 = vpack.c.bf16 %v1040_v52, %v1036_v51  ;;  %v1076_v52 = vld [vmem:[#allocation8 + $0x910] sm:$0xff] }
 0x247   :  { %4484 = vmatpush1.bf16.msra.mxu0 %v4483_v63  ;;  %v4721_v63 = vpack.c.bf16 %v1049_v55, %v1045_v54  ;;  %v1085_v55 = vld [vmem:[#allocation8 + $0x958] sm:$0xff] }
 0x248   :  { %4486 = vmatprep.subr.bf16.mxu0 %v4485_v1  ;;  %v4503_v1 = vpack.c.bf16 %v1118_v59, %v1114_v57  ;;  %v472_v59 = vsub.s32 4, %v6333_v9 }
 0x249   :  { %4704 = vmatpush1.bf16.msra.mxu1 %v4703_v3  ;;  %v4505_v3 = vpack.c.bf16 %v1127_v62, %v1123_v61  ;;  %v1158_v61 = vld [vmem:[#allocation8 + $0xba0] sm:$0xff] }
 0x24a   :  { %4706 = vmatprep.subr.bf16.mxu1 %v4705_v6  ;;  %v4723_v6 = vpack.c.bf16 %v1048_v0, %v1044_v18  ;;  %v1163_v18 = vld [vmem:[#allocation8 + $0xbc8] sm:$0xff] }
 0x24b   :  { %4488 = vmatpush1.bf16.msra.mxu0 %v4487_v10  ;;  %v4725_v10 = vpack.c.bf16 %v1057_v41, %v1053_v2  ;;  %v1167_v0 = vld [vmem:[#allocation8 + $0xbe8] sm:$0xff]  ;;  %v1084_v2 = vld [vmem:[#allocation8 + $0x950] sm:$0xff] }
 0x24c   :  { %4490 = vmatprep.subr.bf16.mxu0 %v4489_v13  ;;  %v4507_v13 = vpack.c.bf16 %v1126_v5, %v1122_v4  ;;  %v1088_v41 = vld [vmem:[#allocation8 + $0x970] sm:$0xff]  ;;  %v1093_v4 = vld [vmem:[#allocation8 + $0x998] sm:$0xff] }
 0x24d   :  { %4708 = vmatpush1.bf16.msra.mxu1 %v4707_v17  ;;  %v4509_v17 = vpack.c.bf16 %v1135_v8, %v1131_v7  ;;  %v1097_v5 = vld [vmem:[#allocation8 + $0x9b8] sm:$0xff]  ;;  %v4525_v8 = vpack.c.bf16 %v1167_v0, %v1163_v18  ;;  %v1195_v18 = vld [vmem:[#allocation8 + $0xcc8] sm:$0xff] }
 0x24e   :  { %4710 = vmatprep.subr.bf16.mxu1 %v4709_v22  ;;  %v4727_v22 = vpack.c.bf16 %v1056_v12, %v1052_v11  ;;  %v1166_v11 = vld [vmem:[#allocation8 + $0xbe0] sm:$0xff]  ;;  %v1199_v0 = vld [vmem:[#allocation8 + $0xce8] sm:$0xff] }
 0x24f   :  { %4492 = vmatpush1.bf16.msra.mxu0 %v4491_v25  ;;  %v4729_v25 = vpack.c.bf16 %v1065_v15, %v1061_v14  ;;  %v1171_v14 = vld [vmem:[#allocation8 + $0xc08] sm:$0xff] }
 0x250   :  { %4494 = vmatprep.subr.bf16.mxu0 %v4493_v28  ;;  %v4511_v28 = vpack.c.bf16 %v1134_v21, %v1130_v20  ;;  %v1175_v15 = vld [vmem:[#allocation8 + $0xc28] sm:$0xff]  ;;  %v1092_v20 = vld [vmem:[#allocation8 + $0x990] sm:$0xff] }
 0x251   :  { %4712 = vmatpush1.bf16.msra.mxu1 %v4711_v32  ;;  %v4513_v32 = vpack.c.bf16 %v1143_v24, %v1139_v23  ;;  %v1096_v21 = vld [vmem:[#allocation8 + $0x9b0] sm:$0xff]  ;;  %v1170_v24 = vld [vmem:[#allocation8 + $0xc00] sm:$0xff]  ;;  %v4529_v27 = vpack.c.bf16 %v1175_v15, %v1171_v14 }
 0x252   :  { %4714 = vmatprep.subr.bf16.mxu1 %v4713_v37  ;;  %v1151_v37 = vld [vmem:[#allocation8 + $0xb68] sm:$0xff]  ;;  %v1124_v15 = vld [vmem:[#allocation8 + $0xa90] sm:$0xff] }
 0x253   :  { %4496 = vmatpush1.bf16.msra.mxu0 %v4495_v39  ;;  %v1072_v39 = vld [vmem:[#allocation8 + $0x8f0] sm:$0xff]  ;;  %v4517_v45 = vpack.c.bf16 %v1151_v37, %v1147_v36 }
 0x254   :  { %4498 = vmatprep.subr.bf16.mxu0 %v4497_v44  ;;  %v1081_v44 = vld [vmem:[#allocation8 + $0x938] sm:$0xff]  ;;  %v4735_v48 = vpack.c.bf16 %v1072_v39, %v1068_v40  ;;  %v1100_v37 = vld [vmem:[#allocation8 + $0x9d0] sm:$0xff] }
 0x255   :  { %4716 = vmatpush1.bf16.msra.mxu1 %v4715_v47  ;;  %v1150_v47 = vld [vmem:[#allocation8 + $0xb60] sm:$0xff]  ;;  %v4737_v51 = vpack.c.bf16 %v1081_v44, %v1077_v43  ;;  %v1109_v43 = vld [vmem:[#allocation8 + $0xa18] sm:$0xff] }
 0x256   :  { %4718 = vmatprep.subr.bf16.mxu1 %v4717_v50  ;;  %v1159_v50 = vld [vmem:[#allocation8 + $0xba8] sm:$0xff]  ;;  %v4519_v54 = vpack.c.bf16 %v1150_v47, %v1146_v46  ;;  %v1113_v44 = vld [vmem:[#allocation8 + $0xa38] sm:$0xff]  ;;  %v1178_v46 = vld [vmem:[#allocation8 + $0xc40] sm:$0xff] }
 0x257   :  { %4500 = vmatpush1.bf16.msra.mxu0 %v4499_v53  ;;  %v1080_v53 = vld [vmem:[#allocation8 + $0x930] sm:$0xff]  ;;  %v4521_v57 = vpack.c.bf16 %v1159_v50, %v1155_v49  ;;  %v1182_v47 = vld [vmem:[#allocation8 + $0xc60] sm:$0xff]  ;;  %v1187_v49 = vld [vmem:[#allocation8 + $0xc88] sm:$0xff] }
 0x258   :  { %4502 = vmatprep.subr.bf16.mxu0 %v4501_v56  ;;  %v1089_v56 = vld [vmem:[#allocation8 + $0x978] sm:$0xff]  ;;  %v4739_v62 = vpack.c.bf16 %v1080_v53, %v1076_v52  ;;  %v1191_v50 = vld [vmem:[#allocation8 + $0xca8] sm:$0xff]  ;;  %v1108_v52 = vld [vmem:[#allocation8 + $0xa10] sm:$0xff] }
 0x259   :  { %4720 = vmatpush1.bf16.msra.mxu1 %v4719_v60  ;;  %v1154_v60 = vld [vmem:[#allocation8 + $0xb80] sm:$0xff]  ;;  %v1112_v53 = vld [vmem:[#allocation8 + $0xa30] sm:$0xff] }
 0x25a   :  { %4722 = vmatprep.subr.bf16.mxu1 %v4721_v63  ;;  %v476_v63 = vsub.s32 5, %v6333_v9 }
 0x25b   :  { %4504 = vmatpush1.bf16.msra.mxu0 %v4503_v1  ;;  %v4741_v1 = vpack.c.bf16 %v1089_v56, %v1085_v55  ;;  %v1117_v55 = vld [vmem:[#allocation8 + $0xa58] sm:$0xff] }
 0x25c   :  { %1740 = vmatmul.mubr.f32.vlgmr.msra.gmra.mrb[8].mxu1 %v780_v33  ;;  %4506 = vmatprep.subr.bf16.mxu0 %v4505_v3  ;;  %v1142_v33 = vld [vmem:[#allocation8 + $0xb20] sm:$0xff]  ;;  %v4523_v3 = vpack.c.bf16 %v1158_v61, %v1154_v60  ;;  %v1121_v56 = vld [vmem:[#allocation8 + $0xa78] sm:$0xff] }
 0x25d   :  { %4724 = vmatpush1.bf16.msra.mxu1 %v4723_v6  ;;  %v4515_v42 = vpack.c.bf16 %v1142_v33, %v1138_v58  ;;  %v6373_v6 = vld [vmem:[#allocation7] sm:$0xff]  ;;  %v4747_v58 = vpack.c.bf16 %v1096_v21, %v1092_v20  ;;  %v1179_v33 = vld [vmem:[#allocation8 + $0xc48] sm:$0xff]  ;;  %v1186_v60 = vld [vmem:[#allocation8 + $0xc80] sm:$0xff] }
 0x25e   :  { %4726 = vmatprep.subr.bf16.mxu1 %v4725_v10  ;;  %v473_v7 = vrot.slane %v6373_v6, %v472_v59  ;;  %v1162_v10 = vld [vmem:[#allocation8 + $0xbc0] sm:$0xff]  ;;  %v477_v12 = vrot.slane %v6373_v6, %v476_v63  ;;  %v1133_v21 = vld [vmem:[#allocation8 + $0xad8] sm:$0xff] }
 0x25f   :  { %4508 = vmatpush1.bf16.msra.mxu0 %v4507_v13  ;;  %v4743_v13 = vpack.c.bf16 %v1088_v41, %v1084_v2  ;;  %v4527_v23 = vpack.c.bf16 %v1166_v11, %v1162_v10  ;;  %v1190_v61 = vld [vmem:[#allocation8 + $0xca0] sm:$0xff]  ;;  %v1116_v2 = vld [vmem:[#allocation8 + $0xa50] sm:$0xff] }
 0x260   :  { %4510 = vmatprep.subr.bf16.mxu0 %v4509_v17  ;;  %v4745_v17 = vpack.c.bf16 %v1097_v5, %v1093_v4  ;;  %v1120_v41 = vld [vmem:[#allocation8 + $0xa70] sm:$0xff]  ;;  %v1125_v4 = vld [vmem:[#allocation8 + $0xa98] sm:$0xff]  ;;  %v1198_v10 = vld [vmem:[#allocation8 + $0xce0] sm:$0xff] }
 0x261   :  { %4728 = vmatpush1.bf16.msra.mxu1 %v4727_v22  ;;  %v1129_v5 = vld [vmem:[#allocation8 + $0xab8] sm:$0xff]  ;;  %v4759_v11 = vpack.c.bf16 %v1120_v41, %v1116_v2  ;;  %v1226_v2 = vld [vmem:[#allocation8 + $0xdc0] sm:$0xff] }
 0x262   :  { %4730 = vmatprep.subr.bf16.mxu1 %v4729_v25  ;;  %v4761_v14 = vpack.c.bf16 %v1129_v5, %v1125_v4  ;;  %v1230_v41 = vld [vmem:[#allocation8 + $0xde0] sm:$0xff]  ;;  %v1235_v4 = vld [vmem:[#allocation8 + $0xe08] sm:$0xff] }
 0x263   :  { %4512 = vmatpush1.bf16.msra.mxu0 %v4511_v28  ;;  %v1174_v28 = vld [vmem:[#allocation8 + $0xc20] sm:$0xff]  ;;  %v1239_v5 = vld [vmem:[#allocation8 + $0xe28] sm:$0xff] }
 0x264   :  { %4514 = vmatprep.subr.bf16.mxu0 %v4513_v32  ;;  %v4531_v39 = vpack.c.bf16 %v1174_v28, %v1170_v24  ;;  %v1202_v24 = vld [vmem:[#allocation8 + $0xd00] sm:$0xff]  ;;  %v1211_v28 = vld [vmem:[#allocation8 + $0xd48] sm:$0xff] }
 0x265   :  { %4732 = vmatpush1.bf16.msra.mxu1 %v4731_v35  ;;  %v1183_v35 = vld [vmem:[#allocation8 + $0xc68] sm:$0xff] }
 0x266   :  { %4734 = vmatprep.subr.bf16.mxu1 %v4733_v38  ;;  %v1104_v38 = vld [vmem:[#allocation8 + $0x9f0] sm:$0xff] }
 0x267   :  { %4516 = vmatpush1.bf16.msra.mxu0 %v4515_v42  ;;  %v4749_v42 = vpack.c.bf16 %v1105_v31, %v1101_v30  ;;  %v1215_v30 = vld [vmem:[#allocation8 + $0xd68] sm:$0xff] }
 0x268   :  { %4518 = vmatprep.subr.bf16.mxu0 %v4517_v45  ;;  %v4533_v45 = vpack.c.bf16 %v1183_v35, %v1179_v33  ;;  %v1141_v35 = vld [vmem:[#allocation8 + $0xb18] sm:$0xff] }
 0x269   :  { %4736 = vmatpush1.bf16.msra.mxu1 %v4735_v48  ;;  %v4751_v48 = vpack.c.bf16 %v1104_v38, %v1100_v37  ;;  %v1145_v37 = vld [vmem:[#allocation8 + $0xb38] sm:$0xff]  ;;  %v4549_v38 = vpack.c.bf16 %v1215_v30, %v1211_v28 }
 0x26a   :  { %4738 = vmatprep.subr.bf16.mxu1 %v4737_v51  ;;  %v4753_v51 = vpack.c.bf16 %v1113_v44, %v1109_v43  ;;  %v1219_v43 = vld [vmem:[#allocation8 + $0xd88] sm:$0xff]  ;;  %v1173_v28 = vld [vmem:[#allocation8 + $0xc18] sm:$0xff] }
 0x26b   :  { %4520 = vmatpush1.bf16.msra.mxu0 %v4519_v54  ;;  %v4535_v54 = vpack.c.bf16 %v1182_v47, %v1178_v46  ;;  %v1223_v44 = vld [vmem:[#allocation8 + $0xda8] sm:$0xff]  ;;  %v1140_v46 = vld [vmem:[#allocation8 + $0xb10] sm:$0xff]  ;;  %v1177_v30 = vld [vmem:[#allocation8 + $0xc38] sm:$0xff] }
 0x26c   :  { %4522 = vmatprep.subr.bf16.mxu0 %v4521_v57  ;;  %v4537_v57 = vpack.c.bf16 %v1191_v50, %v1187_v49  ;;  %v1144_v47 = vld [vmem:[#allocation8 + $0xb30] sm:$0xff]  ;;  %v1149_v49 = vld [vmem:[#allocation8 + $0xb58] sm:$0xff] }
 0x26d   :  { %4740 = vmatpush1.bf16.msra.mxu1 %v4739_v62  ;;  %v4755_v62 = vpack.c.bf16 %v1112_v53, %v1108_v52  ;;  %v1153_v50 = vld [vmem:[#allocation8 + $0xb78] sm:$0xff]  ;;  %v1218_v52 = vld [vmem:[#allocation8 + $0xd80] sm:$0xff] }
 0x26e   :  { %4742 = vmatprep.subr.bf16.mxu1 %v4741_v1  ;;  %v4757_v1 = vpack.c.bf16 %v1121_v56, %v1117_v55  ;;  %v1222_v53 = vld [vmem:[#allocation8 + $0xda0] sm:$0xff]  ;;  %v1227_v55 = vld [vmem:[#allocation8 + $0xdc8] sm:$0xff] }
 0x26f   :  { %v702_v22 = vpop.f32.mrb[4].mxu1  ;;  %4524 = vmatpush1.bf16.msra.mxu0 %v4523_v3  ;;  %v4539_v3 = vpack.c.bf16 %v1190_v61, %v1186_v60  ;;  %v1231_v56 = vld [vmem:[#allocation8 + $0xde8] sm:$0xff]  ;;  %v1148_v60 = vld [vmem:[#allocation8 + $0xb50] sm:$0xff] }
 0x270   :  { %v6381_v25 = vadd.f32 %v702_v22, %v473_v7  ;;  %v704_v26 = vpop.f32.mrb[5].mxu1  ;;  %4526 = vmatprep.subr.bf16.mxu0 %v4525_v8  ;;  %v4541_v7 = vpack.c.bf16 %v1199_v0, %v1195_v18  ;;  %v1194_v8 = vld [vmem:[#allocation8 + $0xcc0] sm:$0xff]  ;;  %v1137_v22 = vld [vmem:[#allocation8 + $0xaf8] sm:$0xff]  ;;  %v1152_v61 = vld [vmem:[#allocation8 + $0xb70] sm:$0xff] }
 0x271   :  { %v705_v32 = vadd.f32 %v704_v26, %v477_v12  ;;  %4744 = vmatpush1.bf16.msra.mxu1 %v4743_v13  ;;  %v1203_v12 = vld [vmem:[#allocation8 + $0xd08] sm:$0xff]  ;;  %v4543_v20 = vpack.c.bf16 %v1198_v10, %v1194_v8  ;;  %v1206_v26 = vld [vmem:[#allocation8 + $0xd20] sm:$0xff]  ;;  %v4765_v31 = vpack.c.bf16 %v1137_v22, %v1133_v21  ;;  %v1157_v18 = vld [vmem:[#allocation8 + $0xb98] sm:$0xff] }
 0x272   :  { %v782_v36 = vmax.f32 %v6381_v25, 0.0  ;;  %4746 = vmatprep.subr.bf16.mxu1 %v4745_v17  ;;  %v1207_v13 = vld [vmem:[#allocation8 + $0xd28] sm:$0xff]  ;;  %v1128_v17 = vld [vmem:[#allocation8 + $0xab0] sm:$0xff]  ;;  %v4547_v33 = vpack.c.bf16 %v1206_v26, %v1202_v24  ;;  %v1161_v0 = vld [vmem:[#allocation8 + $0xbb8] sm:$0xff] }
 0x273   :  { %v783_v40 = vmax.f32 %v705_v32, 0.0  ;;  %4528 = vmatpush1.bf16.msra.mxu0 %v4527_v23  ;;  %v4545_v23 = vpack.c.bf16 %v1207_v13, %v1203_v12  ;;  %v1132_v32 = vld [vmem:[#allocation8 + $0xad0] sm:$0xff]  ;;  %v1165_v12 = vld [vmem:[#allocation8 + $0xbd8] sm:$0xff]  ;;  %v1243_v21 = vld [vmem:[#allocation8 + $0xe48] sm:$0xff] }
 0x274   :  { %4530 = vmatprep.subr.bf16.mxu0 %v4529_v27  ;;  %v4763_v27 = vpack.c.bf16 %v1128_v17, %v1124_v15  ;;  %v1156_v8 = vld [vmem:[#allocation8 + $0xb90] sm:$0xff]  ;;  %v1169_v13 = vld [vmem:[#allocation8 + $0xbf8] sm:$0xff]  ;;  %v1234_v15 = vld [vmem:[#allocation8 + $0xe00] sm:$0xff] }
 0x275   :  { %1526 = vmatprep.mubr.f32.mxu0 %v783_v40  ;;  %4748 = vmatpush1.bf16.msra.mxu1 %v4747_v58  ;;  %v1136_v58 = vld [vmem:[#allocation8 + $0xaf0] sm:$0xff]  ;;  %v1238_v17 = vld [vmem:[#allocation8 + $0xe20] sm:$0xff]  ;;  %v1247_v22 = vld [vmem:[#allocation8 + $0xe68] sm:$0xff] }
 0x276   :  { %1810 = vmatprep.mubr.f32.mxu1 %v783_v40  ;;  %1527 = vmatmul.mubr.f32.vlgmr.msra.gmra.mrb[0].mxu0 %v782_v36  ;;  %v1210_v40 = vld [vmem:[#allocation8 + $0xd40] sm:$0xff]  ;;  %v1160_v10 = vld [vmem:[#allocation8 + $0xbb0] sm:$0xff] }
 0x277   :  { %4532 = vmatpush1.bf16.msra.mxu0 %v4531_v39  ;;  %4750 = vmatprep.subr.bf16.mxu1 %v4749_v42  ;;  %v1214_v39 = vld [vmem:[#allocation8 + $0xd60] sm:$0xff]  ;;  %v4767_v42 = vpack.c.bf16 %v1136_v58, %v1132_v32  ;;  %v1164_v24 = vld [vmem:[#allocation8 + $0xbd0] sm:$0xff] }
 0x278   :  { %4534 = vmatprep.subr.bf16.mxu0 %v4533_v45  ;;  %v4769_v45 = vpack.c.bf16 %v1145_v37, %v1141_v35  ;;  %v1168_v26 = vld [vmem:[#allocation8 + $0xbf0] sm:$0xff]  ;;  %v1242_v32 = vld [vmem:[#allocation8 + $0xe40] sm:$0xff]  ;;  %v1251_v35 = vld [vmem:[#allocation8 + $0xe88] sm:$0xff] }
 0x279   :  { %4752 = vmatpush1.bf16.msra.mxu1 %v4751_v48  ;;  %v4551_v48 = vpack.c.bf16 %v1214_v39, %v1210_v40  ;;  %v1246_v58 = vld [vmem:[#allocation8 + $0xe60] sm:$0xff]  ;;  %v1255_v37 = vld [vmem:[#allocation8 + $0xea8] sm:$0xff]  ;;  %v1172_v40 = vld [vmem:[#allocation8 + $0xc10] sm:$0xff] }
 0x27a   :  { %4754 = vmatprep.subr.bf16.mxu1 %v4753_v51  ;;  %v4553_v51 = vpack.c.bf16 %v1223_v44, %v1219_v43  ;;  %v1176_v39 = vld [vmem:[#allocation8 + $0xc30] sm:$0xff]  ;;  %v1181_v43 = vld [vmem:[#allocation8 + $0xc58] sm:$0xff]  ;;  %v1266_v25 = vld [vmem:[#allocation8 + $0xf00] sm:$0xff] }
 0x27b   :  { %4536 = vmatpush1.bf16.msra.mxu0 %v4535_v54  ;;  %v4771_v54 = vpack.c.bf16 %v1144_v47, %v1140_v46  ;;  %v1185_v44 = vld [vmem:[#allocation8 + $0xc78] sm:$0xff]  ;;  %v1250_v46 = vld [vmem:[#allocation8 + $0xe80] sm:$0xff] }
 0x27c   :  { %4538 = vmatprep.subr.bf16.mxu0 %v4537_v57  ;;  %v4773_v57 = vpack.c.bf16 %v1153_v50, %v1149_v49  ;;  %v1254_v47 = vld [vmem:[#allocation8 + $0xea0] sm:$0xff]  ;;  %v1259_v49 = vld [vmem:[#allocation8 + $0xec8] sm:$0xff] }
 0x27d   :  { %4756 = vmatpush1.bf16.msra.mxu1 %v4755_v62  ;;  %v4555_v62 = vpack.c.bf16 %v1222_v53, %v1218_v52  ;;  %v1263_v50 = vld [vmem:[#allocation8 + $0xee8] sm:$0xff]  ;;  %v1180_v52 = vld [vmem:[#allocation8 + $0xc50] sm:$0xff] }
 0x27e   :  { %4758 = vmatprep.subr.bf16.mxu1 %v4757_v1  ;;  %v4557_v1 = vpack.c.bf16 %v1231_v56, %v1227_v55  ;;  %v1184_v53 = vld [vmem:[#allocation8 + $0xc70] sm:$0xff]  ;;  %v1189_v55 = vld [vmem:[#allocation8 + $0xc98] sm:$0xff] }
 0x27f   :  { %4540 = vmatpush1.bf16.msra.mxu0 %v4539_v3  ;;  %v4775_v3 = vpack.c.bf16 %v1152_v61, %v1148_v60  ;;  %v1193_v56 = vld [vmem:[#allocation8 + $0xcb8] sm:$0xff]  ;;  %v1258_v60 = vld [vmem:[#allocation8 + $0xec0] sm:$0xff] }
 0x280   :  { %4542 = vmatprep.subr.bf16.mxu0 %v4541_v7  ;;  %v4777_v7 = vpack.c.bf16 %v1161_v0, %v1157_v18  ;;  %v1262_v61 = vld [vmem:[#allocation8 + $0xee0] sm:$0xff]  ;;  %v1267_v18 = vld [vmem:[#allocation8 + $0xf08] sm:$0xff] }
 0x281   :  { %4760 = vmatpush1.bf16.msra.mxu1 %v4759_v11  ;;  %v4559_v11 = vpack.c.bf16 %v1230_v41, %v1226_v2  ;;  %v1271_v0 = vld [vmem:[#allocation8 + $0xf28] sm:$0xff]  ;;  %v1188_v2 = vld [vmem:[#allocation8 + $0xc90] sm:$0xff] }
 0x282   :  { %4762 = vmatprep.subr.bf16.mxu1 %v4761_v14  ;;  %v4561_v14 = vpack.c.bf16 %v1239_v5, %v1235_v4  ;;  %v1192_v41 = vld [vmem:[#allocation8 + $0xcb0] sm:$0xff]  ;;  %v1197_v4 = vld [vmem:[#allocation8 + $0xcd8] sm:$0xff] }
 0x283   :  { %4544 = vmatpush1.bf16.msra.mxu0 %v4543_v20  ;;  %v4779_v20 = vpack.c.bf16 %v1160_v10, %v1156_v8  ;;  %v1201_v5 = vld [vmem:[#allocation8 + $0xcf8] sm:$0xff]  ;;  %v4795_v8 = vpack.c.bf16 %v1192_v41, %v1188_v2  ;;  %v1275_v10 = vld [vmem:[#allocation8 + $0xf48] sm:$0xff] }
 0x284   :  { %4546 = vmatprep.subr.bf16.mxu0 %v4545_v23  ;;  %v4781_v23 = vpack.c.bf16 %v1169_v13, %v1165_v12  ;;  %v4797_v12 = vpack.c.bf16 %v1201_v5, %v1197_v4  ;;  %v1196_v13 = vld [vmem:[#allocation8 + $0xcd0] sm:$0xff]  ;;  %v1229_v2 = vld [vmem:[#allocation8 + $0xdd8] sm:$0xff]  ;;  %v1892_v5 = vld [vmem:[%s6683_s5] sm:$0xff] }
 0x285   :  { %4764 = vmatpush1.bf16.msra.mxu1 %v4763_v27  ;;  %v4563_v27 = vpack.c.bf16 %v1238_v17, %v1234_v15  ;;  %v1205_v17 = vld [vmem:[#allocation8 + $0xd18] sm:$0xff] }
 0x286   :  { %4766 = vmatprep.subr.bf16.mxu1 %v4765_v31  ;;  %v4565_v31 = vpack.c.bf16 %v1247_v22, %v1243_v21  ;;  %v1274_v22 = vld [vmem:[#allocation8 + $0xf40] sm:$0xff] }
 0x287   :  { %4548 = vmatpush1.bf16.msra.mxu0 %v4547_v33  ;;  %v4783_v33 = vpack.c.bf16 %v1168_v26, %v1164_v24  ;;  %v1283_v26 = vld [vmem:[#allocation8 + $0xf88] sm:$0xff] }
 0x288   :  { %4550 = vmatprep.subr.bf16.mxu0 %v4549_v38  ;;  %v4785_v38 = vpack.c.bf16 %v1177_v30, %v1173_v28  ;;  %v1204_v30 = vld [vmem:[#allocation8 + $0xd10] sm:$0xff] }
 0x289   :  { %4768 = vmatpush1.bf16.msra.mxu1 %v4767_v42  ;;  %v4567_v42 = vpack.c.bf16 %v1246_v58, %v1242_v32  ;;  %v1213_v58 = vld [vmem:[#allocation8 + $0xd58] sm:$0xff] }
 0x28a   :  { %4770 = vmatprep.subr.bf16.mxu1 %v4769_v45  ;;  %v4569_v45 = vpack.c.bf16 %v1255_v37, %v1251_v35  ;;  %v480_v37 = vsub.s32 6, %v6333_v9 }
 0x28b   :  { %4552 = vmatpush1.bf16.msra.mxu0 %v4551_v48  ;;  %v4787_v48 = vpack.c.bf16 %v1176_v39, %v1172_v40  ;;  %v1286_v40 = vld [vmem:[#allocation8 + $0xfa0] sm:$0xff] }
 0x28c   :  { %4554 = vmatprep.subr.bf16.mxu0 %v4553_v51  ;;  %v4789_v51 = vpack.c.bf16 %v1185_v44, %v1181_v43  ;;  %v1291_v43 = vld [vmem:[#allocation8 + $0xfc8] sm:$0xff] }
 0x28d   :  { %4772 = vmatpush1.bf16.msra.mxu1 %v4771_v54  ;;  %v4571_v54 = vpack.c.bf16 %v1254_v47, %v1250_v46  ;;  %v1295_v44 = vld [vmem:[#allocation8 + $0xfe8] sm:$0xff]  ;;  %v1212_v46 = vld [vmem:[#allocation8 + $0xd50] sm:$0xff] }
 0x28e   :  { %4774 = vmatprep.subr.bf16.mxu1 %v4773_v57  ;;  %v4573_v57 = vpack.c.bf16 %v1263_v50, %v1259_v49  ;;  %v1216_v47 = vld [vmem:[#allocation8 + $0xd70] sm:$0xff]  ;;  %v1221_v49 = vld [vmem:[#allocation8 + $0xd98] sm:$0xff] }
 0x28f   :  { %4556 = vmatpush1.bf16.msra.mxu0 %v4555_v62  ;;  %v4791_v62 = vpack.c.bf16 %v1184_v53, %v1180_v52  ;;  %v1225_v50 = vld [vmem:[#allocation8 + $0xdb8] sm:$0xff]  ;;  %v4589_v52 = vpack.c.bf16 %v1295_v44, %v1291_v43  ;;  %v1290_v53 = vld [vmem:[#allocation8 + $0xfc0] sm:$0xff] }
 0x290   :  { %4558 = vmatprep.subr.bf16.mxu0 %v4557_v1  ;;  %v4793_v1 = vpack.c.bf16 %v1193_v56, %v1189_v55  ;;  %v4807_v56 = vpack.c.bf16 %v1216_v47, %v1212_v46  ;;  %v1914_v44 = vld [vmem:[%s6683_s5 + $0xb0] sm:$0xff]  ;;  %v1244_v47 = vld [vmem:[#allocation8 + $0xe50] sm:$0xff] }
 0x291   :  { %4776 = vmatpush1.bf16.msra.mxu1 %v4775_v3  ;;  %v4575_v3 = vpack.c.bf16 %v1262_v61, %v1258_v60  ;;  %v1909_v60 = vld [vmem:[%s6683_s5 + $0x88] sm:$0xff]  ;;  %v4809_v61 = vpack.c.bf16 %v1225_v50, %v1221_v49  ;;  %v1253_v49 = vld [vmem:[#allocation8 + $0xe98] sm:$0xff] }
 0x292   :  { %4778 = vmatprep.subr.bf16.mxu1 %v4777_v7  ;;  %v4577_v7 = vpack.c.bf16 %v1271_v0, %v1267_v18  ;;  %v1224_v18 = vld [vmem:[#allocation8 + $0xdb0] sm:$0xff]  ;;  %v1257_v50 = vld [vmem:[#allocation8 + $0xeb8] sm:$0xff] }
 0x293   :  { %4560 = vmatpush1.bf16.msra.mxu0 %v4559_v11  ;;  %v1279_v11 = vld [vmem:[#allocation8 + $0xf68] sm:$0xff] }
 0x294   :  { %4562 = vmatprep.subr.bf16.mxu0 %v4561_v14  ;;  %v1200_v14 = vld [vmem:[#allocation8 + $0xcf0] sm:$0xff]  ;;  %v4581_v21 = vpack.c.bf16 %v1279_v11, %v1275_v10  ;;  %v1911_v10 = vld [vmem:[%s6683_s5 + $0x98] sm:$0xff] }
 0x295   :  { %4780 = vmatpush1.bf16.msra.mxu1 %v4779_v20  ;;  %v1209_v20 = vld [vmem:[#allocation8 + $0xd38] sm:$0xff]  ;;  %v4799_v24 = vpack.c.bf16 %v1200_v14, %v1196_v13  ;;  %v1232_v13 = vld [vmem:[#allocation8 + $0xdf0] sm:$0xff] }
 0x296   :  { %4782 = vmatprep.subr.bf16.mxu1 %v4781_v23  ;;  %v1278_v23 = vld [vmem:[#allocation8 + $0xf60] sm:$0xff]  ;;  %v4801_v28 = vpack.c.bf16 %v1209_v20, %v1205_v17  ;;  %v1237_v17 = vld [vmem:[#allocation8 + $0xe18] sm:$0xff] }
 0x297   :  { %4564 = vmatpush1.bf16.msra.mxu0 %v4563_v27  ;;  %v1287_v27 = vld [vmem:[#allocation8 + $0xfa8] sm:$0xff]  ;;  %v4583_v32 = vpack.c.bf16 %v1278_v23, %v1274_v22  ;;  %v1241_v20 = vld [vmem:[#allocation8 + $0xe38] sm:$0xff] }
 0x298   :  { %4566 = vmatprep.subr.bf16.mxu0 %v4565_v31  ;;  %v1208_v31 = vld [vmem:[#allocation8 + $0xd30] sm:$0xff]  ;;  %v4585_v35 = vpack.c.bf16 %v1287_v27, %v1283_v26  ;;  %v1894_v23 = vld [vmem:[%s6683_s5 + $0x10] sm:$0xff]  ;;  %v1912_v27 = vld [vmem:[%s6683_s5 + $0xa0] sm:$0xff] }
 0x299   :  { %4784 = vmatpush1.bf16.msra.mxu1 %v4783_v33  ;;  %v1217_v33 = vld [vmem:[#allocation8 + $0xd78] sm:$0xff]  ;;  %v4803_v39 = vpack.c.bf16 %v1208_v31, %v1204_v30  ;;  %v4817_v30 = vpack.c.bf16 %v1241_v20, %v1237_v17  ;;  %v1236_v31 = vld [vmem:[#allocation8 + $0xe10] sm:$0xff]  ;;  %v1903_v17 = vld [vmem:[%s6683_s5 + $0x58] sm:$0xff] }
 0x29a   :  { %4786 = vmatprep.subr.bf16.mxu1 %v4785_v38  ;;  %v1282_v38 = vld [vmem:[#allocation8 + $0xf80] sm:$0xff] }
 0x29b   :  { %4568 = vmatpush1.bf16.msra.mxu0 %v4567_v42  ;;  %v484_v42 = vsub.s32 7, %v6333_v9 }
 0x29c   :  { %1811 = vmatmul.mubr.f32.vlgmr.msra.gmra.mrb[8].mxu1 %v782_v36  ;;  %4570 = vmatprep.subr.bf16.mxu0 %v4569_v45  ;;  %v1270_v36 = vld [vmem:[#allocation8 + $0xf20] sm:$0xff]  ;;  %v4805_v45 = vpack.c.bf16 %v1217_v33, %v1213_v58  ;;  %v1245_v58 = vld [vmem:[#allocation8 + $0xe58] sm:$0xff] }
 0x29d   :  { %4788 = vmatpush1.bf16.msra.mxu1 %v4787_v48  ;;  %v4579_v15 = vpack.c.bf16 %v1270_v36, %v1266_v25  ;;  %v4587_v48 = vpack.c.bf16 %v1286_v40, %v1282_v38  ;;  %v485_v55 = vrot.slane %v6373_v6, %v484_v42  ;;  %v1249_v33 = vld [vmem:[#allocation8 + $0xe78] sm:$0xff]  ;;  %v1896_v40 = vld [vmem:[%s6683_s5 + $0x20] sm:$0xff] }
 0x29e   :  { %4790 = vmatprep.subr.bf16.mxu1 %v4789_v51  ;;  %v481_v51 = vrot.slane %v6373_v6, %v480_v37  ;;  %v4821_v46 = vpack.c.bf16 %v1249_v33, %v1245_v58  ;;  %v1276_v33 = vld [vmem:[#allocation8 + $0xf50] sm:$0xff] }
 0x29f   :  { %4572 = vmatpush1.bf16.msra.mxu0 %v4571_v54  ;;  %v1294_v54 = vld [vmem:[#allocation8 + $0xfe0] sm:$0xff] }
 0x2a0   :  { %4574 = vmatprep.subr.bf16.mxu0 %v4573_v57  ;;  %v1908_v57 = vld [vmem:[%s6683_s5 + $0x80] sm:$0xff] }
 0x2a1   :  { %4792 = vmatpush1.bf16.msra.mxu1 %v4791_v62  ;;  %v1220_v62 = vld [vmem:[#allocation8 + $0xd90] sm:$0xff]  ;;  %v4849_v4 = vpack.c.bf16 %v1909_v60, %v1908_v57  ;;  %v4825_v60 = vpack.c.bf16 %v1257_v50, %v1253_v49 }
 0x2a2   :  { %4794 = vmatprep.subr.bf16.mxu1 %v4793_v1  ;;  %v4591_v1 = vpack.c.bf16 %v1294_v54, %v1290_v53  ;;  %v4811_v36 = vpack.c.bf16 %v1224_v18, %v1220_v62  ;;  %v1898_v53 = vld [vmem:[%s6683_s5 + $0x30] sm:$0xff]  ;;  %v1899_v54 = vld [vmem:[%s6683_s5 + $0x38] sm:$0xff]  ;;  %v1917_v57 = vld [vmem:[%s6683_s5 + $0xc8] sm:$0xff] }
 0x2a3   :  { %4576 = vmatpush1.bf16.msra.mxu0 %v4575_v3  ;;  %v1233_v3 = vld [vmem:[#allocation8 + $0xdf8] sm:$0xff]  ;;  %v1256_v62 = vld [vmem:[#allocation8 + $0xeb0] sm:$0xff] }
 0x2a4   :  { %4578 = vmatprep.subr.bf16.mxu0 %v4577_v7  ;;  %v1893_v7 = vld [vmem:[%s6683_s5 + $0x8] sm:$0xff]  ;;  %v1261_v18 = vld [vmem:[#allocation8 + $0xed8] sm:$0xff] }
 0x2a5   :  { %4796 = vmatpush1.bf16.msra.mxu1 %v4795_v8  ;;  %v1910_v8 = vld [vmem:[%s6683_s5 + $0x90] sm:$0xff]  ;;  %v1292_v50 = vld [vmem:[#allocation8 + $0xfd0] sm:$0xff] }
 0x2a6   :  { %4798 = vmatprep.subr.bf16.mxu1 %v4797_v12  ;;  %v1228_v12 = vld [vmem:[#allocation8 + $0xdd0] sm:$0xff]  ;;  %v4853_v22 = vpack.c.bf16 %v1911_v10, %v1910_v8  ;;  %v1269_v10 = vld [vmem:[#allocation8 + $0xf18] sm:$0xff] }
 0x2a7   :  { %4580 = vmatpush1.bf16.msra.mxu0 %v4579_v15  ;;  %v4813_v15 = vpack.c.bf16 %v1233_v3, %v1229_v2  ;;  %v4815_v26 = vpack.c.bf16 %v1232_v13, %v1228_v12  ;;  %v1901_v3 = vld [vmem:[%s6683_s5 + $0x48] sm:$0xff]  ;;  %v1273_v12 = vld [vmem:[#allocation8 + $0xf38] sm:$0xff] }
 0x2a8   :  { %4582 = vmatprep.subr.bf16.mxu0 %v4581_v21  ;;  %v4851_v21 = vpack.c.bf16 %v1893_v7, %v1892_v5  ;;  %v1918_v5 = vld [vmem:[%s6683_s5 + $0xd0] sm:$0xff]  ;;  %v1919_v7 = vld [vmem:[%s6683_s5 + $0xd8] sm:$0xff]  ;;  %v1264_v8 = vld [vmem:[#allocation8 + $0xef0] sm:$0xff] }
 0x2a9   :  { %4800 = vmatpush1.bf16.msra.mxu1 %v4799_v24  ;;  %v1895_v24 = vld [vmem:[%s6683_s5 + $0x18] sm:$0xff] }
 0x2aa   :  { %4802 = vmatprep.subr.bf16.mxu1 %v4801_v28  ;;  %v1913_v28 = vld [vmem:[%s6683_s5 + $0xa8] sm:$0xff] }
 0x2ab   :  { %4584 = vmatpush1.bf16.msra.mxu0 %v4583_v32  ;;  %v1240_v32 = vld [vmem:[#allocation8 + $0xe30] sm:$0xff]  ;;  %v4857_v38 = vpack.c.bf16 %v1913_v28, %v1912_v27  ;;  %v1277_v27 = vld [vmem:[#allocation8 + $0xf58] sm:$0xff] }
 0x2ac   :  { %4586 = vmatprep.subr.bf16.mxu0 %v4585_v35  ;;  %v4855_v35 = vpack.c.bf16 %v1895_v24, %v1894_v23  ;;  %v4819_v43 = vpack.c.bf16 %v1240_v32, %v1236_v31  ;;  %v4833_v23 = vpack.c.bf16 %v1273_v12, %v1269_v10  ;;  %v1268_v24 = vld [vmem:[#allocation8 + $0xf10] sm:$0xff]  ;;  %v1281_v28 = vld [vmem:[#allocation8 + $0xf78] sm:$0xff] }
 0x2ad   :  { %4804 = vmatpush1.bf16.msra.mxu1 %v4803_v39  ;;  %v1897_v39 = vld [vmem:[%s6683_s5 + $0x28] sm:$0xff]  ;;  %v4837_v58 = vpack.c.bf16 %v1281_v28, %v1277_v27 }
 0x2ae   :  { %4806 = vmatprep.subr.bf16.mxu1 %v4805_v45  ;;  %v1915_v45 = vld [vmem:[%s6683_s5 + $0xb8] sm:$0xff] }
 0x2af   :  { %v773_v0 = vpop.f32.mrb[6].mxu1  ;;  %4588 = vmatpush1.bf16.msra.mxu0 %v4587_v48  ;;  %v1248_v48 = vld [vmem:[#allocation8 + $0xe70] sm:$0xff] }
 0x2b0   :  { %v6402_v41 = vadd.f32 %v773_v0, %v481_v51  ;;  %v775_v6 = vpop.f32.mrb[7].mxu1  ;;  %4590 = vmatprep.subr.bf16.mxu0 %v4589_v52  ;;  %v4859_v51 = vpack.c.bf16 %v1897_v39, %v1896_v40  ;;  %v4861_v52 = vpack.c.bf16 %v1915_v45, %v1914_v44  ;;  %v1265_v0 = vld [vmem:[#allocation8 + $0xef8] sm:$0xff]  ;;  %v1284_v44 = vld [vmem:[#allocation8 + $0xf90] sm:$0xff] }
 0x2b1   :  { %v776_v25 = vadd.f32 %v775_v6, %v485_v55  ;;  %4808 = vmatpush1.bf16.msra.mxu1 %v4807_v56  ;;  %v4823_v55 = vpack.c.bf16 %v1248_v48, %v1244_v47  ;;  %v1916_v56 = vld [vmem:[%s6683_s5 + $0xc0] sm:$0xff]  ;;  %v1289_v40 = vld [vmem:[#allocation8 + $0xfb8] sm:$0xff]  ;;  %v1288_v45 = vld [vmem:[#allocation8 + $0xfb0] sm:$0xff] }
 0x2b2   :  { %v784_v11 = vmax.f32 %v6402_v41, 0.0  ;;  %4810 = vmatprep.subr.bf16.mxu1 %v4809_v61  ;;  %v1252_v61 = vld [vmem:[#allocation8 + $0xe90] sm:$0xff]  ;;  %v4865_v2 = vpack.c.bf16 %v1917_v57, %v1916_v56  ;;  %v1900_v6 = vld [vmem:[%s6683_s5 + $0x40] sm:$0xff]  ;;  %v1297_v47 = vld [vmem:[#allocation8 + $0xff8] sm:$0xff]  ;;  %v4843_v48 = vpack.c.bf16 %v1288_v45, %v1284_v44 }
 0x2b3   :  { %v785_v14 = vmax.f32 %v776_v25, 0.0  ;;  %4592 = vmatpush1.bf16.msra.mxu0 %v4591_v1  ;;  %v4863_v1 = vpack.c.bf16 %v1899_v54, %v1898_v53  ;;  %v4829_v25 = vpack.c.bf16 %v1265_v0, %v1261_v18  ;;  %v4867_v13 = vpack.c.bf16 %v1901_v3, %v1900_v6  ;;  %v1904_v53 = vld [vmem:[%s6683_s5 + $0x60] sm:$0xff]  ;;  %v1905_v54 = vld [vmem:[%s6683_s5 + $0x68] sm:$0xff]  ;;  %v1922_v56 = vld [vmem:[%s6683_s5 + $0xf0] sm:$0xff] }
 0x2b4   :  { %4850 = vmatprep.subr.bf16.mxu0 %v4849_v4  ;;  %v4827_v4 = vpack.c.bf16 %v1256_v62, %v1252_v61  ;;  %v1923_v57 = vld [vmem:[%s6683_s5 + $0xf8] sm:$0xff]  ;;  %v1940_v62 = vld [vmem:[%s6683_s5 + $0x180] sm:$0xff]  ;;  %v1941_v18 = vld [vmem:[%s6683_s5 + $0x188] sm:$0xff] }
 0x2b5   :  { %1597 = vmatprep.mubr.f32.mxu0 %v785_v14  ;;  %4812 = vmatpush1.bf16.msra.mxu1 %v4811_v36  ;;  %v1260_v36 = vld [vmem:[#allocation8 + $0xed0] sm:$0xff]  ;;  %v4877_v41 = vpack.c.bf16 %v1923_v57, %v1922_v56  ;;  %v1924_v0 = vld [vmem:[%s6683_s5 + $0x100] sm:$0xff]  ;;  %v1942_v6 = vld [vmem:[%s6683_s5 + $0x190] sm:$0xff] }
 0x2b6   :  { %1881 = vmatprep.mubr.f32.mxu1 %v785_v14  ;;  %1598 = vmatmul.mubr.f32.vlgmr.msra.gmra.mrb[0].mxu0 %v784_v11  ;;  %v4869_v14 = vpack.c.bf16 %v1919_v7, %v1918_v5  ;;  %v4831_v20 = vpack.c.bf16 %v1264_v8, %v1260_v36  ;;  %v1943_v3 = vld [vmem:[%s6683_s5 + $0x198] sm:$0xff]  ;;  %v1926_v7 = vld [vmem:[%s6683_s5 + $0x110] sm:$0xff]  ;;  %v1944_v36 = vld [vmem:[%s6683_s5 + $0x1a0] sm:$0xff] }
 0x2b7   :  { %4814 = vmatprep.subr.bf16.mxu1 %v4813_v15  ;;  %4852 = vmatpush3.bf16.msra.mxu0 %v4851_v21  ;;  %v1902_v15 = vld [vmem:[%s6683_s5 + $0x50] sm:$0xff]  ;;  %v1920_v21 = vld [vmem:[%s6683_s5 + $0xe0] sm:$0xff]  ;;  %v4885_v5 = vpack.c.bf16 %v1943_v3, %v1942_v6  ;;  %v1945_v8 = vld [vmem:[%s6683_s5 + $0x1a8] sm:$0xff] }
 0x2b8   :  { %4854 = vmatprep.subr.bf16.mxu0 %v4853_v22  ;;  %v1921_v22 = vld [vmem:[%s6683_s5 + $0xe8] sm:$0xff]  ;;  %v4889_v12 = vpack.c.bf16 %v1945_v8, %v1944_v36  ;;  %v2106_v8 = vld [vmem:[#allocation13 + $0x18] sm:$0xff] }
 0x2b9   :  { %4816 = vmatpush1.bf16.msra.mxu1 %v4815_v26  ;;  %v1272_v26 = vld [vmem:[#allocation8 + $0xf30] sm:$0xff]  ;;  %v4873_v31 = vpack.c.bf16 %v1921_v22, %v1920_v21  ;;  %v1930_v22 = vld [vmem:[%s6683_s5 + $0x130] sm:$0xff] }
 0x2ba   :  { %4818 = vmatprep.subr.bf16.mxu1 %v4817_v30  ;;  %v4871_v30 = vpack.c.bf16 %v1903_v17, %v1902_v15  ;;  %v4835_v32 = vpack.c.bf16 %v1272_v26, %v1268_v24  ;;  %v1946_v15 = vld [vmem:[%s6683_s5 + $0x1b0] sm:$0xff]  ;;  %v1947_v17 = vld [vmem:[%s6683_s5 + $0x1b8] sm:$0xff]  ;;  %v1948_v24 = vld [vmem:[%s6683_s5 + $0x1c0] sm:$0xff] }
 0x2bb   :  { %4856 = vmatpush3.bf16.msra.mxu0 %v4855_v35  ;;  %v1280_v35 = vld [vmem:[#allocation8 + $0xf70] sm:$0xff]  ;;  %v4893_v21 = vpack.c.bf16 %v1947_v17, %v1946_v15 }
 0x2bc   :  { %4858 = vmatprep.subr.bf16.mxu0 %v4857_v38  ;;  %v1285_v38 = vld [vmem:[#allocation8 + $0xf98] sm:$0xff]  ;;  %v4839_v39 = vpack.c.bf16 %v1280_v35, %v1276_v33  ;;  %v1949_v26 = vld [vmem:[%s6683_s5 + $0x1c8] sm:$0xff] }
 0x2bd   :  { %4820 = vmatpush1.bf16.msra.mxu1 %v4819_v43  ;;  %v4841_v43 = vpack.c.bf16 %v1289_v40, %v1285_v38  ;;  %v4897_v28 = vpack.c.bf16 %v1949_v26, %v1948_v24  ;;  %v1934_v38 = vld [vmem:[%s6683_s5 + $0x150] sm:$0xff]  ;;  %v1935_v40 = vld [vmem:[%s6683_s5 + $0x158] sm:$0xff]  ;;  %v2108_v36 = vld [vmem:[#allocation13 + $0x28] sm:$0xff] }
 0x2be   :  { %4822 = vmatprep.subr.bf16.mxu1 %v4821_v46  ;;  %v1293_v46 = vld [vmem:[#allocation8 + $0xfd8] sm:$0xff]  ;;  %v4903_v44 = vpack.c.bf16 %v1935_v40, %v1934_v38  ;;  %v2116_v24 = vld [vmem:[#allocation13 + $0x68] sm:$0xff]  ;;  %v6087_v40 = vmov 0.0  }
 0x2bf   :  { %4860 = vmatpush3.bf16.msra.mxu0 %v4859_v51  ;;  %v4845_v49 = vpack.c.bf16 %v1297_v47, %v1293_v46  ;;  %v1296_v51 = vld [vmem:[#allocation8 + $0xff0] sm:$0xff]  ;;  %v1936_v46 = vld [vmem:[%s6683_s5 + $0x160] sm:$0xff]  ;;  %v2114_v26 = vld [vmem:[#allocation13 + $0x58] sm:$0xff] }
 0x2c0   :  { %4862 = vmatprep.subr.bf16.mxu0 %v4861_v52  ;;  %v4847_v52 = vpack.c.bf16 %v1296_v51, %v1292_v50  ;;  %v1937_v47 = vld [vmem:[%s6683_s5 + $0x168] sm:$0xff]  ;;  %v1955_v50 = vld [vmem:[%s6683_s5 + $0x1f8] sm:$0xff] }
 0x2c1   :  { %4824 = vmatpush1.bf16.msra.mxu1 %v4823_v55  ;;  %v4875_v55 = vpack.c.bf16 %v1905_v54, %v1904_v53  ;;  %v1939_v53 = vld [vmem:[%s6683_s5 + $0x178] sm:$0xff] }
 0x2c2   :  { %4826 = vmatprep.subr.bf16.mxu1 %v4825_v60  ;;  %v1907_v60 = vld [vmem:[%s6683_s5 + $0x78] sm:$0xff] }
 0x2c3   :  { %4864 = vmatpush3.bf16.msra.mxu0 %v4863_v1  ;;  %v4881_v1 = vpack.c.bf16 %v1941_v18, %v1940_v62 }
 0x2c4   :  { %4866 = vmatprep.subr.bf16.mxu0 %v4865_v2  ;;  %v1925_v2 = vld [vmem:[%s6683_s5 + $0x108] sm:$0xff] }
 0x2c5   :  { %4828 = vmatpush1.bf16.msra.mxu1 %v4827_v4  ;;  %v4883_v4 = vpack.c.bf16 %v1925_v2, %v1924_v0 }
 0x2c6   :  { %4830 = vmatprep.subr.bf16.mxu1 %v4829_v25  ;;  %v1927_v25 = vld [vmem:[%s6683_s5 + $0x118] sm:$0xff] }
 0x2c7   :  { %4868 = vmatpush3.bf16.msra.mxu0 %v4867_v13  ;;  %v4887_v10 = vpack.c.bf16 %v1927_v25, %v1926_v7  ;;  %v1928_v13 = vld [vmem:[%s6683_s5 + $0x120] sm:$0xff] }
 0x2c8   :  { %4870 = vmatprep.subr.bf16.mxu0 %v4869_v14  ;;  %v1929_v14 = vld [vmem:[%s6683_s5 + $0x128] sm:$0xff] }
 0x2c9   :  { %4832 = vmatpush1.bf16.msra.mxu1 %v4831_v20  ;;  %v4891_v20 = vpack.c.bf16 %v1929_v14, %v1928_v13  ;;  %v2104_v25 = vld [vmem:[#allocation13 + $0x8] sm:$0xff]  ;;  %v2103_v13 = vld [vmem:[#allocation13] sm:$0xff] }
 0x2ca   :  { %4834 = vmatprep.subr.bf16.mxu1 %v4833_v23  ;;  %v1931_v23 = vld [vmem:[%s6683_s5 + $0x138] sm:$0xff] }
 0x2cb   :  { %4872 = vmatpush3.bf16.msra.mxu0 %v4871_v30  ;;  %v4895_v27 = vpack.c.bf16 %v1931_v23, %v1930_v22  ;;  %v1932_v30 = vld [vmem:[%s6683_s5 + $0x140] sm:$0xff] }
 0x2cc   :  { %4874 = vmatprep.subr.bf16.mxu0 %v4873_v31  ;;  %v1933_v31 = vld [vmem:[%s6683_s5 + $0x148] sm:$0xff]  ;;  %v2107_v14 = vld [vmem:[#allocation13 + $0x20] sm:$0xff] }
 0x2cd   :  { %4836 = vmatpush1.bf16.msra.mxu1 %v4835_v32  ;;  %v1950_v32 = vld [vmem:[%s6683_s5 + $0x1d0] sm:$0xff]  ;;  %v4899_v33 = vpack.c.bf16 %v1933_v31, %v1932_v30  ;;  %v4915_v17 = vpack.c.bf16 %v2107_v14, %v2103_v13  ;;  %v2112_v23 = vld [vmem:[#allocation13 + $0x48] sm:$0xff]  ;;  %v2111_v30 = vld [vmem:[#allocation13 + $0x40] sm:$0xff] }
 0x2ce   :  { %4838 = vmatprep.subr.bf16.mxu1 %v4837_v58  ;;  %v1951_v58 = vld [vmem:[%s6683_s5 + $0x1d8] sm:$0xff] }
 0x2cf   :  { %4876 = vmatpush3.bf16.msra.mxu0 %v4875_v55  ;;  %v4901_v35 = vpack.c.bf16 %v1951_v58, %v1950_v32  ;;  %v1298_v55 = vld [vmem:[#allocation10] sm:$0xf]  ;;  %v2115_v31 = vld [vmem:[#allocation13 + $0x60] sm:$0xff] }
 0x2d0   :  { %4878 = vmatprep.subr.bf16.mxu0 %v4877_v41  ;;  %v1303_v56 = vrot.slane %v1298_v55, %v6336_v16  ;;  %v1307_v57 = vrot.slane %v1298_v55, %v6341_v19  ;;  %v1311_v0 = vrot.slane %v1298_v55, %v6355_v29  ;;  %v4919_v58 = vpack.c.bf16 %v2115_v31, %v2111_v30 }
 0x2d1   :  { %4840 = vmatpush1.bf16.msra.mxu1 %v4839_v39  ;;  %v1952_v39 = vld [vmem:[%s6683_s5 + $0x1e0] sm:$0xff] }
 0x2d2   :  { %4842 = vmatprep.subr.bf16.mxu1 %v4841_v43  ;;  %v1953_v43 = vld [vmem:[%s6683_s5 + $0x1e8] sm:$0xff] }
 0x2d3   :  { %v4905_v45 = vpack.c.bf16 %v1953_v43, %v1952_v39  ;;  %v2292_v39 = vld [vmem:[#allocation16 + $0x8] sm:$0xff] }
 0x2d4   :  { %v2300_v43 = vld [vmem:[#allocation16 + $0x48] sm:$0xff] }
 0x2d5   :  { %4844 = vmatpush1.bf16.msra.mxu1 %v4843_v48  ;;  %v4907_v48 = vpack.c.bf16 %v1937_v47, %v1936_v46  ;;  %v2302_v46 = vld [vmem:[#allocation16 + $0x58] sm:$0xff] }
 0x2d6   :  { %4846 = vmatprep.subr.bf16.mxu1 %v4845_v49  ;;  %v1954_v49 = vld [vmem:[%s6683_s5 + $0x1f0] sm:$0xff] }
 0x2d7   :  { %v4909_v51 = vpack.c.bf16 %v1955_v50, %v1954_v49 }
 0x2d9   :  { %4848 = vmatpush1.bf16.msra.mxu1 %v4847_v52  ;;  %v1938_v52 = vld [vmem:[%s6683_s5 + $0x170] sm:$0xff] }
 0x2da   :  { %4882 = vmatprep.subr.bf16.mxu1 %v4881_v1  ;;  %v4911_v54 = vpack.c.bf16 %v1939_v53, %v1938_v52  ;;  %v1315_v1 = vrot.slane %v1298_v55, %v6358_v34  ;;  %v2291_v52 = vld [vmem:[#allocation16] sm:$0xff]  ;;  %v2293_v55 = vld [vmem:[#allocation16 + $0x10] sm:$0xff] }
 0x2db   :  { %v2299_v53 = vld [vmem:[#allocation16 + $0x40] sm:$0xff] }
 0x2dc   :  { %1882 = vmatmul.mubr.f32.vlgmr.msra.gmra.mrb[8].mxu1 %v784_v11  ;;  %v1906_v11 = vld [vmem:[%s6683_s5 + $0x70] sm:$0xff]  ;;  %s6088_s5 = smov [#allocation22]  }
 0x2dd   :  { %v4879_v61 = vpack.c.bf16 %v1907_v60, %v1906_v11  ;;  %4884 = vmatpush3.bf16.msra.mxu1 %v4883_v4  ;;  %s3993_s20 = sshll.u32 %s6088_s5, 4  ;;  %s3994_s20 = int_to_ptr.vmem [resolvable:$true] %s3993_s20 }
 0x2de   :  { %4886 = vmatprep.subr.bf16.mxu1 %v4885_v5  ;;  %s6031_s9 = scalar_lea.vmem %s3994_s20, 256  ;;  %p6036_p13 = scmp.lt.s32.totalorder %s3994_s20, %s3994_s20 }
 0x2df   :  { %4880 = vmatpush3.bf16.msra.mxu0 %v4879_v61  ;;  %p6032_p12 = scmp.ne.s32.totalorder %s3994_s20, %s6031_s9  ;;  %p6037_p0 = scmp.lt.s32.totalorder %s6031_s9, %s6031_s9 }
 0x2e1   :  { %4888 = vmatpush3.bf16.msra.mxu1 %v4887_v10  ;;  %v4913_v10 = vpack.c.bf16 %v2108_v36, %v2104_v25  ;;  %v2317_v25 = vld [vmem:[#allocation16 + $0xd0] sm:$0xff]  ;;  %v2324_v36 = vld [vmem:[#allocation16 + $0x108] sm:$0xff]  ;;  %p6038_p1 = por %p6037_p0, %p6036_p13 }
 0x2e2   :  { %4890 = vmatprep.subr.bf16.mxu1 %v4889_v12  ;;  %v2110_v12 = vld [vmem:[#allocation13 + $0x38] sm:$0xff] }
 0x2e3   :  { %v4921_v15 = vpack.c.bf16 %v2110_v12, %v2106_v8  ;;  %4914 = vmatprep.subr.bf16.mxu0 %v4913_v10  ;;  %v2332_v8 = vld [vmem:[#allocation16 + $0x148] sm:$0xff]  ;;  %v2326_v10 = vld [vmem:[#allocation16 + $0x118] sm:$0xff]  ;;  %p6039_p2 = pnand %p6038_p1, %p6032_p12 }
 0x2e4   :  { %v2334_v12 = vld [vmem:[#allocation16 + $0x158] sm:$0xff] }
 0x2e5   :  { %4892 = vmatpush3.bf16.msra.mxu1 %v4891_v20  ;;  %v2105_v20 = vld [vmem:[#allocation13 + $0x10] sm:$0xff] }
 0x2e6   :  { %4894 = vmatprep.subr.bf16.mxu1 %v4893_v21  ;;  %v2109_v21 = vld [vmem:[#allocation13 + $0x30] sm:$0xff] }
 0x2e7   :  { %v4923_v22 = vpack.c.bf16 %v2109_v21, %v2105_v20  ;;  %v4937_v20 = vpack.c.bf16 %v2332_v8, %v2324_v36  ;;  %v5065_v21 = vpack.c.bf16 %v2334_v12, %v2326_v10  ;;  %v2395_v36 = vld [vmem:[#allocation16 + $0x340] sm:$0xff]  ;;  %v2389_v12 = vld [vmem:[#allocation16 + $0x310] sm:$0xff] }
 0x2e9   :  { %4896 = vmatpush3.bf16.msra.mxu1 %v4895_v27  ;;  %v4917_v27 = vpack.c.bf16 %v2116_v24, %v2112_v23  ;;  %v2333_v23 = vld [vmem:[#allocation16 + $0x150] sm:$0xff]  ;;  %v2340_v24 = vld [vmem:[#allocation16 + $0x188] sm:$0xff] }
 0x2ea   :  { %4898 = vmatprep.subr.bf16.mxu1 %v4897_v28  ;;  %v2118_v28 = vld [vmem:[#allocation13 + $0x78] sm:$0xff] }
 0x2eb   :  { %v4925_v32 = vpack.c.bf16 %v2118_v28, %v2114_v26  ;;  %v2348_v26 = vld [vmem:[#allocation16 + $0x1c8] sm:$0xff]  ;;  %v2350_v28 = vld [vmem:[#allocation16 + $0x1d8] sm:$0xff] }
 0x2ed   :  { %4900 = vmatpush3.bf16.msra.mxu1 %v4899_v33  ;;  %v2113_v33 = vld [vmem:[#allocation13 + $0x50] sm:$0xff] }
 0x2ee   :  { %4902 = vmatprep.subr.bf16.mxu1 %v4901_v35  ;;  %v2117_v35 = vld [vmem:[#allocation13 + $0x70] sm:$0xff] }
 0x2ef   :  { %v4927_v38 = vpack.c.bf16 %v2117_v35, %v2113_v33  ;;  %v4941_v33 = vpack.c.bf16 %v2348_v26, %v2340_v24  ;;  %v2411_v24 = vld [vmem:[#allocation16 + $0x3c0] sm:$0xff] }
 0x2f1   :  { %4904 = vmatpush3.bf16.msra.mxu1 %v4903_v44  ;;  %v2294_v44 = vld [vmem:[#allocation16 + $0x18] sm:$0xff] }
 0x2f2   :  { %4906 = vmatprep.subr.bf16.mxu1 %v4905_v45  ;;  %v4929_v45 = vpack.c.bf16 %v2300_v43, %v2292_v39  ;;  %v5057_v47 = vpack.c.bf16 %v2302_v46, %v2294_v44  ;;  %v2356_v39 = vld [vmem:[#allocation16 + $0x208] sm:$0xff]  ;;  %v2358_v44 = vld [vmem:[#allocation16 + $0x218] sm:$0xff] }
 0x2f3   :  { %v2364_v43 = vld [vmem:[#allocation16 + $0x248] sm:$0xff] }
 0x2f5   :  { %4908 = vmatpush3.bf16.msra.mxu1 %v4907_v48 }
 0x2f6   :  { %4910 = vmatprep.subr.bf16.mxu1 %v4909_v51  ;;  %v4008_v51 = vld [vmem:[#allocation11] ss:$0 sm:$0xff] }
 0x2f9   :  { %4912 = vmatpush3.bf16.msra.mxu1 %v4911_v54 }
 0x2fa   :  { %4922 = vmatprep.subr.bf16.mxu1 %v4921_v15  ;;  %v2323_v15 = vld [vmem:[#allocation16 + $0x100] sm:$0xff] }
 0x389   :  { %v1599_v41 = vpop.f32.mrb[0].mxu0 }
 0x38a   :  { %v5697_v11 = vadd.f32 %v1599_v41, %v1303_v56  ;;  %v1601_v60 = vpop.f32.mrb[1].mxu0  ;;  %v2301_v56 = vld [vmem:[#allocation16 + $0x50] sm:$0xff] }
 0x38b   :  { %v5698_v61 = vadd.f32 %v1601_v60, %v1307_v57  ;;  %v2308_v57 = vld [vmem:[#allocation16 + $0x88] sm:$0xff]  ;;  %v2310_v60 = vld [vmem:[#allocation16 + $0x98] sm:$0xff] }
 0x38c   :  { %v1888_v18 = vmax.f32 %v5697_v11, 0.0  ;;  %v2316_v11 = vld [vmem:[#allocation16 + $0xc8] sm:$0xff] }
 0x38d   :  { %v1889_v62 = vmax.f32 %v5698_v61, 0.0  ;;  %v2318_v61 = vld [vmem:[#allocation16 + $0xd8] sm:$0xff] }
 0x38f   :  { %2027 = vmatprep.mubr.f32.mxu0 %v1889_v62 }
 0x390   :  { %2028 = vmatmul.mubr.f32.vlgmr.msra.gmra.mrb[2].mxu0 %v1888_v18 }
 0x391   :  { %4916 = vmatpush1.bf16.msra.mxu0 %v4915_v17  ;;  %2209 = vmatprep.mubr.f32.mxu0 %v6087_v40  ;;  %v2331_v17 = vld [vmem:[#allocation16 + $0x140] sm:$0xff] }
 0x392   :  { %4918 = vmatprep.subr.bf16.mxu0 %v4917_v27  ;;  %v2342_v27 = vld [vmem:[#allocation16 + $0x198] sm:$0xff]  ;;  %v4939_v30 = vpack.c.bf16 %v2331_v17, %v2323_v15  ;;  %v2412_v15 = vld [vmem:[#allocation16 + $0x3c8] sm:$0xff] }
 0x393   :  { %v5069_v35 = vpack.c.bf16 %v2350_v28, %v2342_v27  ;;  %v2406_v17 = vld [vmem:[#allocation16 + $0x398] sm:$0xff]  ;;  %v2405_v28 = vld [vmem:[#allocation16 + $0x390] sm:$0xff] }
 0x395   :  { %4920 = vmatpush1.bf16.msra.mxu0 %v4919_v58  ;;  %v2347_v58 = vld [vmem:[#allocation16 + $0x1c0] sm:$0xff] }
 0x396   :  { %4930 = vmatprep.subr.bf16.mxu0 %v4929_v45  ;;  %v2366_v45 = vld [vmem:[#allocation16 + $0x258] sm:$0xff] }
 0x3af   :  { %v1883_v2 = vpop.f32.mrb[8].mxu1 }
 0x3b0   :  { %v5699_v6 = vadd.f32 %v1883_v2, %v1311_v0  ;;  %v1885_v3 = vpop.f32.mrb[9].mxu1  ;;  %v4931_v0 = vpack.c.bf16 %v2299_v53, %v2291_v52  ;;  %v2307_v2 = vld [vmem:[#allocation16 + $0x80] sm:$0xff]  ;;  %v2357_v52 = vld [vmem:[#allocation16 + $0x210] sm:$0xff] }
 0x3b1   :  { %v5700_v4 = vadd.f32 %v1885_v3, %v1315_v1  ;;  %v5059_v1 = vpack.c.bf16 %v2301_v56, %v2293_v55  ;;  %v2365_v53 = vld [vmem:[#allocation16 + $0x250] sm:$0xff]  ;;  %v2380_v55 = vld [vmem:[#allocation16 + $0x2c8] sm:$0xff]  ;;  %v2374_v56 = vld [vmem:[#allocation16 + $0x298] sm:$0xff] }
 0x3b2   :  { %v1890_v7 = vmax.f32 %v5699_v6, 0.0  ;;  %v2315_v6 = vld [vmem:[#allocation16 + $0xc0] sm:$0xff] }
 0x3b3   :  { %v1891_v5 = vmax.f32 %v5700_v4, 0.0  ;;  %v4933_v4 = vpack.c.bf16 %v2316_v11, %v2308_v57  ;;  %v4935_v13 = vpack.c.bf16 %v2315_v6, %v2307_v2  ;;  %v2382_v57 = vld [vmem:[#allocation16 + $0x2d8] sm:$0xff]  ;;  %v5075_v11 = vpack.c.bf16 %v2365_v53, %v2357_v52  ;;  %v2388_v2 = vld [vmem:[#allocation16 + $0x308] sm:$0xff]  ;;  %v2435_v53 = vld [vmem:[#allocation16 + $0x480] sm:$0xff] }
 0x3b4   :  { %v2396_v6 = vld [vmem:[#allocation16 + $0x348] sm:$0xff] }
 0x3b5   :  { %2097 = vmatprep.mubr.f32.mxu1 %v1891_v5  ;;  %v5061_v5 = vpack.c.bf16 %v2318_v61, %v2310_v60  ;;  %v2371_v60 = vld [vmem:[#allocation16 + $0x280] sm:$0xff]  ;;  %v4953_v8 = vpack.c.bf16 %v2396_v6, %v2388_v2 }
 0x3b6   :  { %2098 = vmatmul.mubr.f32.vlgmr.msra.gmra.mrb[10].mxu1 %v1890_v7  ;;  %v2309_v7 = vld [vmem:[#allocation16 + $0x90] sm:$0xff]  ;;  %v2379_v61 = vld [vmem:[#allocation16 + $0x2c0] sm:$0xff] }
 0x3b7   :  { %4924 = vmatpush1.bf16.msra.mxu1 %v4923_v22  ;;  %2280 = vmatprep.mubr.f32.mxu1 %v6087_v40  ;;  %v5063_v14 = vpack.c.bf16 %v2317_v25, %v2309_v7  ;;  %v2325_v22 = vld [vmem:[#allocation16 + $0x110] sm:$0xff]  ;;  %v2387_v25 = vld [vmem:[#allocation16 + $0x300] sm:$0xff] }
 0x3b8   :  { %4926 = vmatprep.subr.bf16.mxu1 %v4925_v32  ;;  %v5067_v31 = vpack.c.bf16 %v2333_v23, %v2325_v22  ;;  %v2339_v32 = vld [vmem:[#allocation16 + $0x180] sm:$0xff]  ;;  %v2349_v40 = vld [vmem:[#allocation16 + $0x1d0] sm:$0xff] }
 0x3b9   :  { %v4943_v46 = vpack.c.bf16 %v2347_v58, %v2339_v32  ;;  %v2403_v23 = vld [vmem:[#allocation16 + $0x380] sm:$0xff]  ;;  %v2428_v32 = vld [vmem:[#allocation16 + $0x448] sm:$0xff]  ;;  %v2422_v58 = vld [vmem:[#allocation16 + $0x418] sm:$0xff] }
 0x3ba   :  { %v2459_v2 = vld [vmem:[#allocation16 + $0x540] sm:$0xff] }
 0x3bb   :  { %4928 = vmatpush1.bf16.msra.mxu1 %v4927_v38  ;;  %v2341_v38 = vld [vmem:[#allocation16 + $0x190] sm:$0xff] }
 0x3bc   :  { %5058 = vmatprep.subr.bf16.mxu1 %v5057_v47  ;;  %v5071_v47 = vpack.c.bf16 %v2349_v40, %v2341_v38  ;;  %v2419_v40 = vld [vmem:[#allocation16 + $0x400] sm:$0xff] }
 0x463   :  { %v4043_v48 = vpop.f32.mrb[2].mxu0 }
 0x464   :  { %v4044_v49 = vpop.f32.mrb[3].mxu0 }
 0x465   :  { %v4045_v50 = vadd.f32 %v4044_v49, %v4043_v48  ;;  %v2355_v48 = vld [vmem:[#allocation16 + $0x200] sm:$0xff] }
 0x466   :  { %v2363_v49 = vld [vmem:[#allocation16 + $0x240] sm:$0xff] }
 0x467   :  { %v2030_v62 = vadd.f32 %v4045_v50, %v4008_v51  ;;  %v4945_v50 = vpack.c.bf16 %v2364_v43, %v2356_v39  ;;  %v5073_v51 = vpack.c.bf16 %v2366_v45, %v2358_v44  ;;  %v2427_v39 = vld [vmem:[#allocation16 + $0x440] sm:$0xff]  ;;  %v2421_v45 = vld [vmem:[#allocation16 + $0x410] sm:$0xff] }
 0x489   :  { %v4078_v54 = vpop.f32.mrb[10].mxu1 }
 0x48a   :  { %v4079_v41 = vpop.f32.mrb[11].mxu1 }
 0x48b   :  { %v4080_v18 = vadd.f32 %v4079_v41, %v4078_v54  ;;  %v2372_v54 = vld [vmem:[#allocation16 + $0x288] sm:$0xff]  ;;  %v4947_v41 = vpack.c.bf16 %v2363_v49, %v2355_v48  ;;  %v2438_v49 = vld [vmem:[#allocation16 + $0x498] sm:$0xff] }
 0x48c   :  { %v2444_v48 = vld [vmem:[#allocation16 + $0x4c8] sm:$0xff] }
 0x48d   :  { %v2100_v3 = vadd.f32 %v4080_v18, %v2030_v62  ;;  %v4949_v62 = vpack.c.bf16 %v2380_v55, %v2372_v54  ;;  %v5077_v18 = vpack.c.bf16 %v2382_v57, %v2374_v56  ;;  %v2443_v54 = vld [vmem:[#allocation16 + $0x4c0] sm:$0xff]  ;;  %v2437_v57 = vld [vmem:[#allocation16 + $0x490] sm:$0xff] }
 0x48f   :  { %4009 = vmatmul.mubr.msk.f32.vlgmr.msra.gmra.mrb[4].mxu0 %vm2141_vm0, %v2100_v3  ;;  %4010 = vmatmul.mubr.msk.f32.vlgmr.msra.gmra.mrb[12].mxu1 %vm2141_vm0, %v2100_v3  ;;  %v2390_v3 = vld [vmem:[#allocation16 + $0x318] sm:$0xff] }
 0x490   :  { %4932 = vmatpush1.bf16.msra.mxu0 %v4931_v0  ;;  %5060 = vmatpush1.bf16.msra.mxu1 %v5059_v1  ;;  %v2373_v0 = vld [vmem:[#allocation16 + $0x290] sm:$0xff] }
 0x491   :  { %4934 = vmatprep.subr.bf16.mxu0 %v4933_v4  ;;  %5062 = vmatprep.subr.bf16.mxu1 %v5061_v5  ;;  %v2381_v1 = vld [vmem:[#allocation16 + $0x2d0] sm:$0xff]  ;;  %v2398_v4 = vld [vmem:[#allocation16 + $0x358] sm:$0xff]  ;;  %v4951_v5 = vpack.c.bf16 %v2379_v61, %v2371_v60  ;;  %v2460_v60 = vld [vmem:[#allocation16 + $0x548] sm:$0xff] }
 0x492   :  { %v5079_v7 = vpack.c.bf16 %v2381_v1, %v2373_v0  ;;  %v5081_v10 = vpack.c.bf16 %v2398_v4, %v2390_v3  ;;  %v2454_v61 = vld [vmem:[#allocation16 + $0x518] sm:$0xff]  ;;  %v2451_v1 = vld [vmem:[#allocation16 + $0x500] sm:$0xff]  ;;  %v2453_v4 = vld [vmem:[#allocation16 + $0x510] sm:$0xff] }
 0x494   :  { %4936 = vmatpush1.bf16.msra.mxu0 %v4935_v13  ;;  %5064 = vmatpush1.bf16.msra.mxu1 %v5063_v14  ;;  %v2397_v13 = vld [vmem:[#allocation16 + $0x350] sm:$0xff]  ;;  %v2404_v14 = vld [vmem:[#allocation16 + $0x388] sm:$0xff] }
 0x495   :  { %4938 = vmatprep.subr.bf16.mxu0 %v4937_v20  ;;  %5066 = vmatprep.subr.bf16.mxu1 %v5065_v21  ;;  %v2414_v20 = vld [vmem:[#allocation16 + $0x3d8] sm:$0xff]  ;;  %v4955_v21 = vpack.c.bf16 %v2395_v36, %v2387_v25  ;;  %v5083_v22 = vpack.c.bf16 %v2397_v13, %v2389_v12  ;;  %v4957_v26 = vpack.c.bf16 %v2412_v15, %v2404_v14  ;;  %v2476_v25 = vld [vmem:[#allocation16 + $0x5c8] sm:$0xff]  ;;  %v2467_v13 = vld [vmem:[#allocation16 + $0x580] sm:$0xff] }
 0x496   :  { %v5085_v27 = vpack.c.bf16 %v2414_v20, %v2406_v17  ;;  %v2470_v36 = vld [vmem:[#allocation16 + $0x598] sm:$0xff]  ;;  %v2475_v14 = vld [vmem:[#allocation16 + $0x5c0] sm:$0xff]  ;;  %v2469_v20 = vld [vmem:[#allocation16 + $0x590] sm:$0xff] }
 0x498   :  { %4940 = vmatpush1.bf16.msra.mxu0 %v4939_v30  ;;  %5068 = vmatpush1.bf16.msra.mxu1 %v5067_v31  ;;  %v2413_v30 = vld [vmem:[#allocation16 + $0x3d0] sm:$0xff]  ;;  %v2420_v31 = vld [vmem:[#allocation16 + $0x408] sm:$0xff] }
 0x499   :  { %4942 = vmatprep.subr.bf16.mxu0 %v4941_v33  ;;  %5070 = vmatprep.subr.bf16.mxu1 %v5069_v35  ;;  %v2430_v33 = vld [vmem:[#allocation16 + $0x458] sm:$0xff]  ;;  %v4959_v35 = vpack.c.bf16 %v2411_v24, %v2403_v23  ;;  %v5087_v38 = vpack.c.bf16 %v2413_v30, %v2405_v28  ;;  %v4961_v43 = vpack.c.bf16 %v2428_v32, %v2420_v31  ;;  %v2492_v23 = vld [vmem:[#allocation16 + $0x648] sm:$0xff]  ;;  %v2483_v30 = vld [vmem:[#allocation16 + $0x600] sm:$0xff] }
 0x49a   :  { %v5089_v44 = vpack.c.bf16 %v2430_v33, %v2422_v58  ;;  %v2486_v24 = vld [vmem:[#allocation16 + $0x618] sm:$0xff]  ;;  %v2491_v31 = vld [vmem:[#allocation16 + $0x640] sm:$0xff]  ;;  %v2485_v33 = vld [vmem:[#allocation16 + $0x610] sm:$0xff] }
 0x49c   :  { %4944 = vmatpush1.bf16.msra.mxu0 %v4943_v46  ;;  %5072 = vmatpush1.bf16.msra.mxu1 %v5071_v47  ;;  %v2429_v46 = vld [vmem:[#allocation16 + $0x450] sm:$0xff]  ;;  %v2436_v47 = vld [vmem:[#allocation16 + $0x488] sm:$0xff] }
 0x49d   :  { %4946 = vmatprep.subr.bf16.mxu0 %v4945_v50  ;;  %5074 = vmatprep.subr.bf16.mxu1 %v5073_v51  ;;  %v2446_v50 = vld [vmem:[#allocation16 + $0x4d8] sm:$0xff]  ;;  %v4963_v51 = vpack.c.bf16 %v2427_v39, %v2419_v40  ;;  %v5091_v52 = vpack.c.bf16 %v2429_v46, %v2421_v45  ;;  %v4965_v55 = vpack.c.bf16 %v2444_v48, %v2436_v47  ;;  %v2508_v40 = vld [vmem:[#allocation16 + $0x6c8] sm:$0xff]  ;;  %v2499_v46 = vld [vmem:[#allocation16 + $0x680] sm:$0xff] }
 0x49e   :  { %v5093_v56 = vpack.c.bf16 %v2446_v50, %v2438_v49  ;;  %v2502_v39 = vld [vmem:[#allocation16 + $0x698] sm:$0xff]  ;;  %v2507_v47 = vld [vmem:[#allocation16 + $0x6c0] sm:$0xff]  ;;  %v2501_v50 = vld [vmem:[#allocation16 + $0x690] sm:$0xff] }
 0x4a0   :  { %4948 = vmatpush1.bf16.msra.mxu0 %v4947_v41  ;;  %5076 = vmatpush1.bf16.msra.mxu1 %v5075_v11  ;;  %v2445_v41 = vld [vmem:[#allocation16 + $0x4d0] sm:$0xff]  ;;  %v2452_v11 = vld [vmem:[#allocation16 + $0x508] sm:$0xff] }
 0x4a1   :  { %4950 = vmatprep.subr.bf16.mxu0 %v4949_v62  ;;  %5078 = vmatprep.subr.bf16.mxu1 %v5077_v18  ;;  %v2462_v62 = vld [vmem:[#allocation16 + $0x558] sm:$0xff]  ;;  %v4967_v18 = vpack.c.bf16 %v2443_v54, %v2435_v53  ;;  %v5095_v0 = vpack.c.bf16 %v2445_v41, %v2437_v57  ;;  %v4969_v6 = vpack.c.bf16 %v2460_v60, %v2452_v11  ;;  %v2524_v53 = vld [vmem:[#allocation16 + $0x748] sm:$0xff]  ;;  %v2515_v41 = vld [vmem:[#allocation16 + $0x700] sm:$0xff] }
 0x4a2   :  { %v5097_v3 = vpack.c.bf16 %v2462_v62, %v2454_v61  ;;  %v2518_v54 = vld [vmem:[#allocation16 + $0x718] sm:$0xff]  ;;  %v2523_v61 = vld [vmem:[#allocation16 + $0x740] sm:$0xff]  ;;  %v2517_v62 = vld [vmem:[#allocation16 + $0x710] sm:$0xff] }
 0x4a4   :  { %4952 = vmatpush1.bf16.msra.mxu0 %v4951_v5  ;;  %5080 = vmatpush1.bf16.msra.mxu1 %v5079_v7  ;;  %v2461_v5 = vld [vmem:[#allocation16 + $0x550] sm:$0xff]  ;;  %v2468_v7 = vld [vmem:[#allocation16 + $0x588] sm:$0xff] }
 0x4a5   :  { %4954 = vmatprep.subr.bf16.mxu0 %v4953_v8  ;;  %5082 = vmatprep.subr.bf16.mxu1 %v5081_v10  ;;  %v2478_v8 = vld [vmem:[#allocation16 + $0x5d8] sm:$0xff]  ;;  %v4971_v10 = vpack.c.bf16 %v2459_v2, %v2451_v1  ;;  %v5099_v12 = vpack.c.bf16 %v2461_v5, %v2453_v4  ;;  %v4973_v15 = vpack.c.bf16 %v2476_v25, %v2468_v7  ;;  %v2532_v2 = vld [vmem:[#allocation16 + $0x788] sm:$0xff]  ;;  %v2531_v7 = vld [vmem:[#allocation16 + $0x780] sm:$0xff] }
 0x4a6   :  { %v5101_v17 = vpack.c.bf16 %v2478_v8, %v2470_v36  ;;  %v2542_v5 = vld [vmem:[#allocation16 + $0x7d8] sm:$0xff]  ;;  %v2539_v25 = vld [vmem:[#allocation16 + $0x7c0] sm:$0xff] }
 0x4a7   :  { %v4991_v8 = vpack.c.bf16 %v2539_v25, %v2531_v7  ;;  %v2596_v7 = vld [vmem:[#allocation16 + $0x988] sm:$0xff] }
 0x4a8   :  { %4956 = vmatpush1.bf16.msra.mxu0 %v4955_v21  ;;  %5084 = vmatpush1.bf16.msra.mxu1 %v5083_v22  ;;  %v2477_v21 = vld [vmem:[#allocation16 + $0x5d0] sm:$0xff]  ;;  %v2484_v22 = vld [vmem:[#allocation16 + $0x608] sm:$0xff] }
 0x4a9   :  { %4958 = vmatprep.subr.bf16.mxu0 %v4957_v26  ;;  %5086 = vmatprep.subr.bf16.mxu1 %v5085_v27  ;;  %v2494_v26 = vld [vmem:[#allocation16 + $0x658] sm:$0xff]  ;;  %v4975_v27 = vpack.c.bf16 %v2475_v14, %v2467_v13  ;;  %v5103_v28 = vpack.c.bf16 %v2477_v21, %v2469_v20  ;;  %v4977_v32 = vpack.c.bf16 %v2492_v23, %v2484_v22  ;;  %v2548_v14 = vld [vmem:[#allocation16 + $0x808] sm:$0xff] }
 0x4aa   :  { %v5105_v58 = vpack.c.bf16 %v2494_v26, %v2486_v24  ;;  %v2558_v21 = vld [vmem:[#allocation16 + $0x858] sm:$0xff]  ;;  %v2604_v25 = vld [vmem:[#allocation16 + $0x9c8] sm:$0xff] }
 0x4ab   :  { %v6599_v23 = vld [vmem:[#allocation14] sm:$0xf] }
 0x4ac   :  { %4960 = vmatpush1.bf16.msra.mxu0 %v4959_v35  ;;  %5088 = vmatpush1.bf16.msra.mxu1 %v5087_v38  ;;  %v2493_v35 = vld [vmem:[#allocation16 + $0x650] sm:$0xff]  ;;  %v2500_v38 = vld [vmem:[#allocation16 + $0x688] sm:$0xff]  ;;  %v2124_v24 = vrot.slane %v6599_v23, %v6336_v16  ;;  %v2128_v26 = vrot.slane %v6599_v23, %v6341_v19 }
 0x4ad   :  { %4962 = vmatprep.subr.bf16.mxu0 %v4961_v43  ;;  %5090 = vmatprep.subr.bf16.mxu1 %v5089_v44  ;;  %v2510_v43 = vld [vmem:[#allocation16 + $0x6d8] sm:$0xff]  ;;  %v4979_v44 = vpack.c.bf16 %v2491_v31, %v2483_v30  ;;  %v5107_v45 = vpack.c.bf16 %v2493_v35, %v2485_v33  ;;  %v4981_v48 = vpack.c.bf16 %v2508_v40, %v2500_v38  ;;  %v2547_v31 = vld [vmem:[#allocation16 + $0x800] sm:$0xff]  ;;  %v2549_v38 = vld [vmem:[#allocation16 + $0x810] sm:$0xff] }
 0x4ae   :  { %v5109_v49 = vpack.c.bf16 %v2510_v43, %v2502_v39  ;;  %v2555_v35 = vld [vmem:[#allocation16 + $0x840] sm:$0xff]  ;;  %v2557_v40 = vld [vmem:[#allocation16 + $0x850] sm:$0xff]  ;;  %v2564_v43 = vld [vmem:[#allocation16 + $0x888] sm:$0xff] }
 0x4b0   :  { %4964 = vmatpush1.bf16.msra.mxu0 %v4963_v51  ;;  %5092 = vmatpush1.bf16.msra.mxu1 %v5091_v52  ;;  %v2509_v51 = vld [vmem:[#allocation16 + $0x6d0] sm:$0xff]  ;;  %v2516_v52 = vld [vmem:[#allocation16 + $0x708] sm:$0xff] }
 0x4b1   :  { %4966 = vmatprep.subr.bf16.mxu0 %v4965_v55  ;;  %5094 = vmatprep.subr.bf16.mxu1 %v5093_v56  ;;  %v2526_v55 = vld [vmem:[#allocation16 + $0x758] sm:$0xff]  ;;  %v4983_v56 = vpack.c.bf16 %v2507_v47, %v2499_v46  ;;  %v5111_v57 = vpack.c.bf16 %v2509_v51, %v2501_v50  ;;  %v4985_v11 = vpack.c.bf16 %v2524_v53, %v2516_v52  ;;  %v2563_v51 = vld [vmem:[#allocation16 + $0x880] sm:$0xff] }
 0x4b2   :  { %v5113_v60 = vpack.c.bf16 %v2526_v55, %v2518_v54  ;;  %v2566_v46 = vld [vmem:[#allocation16 + $0x898] sm:$0xff]  ;;  %v5123_v50 = vpack.c.bf16 %v2557_v40, %v2549_v38  ;;  %v2571_v52 = vld [vmem:[#allocation16 + $0x8c0] sm:$0xff]  ;;  %v2565_v54 = vld [vmem:[#allocation16 + $0x890] sm:$0xff] }
 0x4b3   :  { %v2574_v47 = vld [vmem:[#allocation16 + $0x8d8] sm:$0xff]  ;;  %v2573_v55 = vld [vmem:[#allocation16 + $0x8d0] sm:$0xff] }
 0x4b4   :  { %4968 = vmatpush1.bf16.msra.mxu0 %v4967_v18  ;;  %5096 = vmatpush1.bf16.msra.mxu1 %v5095_v0  ;;  %v2525_v18 = vld [vmem:[#allocation16 + $0x750] sm:$0xff]  ;;  %v4987_v0 = vpack.c.bf16 %v2523_v61, %v2515_v41  ;;  %v5125_v41 = vpack.c.bf16 %v2574_v47, %v2566_v46  ;;  %v2590_v61 = vld [vmem:[#allocation16 + $0x958] sm:$0xff] }
 0x4b5   :  { %4970 = vmatprep.subr.bf16.mxu0 %v4969_v6  ;;  %5098 = vmatprep.subr.bf16.mxu1 %v5097_v3  ;;  %v5115_v1 = vpack.c.bf16 %v2525_v18, %v2517_v62  ;;  %v2540_v6 = vld [vmem:[#allocation16 + $0x7c8] sm:$0xff]  ;;  %v2534_v3 = vld [vmem:[#allocation16 + $0x798] sm:$0xff]  ;;  %v4999_v18 = vpack.c.bf16 %v2571_v52, %v2563_v51  ;;  %v2613_v38 = vld [vmem:[#allocation16 + $0xa10] sm:$0xff] }
 0x4b6   :  { %v4989_v4 = vpack.c.bf16 %v2540_v6, %v2532_v2  ;;  %v5117_v36 = vpack.c.bf16 %v2542_v5, %v2534_v3  ;;  %v2587_v2 = vld [vmem:[#allocation16 + $0x940] sm:$0xff]  ;;  %v2589_v5 = vld [vmem:[#allocation16 + $0x950] sm:$0xff] }
 0x4b7   :  { %v2621_v40 = vld [vmem:[#allocation16 + $0xa50] sm:$0xff] }
 0x4b8   :  { %4972 = vmatpush1.bf16.msra.mxu0 %v4971_v10  ;;  %5100 = vmatpush1.bf16.msra.mxu1 %v5099_v12  ;;  %v2533_v10 = vld [vmem:[#allocation16 + $0x790] sm:$0xff]  ;;  %v5139_v47 = vpack.c.bf16 %v2621_v40, %v2613_v38  ;;  %v2692_v38 = vld [vmem:[#allocation16 + $0xc88] sm:$0xff] }
 0x4b9   :  { %4974 = vmatprep.subr.bf16.mxu0 %v4973_v15  ;;  %5102 = vmatprep.subr.bf16.mxu1 %v5101_v17  ;;  %v2541_v12 = vld [vmem:[#allocation16 + $0x7d0] sm:$0xff]  ;;  %v2556_v15 = vld [vmem:[#allocation16 + $0x848] sm:$0xff]  ;;  %v2550_v17 = vld [vmem:[#allocation16 + $0x818] sm:$0xff] }
 0x4ba   :  { %v5119_v13 = vpack.c.bf16 %v2541_v12, %v2533_v10  ;;  %v4993_v20 = vpack.c.bf16 %v2556_v15, %v2548_v14  ;;  %v5121_v22 = vpack.c.bf16 %v2558_v21, %v2550_v17  ;;  %v2603_v14 = vld [vmem:[#allocation16 + $0x9c0] sm:$0xff]  ;;  %v5005_v15 = vpack.c.bf16 %v2604_v25, %v2596_v7  ;;  %v2605_v21 = vld [vmem:[#allocation16 + $0x9d0] sm:$0xff]  ;;  %v2662_v7 = vld [vmem:[#allocation16 + $0xb98] sm:$0xff] }
 0x4bb   :  { %v2670_v25 = vld [vmem:[#allocation16 + $0xbd8] sm:$0xff]  ;;  %v2700_v40 = vld [vmem:[#allocation16 + $0xcc8] sm:$0xff] }
 0x4bc   :  { %4976 = vmatpush1.bf16.msra.mxu0 %v4975_v27  ;;  %5104 = vmatpush1.bf16.msra.mxu1 %v5103_v28  ;;  %v2136_v27 = vrot.slane %v6599_v23, %v6358_v34 }
 0x4bd   :  { %4978 = vmatprep.subr.bf16.mxu0 %v4977_v32  ;;  %5106 = vmatprep.subr.bf16.mxu1 %v5105_v58 }
 0x4c0   :  { %4980 = vmatpush1.bf16.msra.mxu0 %v4979_v44  ;;  %5108 = vmatpush1.bf16.msra.mxu1 %v5107_v45  ;;  %v2572_v45 = vld [vmem:[#allocation16 + $0x8c8] sm:$0xff] }
 0x4c1   :  { %4982 = vmatprep.subr.bf16.mxu0 %v4981_v48  ;;  %5110 = vmatprep.subr.bf16.mxu1 %v5109_v49  ;;  %v4995_v49 = vpack.c.bf16 %v2555_v35, %v2547_v31 }
 0x4c4   :  { %4984 = vmatpush1.bf16.msra.mxu0 %v4983_v56  ;;  %5112 = vmatpush1.bf16.msra.mxu1 %v5111_v57  ;;  %v2580_v56 = vld [vmem:[#allocation16 + $0x908] sm:$0xff]  ;;  %v4997_v57 = vpack.c.bf16 %v2572_v45, %v2564_v43  ;;  %v2638_v45 = vld [vmem:[#allocation16 + $0xad8] sm:$0xff] }
 0x4c5   :  { %4986 = vmatprep.subr.bf16.mxu0 %v4985_v11  ;;  %5114 = vmatprep.subr.bf16.mxu1 %v5113_v60  ;;  %v2588_v11 = vld [vmem:[#allocation16 + $0x948] sm:$0xff]  ;;  %v2582_v60 = vld [vmem:[#allocation16 + $0x918] sm:$0xff] }
 0x4c6   :  { %v5001_v6 = vpack.c.bf16 %v2588_v11, %v2580_v56  ;;  %v5129_v3 = vpack.c.bf16 %v2590_v61, %v2582_v60  ;;  %v2636_v43 = vld [vmem:[#allocation16 + $0xac8] sm:$0xff]  ;;  %v2654_v11 = vld [vmem:[#allocation16 + $0xb58] sm:$0xff] }
 0x4c7   :  { %v2644_v56 = vld [vmem:[#allocation16 + $0xb08] sm:$0xff] }
 0x4c8   :  { %4988 = vmatpush1.bf16.msra.mxu0 %v4987_v0  ;;  %5116 = vmatpush1.bf16.msra.mxu1 %v5115_v1  ;;  %v5127_v0 = vpack.c.bf16 %v2573_v55, %v2565_v54  ;;  %v2579_v1 = vld [vmem:[#allocation16 + $0x900] sm:$0xff]  ;;  %v2629_v54 = vld [vmem:[#allocation16 + $0xa90] sm:$0xff] }
 0x4c9   :  { %4990 = vmatprep.subr.bf16.mxu0 %v4989_v4  ;;  %5118 = vmatprep.subr.bf16.mxu1 %v5117_v36  ;;  %v2581_v4 = vld [vmem:[#allocation16 + $0x910] sm:$0xff]  ;;  %v2598_v36 = vld [vmem:[#allocation16 + $0x998] sm:$0xff]  ;;  %v5003_v10 = vpack.c.bf16 %v2587_v2, %v2579_v1 }
 0x4ca   :  { %v5131_v12 = vpack.c.bf16 %v2589_v5, %v2581_v4  ;;  %v2637_v55 = vld [vmem:[#allocation16 + $0xad0] sm:$0xff]  ;;  %v2660_v4 = vld [vmem:[#allocation16 + $0xb88] sm:$0xff] }
 0x4cb   :  { %v5143_v61 = vpack.c.bf16 %v2637_v55, %v2629_v54  ;;  %v2668_v5 = vld [vmem:[#allocation16 + $0xbc8] sm:$0xff] }
 0x4cc   :  { %4992 = vmatpush1.bf16.msra.mxu0 %v4991_v8  ;;  %5120 = vmatpush1.bf16.msra.mxu1 %v5119_v13  ;;  %v2606_v8 = vld [vmem:[#allocation16 + $0x9d8] sm:$0xff]  ;;  %v2595_v13 = vld [vmem:[#allocation16 + $0x980] sm:$0xff]  ;;  %v2708_v54 = vld [vmem:[#allocation16 + $0xd08] sm:$0xff] }
 0x4cd   :  { %4994 = vmatprep.subr.bf16.mxu0 %v4993_v20  ;;  %5122 = vmatprep.subr.bf16.mxu1 %v5121_v22  ;;  %v5133_v17 = vpack.c.bf16 %v2606_v8, %v2598_v36  ;;  %v2597_v20 = vld [vmem:[#allocation16 + $0x990] sm:$0xff]  ;;  %v2612_v22 = vld [vmem:[#allocation16 + $0xa08] sm:$0xff] }
 0x4ce   :  { %v5135_v31 = vpack.c.bf16 %v2605_v21, %v2597_v20  ;;  %v2676_v20 = vld [vmem:[#allocation16 + $0xc08] sm:$0xff] }
 0x4cf   :  { %v2684_v21 = vld [vmem:[#allocation16 + $0xc48] sm:$0xff] }
 0x4d0   :  { %v2716_v55 = vld [vmem:[#allocation16 + $0xd48] sm:$0xff] }
 0x562   :  { %v2211_v28 = vpop.f32.mrb[4].mxu0  ;;  %v6607_v30 = vpop.f32.mrb[12].mxu1 }
 0x563   :  { %v2212_v32 = vadd.f32 %v2211_v28, %v2124_v24  ;;  %v2213_v58 = vpop.f32.mrb[5].mxu0  ;;  %v2284_v33 = vpop.f32.mrb[13].mxu1  ;;  %v2620_v24 = vld [vmem:[#allocation16 + $0xa48] sm:$0xff]  ;;  %v5007_v28 = vpack.c.bf16 %v2603_v14, %v2595_v13  ;;  %v5021_v13 = vpack.c.bf16 %v2668_v5, %v2660_v4  ;;  %v5149_v14 = vpack.c.bf16 %v2670_v25, %v2662_v7  ;;  %v2726_v4 = vld [vmem:[#allocation16 + $0xd98] sm:$0xff] }
 0x564   :  { %v2214_v39 = vadd.f32 %v2213_v58, %v2128_v26  ;;  %v2285_v44 = vadd.f32 %v2284_v33, %v2136_v27  ;;  %v2614_v26 = vld [vmem:[#allocation16 + $0xa18] sm:$0xff]  ;;  %v2619_v58 = vld [vmem:[#allocation16 + $0xa40] sm:$0xff]  ;;  %v5009_v33 = vpack.c.bf16 %v2620_v24, %v2612_v22 }
 0x565   :  { %v6611_v53 = vmax.f32 %v2212_v32, 0.0  ;;  %v2622_v27 = vld [vmem:[#allocation16 + $0xa58] sm:$0xff]  ;;  %v2611_v32 = vld [vmem:[#allocation16 + $0xa00] sm:$0xff] }
 0x566   :  { %v6609_v48 = vmax.f32 %v2214_v39, 0.0  ;;  %v6615_v62 = vmax.f32 %v2285_v44, 0.0  ;;  %v5137_v35 = vpack.c.bf16 %v2622_v27, %v2614_v26  ;;  %v2628_v39 = vld [vmem:[#allocation16 + $0xa88] sm:$0xff]  ;;  %v2630_v44 = vld [vmem:[#allocation16 + $0xa98] sm:$0xff]  ;;  %v5011_v46 = vpack.c.bf16 %v2619_v58, %v2611_v32 }
 0x567   :  { %v5013_v51 = vpack.c.bf16 %v2636_v43, %v2628_v39  ;;  %v5141_v52 = vpack.c.bf16 %v2638_v45, %v2630_v44  ;;  %v2678_v22 = vld [vmem:[#allocation16 + $0xc18] sm:$0xff]  ;;  %v5025_v32 = vpack.c.bf16 %v2684_v21, %v2676_v20 }
 0x568   :  { %2909 = vmatprep.mubr.f32.mxu0 %v6609_v48  ;;  %3051 = vmatprep.mubr.f32.mxu1 %v6609_v48  ;;  %v2686_v24 = vld [vmem:[#allocation16 + $0xc58] sm:$0xff] }
 0x569   :  { %2910 = vmatmul.mubr.f32.vlgmr.msra.gmra.mrb[6].mxu0 %v6611_v53  ;;  %3052 = vmatmul.mubr.f32.vlgmr.msra.gmra.mrb[14].mxu1 %v6611_v53  ;;  %v5153_v58 = vpack.c.bf16 %v2686_v24, %v2678_v22  ;;  %v2694_v39 = vld [vmem:[#allocation16 + $0xc98] sm:$0xff] }
 0x56a   :  { %4996 = vmatpush1.bf16.msra.mxu0 %v4995_v49  ;;  %5124 = vmatpush1.bf16.msra.mxu1 %v5123_v50  ;;  %v2627_v49 = vld [vmem:[#allocation16 + $0xa80] sm:$0xff]  ;;  %v2702_v43 = vld [vmem:[#allocation16 + $0xcd8] sm:$0xff] }
 0x56b   :  { %2980 = vmatprep.mubr.f32.mxu0 %v6615_v62  ;;  %3122 = vmatprep.mubr.f32.mxu1 %v6615_v62  ;;  %v2635_v50 = vld [vmem:[#allocation16 + $0xac0] sm:$0xff]  ;;  %v2734_v5 = vld [vmem:[#allocation16 + $0xdd8] sm:$0xff] }
 0x56c   :  { %4998 = vmatprep.subr.bf16.mxu0 %v4997_v57  ;;  %5126 = vmatprep.subr.bf16.mxu1 %v5125_v41  ;;  %v2652_v57 = vld [vmem:[#allocation16 + $0xb48] sm:$0xff]  ;;  %v2646_v41 = vld [vmem:[#allocation16 + $0xb18] sm:$0xff]  ;;  %v5015_v60 = vpack.c.bf16 %v2635_v50, %v2627_v49  ;;  %v5029_v49 = vpack.c.bf16 %v2700_v40, %v2692_v38  ;;  %v5157_v50 = vpack.c.bf16 %v2702_v43, %v2694_v39 }
 0x56d   :  { %v5017_v1 = vpack.c.bf16 %v2652_v57, %v2644_v56  ;;  %v5145_v2 = vpack.c.bf16 %v2654_v11, %v2646_v41  ;;  %v2710_v56 = vld [vmem:[#allocation16 + $0xd18] sm:$0xff] }
 0x56e   :  { %5000 = vmatpush1.bf16.msra.mxu0 %v4999_v18  ;;  %5128 = vmatpush1.bf16.msra.mxu1 %v5127_v0  ;;  %v2643_v18 = vld [vmem:[#allocation16 + $0xb00] sm:$0xff]  ;;  %v2718_v57 = vld [vmem:[#allocation16 + $0xd58] sm:$0xff] }
 0x56f   :  { %5002 = vmatprep.subr.bf16.mxu0 %v5001_v6  ;;  %5130 = vmatprep.subr.bf16.mxu1 %v5129_v3  ;;  %v2651_v0 = vld [vmem:[#allocation16 + $0xb40] sm:$0xff]  ;;  %v2645_v6 = vld [vmem:[#allocation16 + $0xb10] sm:$0xff]  ;;  %v2742_v20 = vld [vmem:[#allocation16 + $0xe18] sm:$0xff] }
 0x570   :  { %v2653_v3 = vld [vmem:[#allocation16 + $0xb50] sm:$0xff]  ;;  %v5019_v36 = vpack.c.bf16 %v2651_v0, %v2643_v18  ;;  %v5033_v18 = vpack.c.bf16 %v2716_v55, %v2708_v54  ;;  %v5161_v0 = vpack.c.bf16 %v2718_v57, %v2710_v56  ;;  %v2750_v21 = vld [vmem:[#allocation16 + $0xe58] sm:$0xff] }
 0x571   :  { %v5147_v8 = vpack.c.bf16 %v2653_v3, %v2645_v6  ;;  %v2724_v6 = vld [vmem:[#allocation16 + $0xd88] sm:$0xff]  ;;  %v2758_v38 = vld [vmem:[#allocation16 + $0xe98] sm:$0xff] }
 0x572   :  { %5004 = vmatpush1.bf16.msra.mxu0 %v5003_v10  ;;  %5132 = vmatpush1.bf16.msra.mxu1 %v5131_v12  ;;  %v2659_v10 = vld [vmem:[#allocation16 + $0xb80] sm:$0xff]  ;;  %v2732_v3 = vld [vmem:[#allocation16 + $0xdc8] sm:$0xff]  ;;  %v2766_v40 = vld [vmem:[#allocation16 + $0xed8] sm:$0xff] }
 0x573   :  { %5006 = vmatprep.subr.bf16.mxu0 %v5005_v15  ;;  %5134 = vmatprep.subr.bf16.mxu1 %v5133_v17  ;;  %v2667_v12 = vld [vmem:[#allocation16 + $0xbc0] sm:$0xff]  ;;  %v2661_v15 = vld [vmem:[#allocation16 + $0xb90] sm:$0xff]  ;;  %v2774_v54 = vld [vmem:[#allocation16 + $0xf18] sm:$0xff] }
 0x574   :  { %v2669_v17 = vld [vmem:[#allocation16 + $0xbd0] sm:$0xff]  ;;  %v5023_v26 = vpack.c.bf16 %v2667_v12, %v2659_v10  ;;  %v5037_v10 = vpack.c.bf16 %v2732_v3, %v2724_v6  ;;  %v5165_v12 = vpack.c.bf16 %v2734_v5, %v2726_v4  ;;  %v2782_v55 = vld [vmem:[#allocation16 + $0xf58] sm:$0xff] }
 0x575   :  { %v5151_v27 = vpack.c.bf16 %v2669_v17, %v2661_v15  ;;  %v2740_v15 = vld [vmem:[#allocation16 + $0xe08] sm:$0xff]  ;;  %v2790_v6 = vld [vmem:[#allocation16 + $0xf98] sm:$0xff] }
 0x576   :  { %5008 = vmatpush1.bf16.msra.mxu0 %v5007_v28  ;;  %5136 = vmatpush1.bf16.msra.mxu1 %v5135_v31  ;;  %v2675_v28 = vld [vmem:[#allocation16 + $0xc00] sm:$0xff]  ;;  %v2748_v17 = vld [vmem:[#allocation16 + $0xe48] sm:$0xff]  ;;  %v2798_v3 = vld [vmem:[#allocation16 + $0xfd8] sm:$0xff] }
 0x577   :  { %5010 = vmatprep.subr.bf16.mxu0 %v5009_v33  ;;  %5138 = vmatprep.subr.bf16.mxu1 %v5137_v35  ;;  %v2683_v31 = vld [vmem:[#allocation16 + $0xc40] sm:$0xff]  ;;  %v2677_v33 = vld [vmem:[#allocation16 + $0xc10] sm:$0xff] }
 0x578   :  { %v2685_v35 = vld [vmem:[#allocation16 + $0xc50] sm:$0xff]  ;;  %v5027_v44 = vpack.c.bf16 %v2683_v31, %v2675_v28  ;;  %v5041_v28 = vpack.c.bf16 %v2748_v17, %v2740_v15  ;;  %v5169_v31 = vpack.c.bf16 %v2750_v21, %v2742_v20  ;;  %v2304_v15 = vld [vmem:[#allocation16 + $0x68] sm:$0xff]  ;;  %v2298_v17 = vld [vmem:[#allocation16 + $0x38] sm:$0xff] }
 0x579   :  { %v5155_v45 = vpack.c.bf16 %v2685_v35, %v2677_v33  ;;  %v2756_v33 = vld [vmem:[#allocation16 + $0xe88] sm:$0xff]  ;;  %v2306_v20 = vld [vmem:[#allocation16 + $0x78] sm:$0xff] }
 0x57a   :  { %5012 = vmatpush1.bf16.msra.mxu0 %v5011_v46  ;;  %5140 = vmatpush1.bf16.msra.mxu1 %v5139_v47  ;;  %v2691_v46 = vld [vmem:[#allocation16 + $0xc80] sm:$0xff]  ;;  %v2764_v35 = vld [vmem:[#allocation16 + $0xec8] sm:$0xff] }
 0x57b   :  { %5014 = vmatprep.subr.bf16.mxu0 %v5013_v51  ;;  %5142 = vmatprep.subr.bf16.mxu1 %v5141_v52  ;;  %v2699_v47 = vld [vmem:[#allocation16 + $0xcc0] sm:$0xff]  ;;  %v2693_v51 = vld [vmem:[#allocation16 + $0xc90] sm:$0xff] }
 0x57c   :  { %v2701_v52 = vld [vmem:[#allocation16 + $0xcd0] sm:$0xff]  ;;  %v5031_v41 = vpack.c.bf16 %v2699_v47, %v2691_v46  ;;  %v5045_v46 = vpack.c.bf16 %v2764_v35, %v2756_v33  ;;  %v5173_v47 = vpack.c.bf16 %v2766_v40, %v2758_v38  ;;  %v2320_v33 = vld [vmem:[#allocation16 + $0xe8] sm:$0xff]  ;;  %v2314_v35 = vld [vmem:[#allocation16 + $0xb8] sm:$0xff] }
 0x57d   :  { %v5159_v11 = vpack.c.bf16 %v2701_v52, %v2693_v51  ;;  %v2772_v51 = vld [vmem:[#allocation16 + $0xf08] sm:$0xff]  ;;  %v2322_v38 = vld [vmem:[#allocation16 + $0xf8] sm:$0xff] }
 0x57e   :  { %5016 = vmatpush1.bf16.msra.mxu0 %v5015_v60  ;;  %5144 = vmatpush1.bf16.msra.mxu1 %v5143_v61  ;;  %v2707_v60 = vld [vmem:[#allocation16 + $0xd00] sm:$0xff]  ;;  %v2780_v52 = vld [vmem:[#allocation16 + $0xf48] sm:$0xff] }
 0x57f   :  { %5018 = vmatprep.subr.bf16.mxu0 %v5017_v1  ;;  %5146 = vmatprep.subr.bf16.mxu1 %v5145_v2  ;;  %v2715_v61 = vld [vmem:[#allocation16 + $0xd40] sm:$0xff]  ;;  %v2709_v1 = vld [vmem:[#allocation16 + $0xd10] sm:$0xff] }
 0x580   :  { %v2717_v2 = vld [vmem:[#allocation16 + $0xd50] sm:$0xff]  ;;  %v5035_v7 = vpack.c.bf16 %v2715_v61, %v2707_v60  ;;  %v5049_v60 = vpack.c.bf16 %v2780_v52, %v2772_v51  ;;  %v5177_v61 = vpack.c.bf16 %v2782_v55, %v2774_v54  ;;  %v2336_v51 = vld [vmem:[#allocation16 + $0x168] sm:$0xff]  ;;  %v2330_v52 = vld [vmem:[#allocation16 + $0x138] sm:$0xff] }
 0x581   :  { %v5163_v25 = vpack.c.bf16 %v2717_v2, %v2709_v1  ;;  %v2788_v1 = vld [vmem:[#allocation16 + $0xf88] sm:$0xff]  ;;  %v2338_v54 = vld [vmem:[#allocation16 + $0x178] sm:$0xff] }
 0x582   :  { %5020 = vmatpush1.bf16.msra.mxu0 %v5019_v36  ;;  %5148 = vmatpush1.bf16.msra.mxu1 %v5147_v8  ;;  %v2723_v36 = vld [vmem:[#allocation16 + $0xd80] sm:$0xff]  ;;  %v2796_v2 = vld [vmem:[#allocation16 + $0xfc8] sm:$0xff] }
 0x583   :  { %5022 = vmatprep.subr.bf16.mxu0 %v5021_v13  ;;  %5150 = vmatprep.subr.bf16.mxu1 %v5149_v14  ;;  %v2731_v8 = vld [vmem:[#allocation16 + $0xdc0] sm:$0xff]  ;;  %v2725_v13 = vld [vmem:[#allocation16 + $0xd90] sm:$0xff] }
 0x584   :  { %v2733_v14 = vld [vmem:[#allocation16 + $0xdd0] sm:$0xff]  ;;  %v5039_v22 = vpack.c.bf16 %v2731_v8, %v2723_v36  ;;  %v2132_v36 = vrot.slane %v6599_v23, %v6355_v29  ;;  %v5053_v8 = vpack.c.bf16 %v2796_v2, %v2788_v1  ;;  %v5313_v23 = vpack.c.bf16 %v2306_v20, %v2298_v17  ;;  %v2352_v1 = vld [vmem:[#allocation16 + $0x1e8] sm:$0xff]  ;;  %v2346_v2 = vld [vmem:[#allocation16 + $0x1b8] sm:$0xff] }
 0x585   :  { %v5167_v24 = vpack.c.bf16 %v2733_v14, %v2725_v13  ;;  %v2797_v13 = vld [vmem:[#allocation16 + $0xfd0] sm:$0xff]  ;;  %v2296_v14 = vld [vmem:[#allocation16 + $0x28] sm:$0xff] }
 0x586   :  { %5024 = vmatpush1.bf16.msra.mxu0 %v5023_v26  ;;  %5152 = vmatpush1.bf16.msra.mxu1 %v5151_v27  ;;  %v2739_v26 = vld [vmem:[#allocation16 + $0xe00] sm:$0xff] }
 0x587   :  { %5026 = vmatprep.subr.bf16.mxu0 %v5025_v32  ;;  %5154 = vmatprep.subr.bf16.mxu1 %v5153_v58  ;;  %v2747_v27 = vld [vmem:[#allocation16 + $0xe40] sm:$0xff]  ;;  %v2741_v32 = vld [vmem:[#allocation16 + $0xe10] sm:$0xff] }
 0x588   :  { %v2749_v58 = vld [vmem:[#allocation16 + $0xe50] sm:$0xff]  ;;  %v5043_v39 = vpack.c.bf16 %v2747_v27, %v2739_v26  ;;  %v5185_v26 = vpack.c.bf16 %v2304_v15, %v2296_v14  ;;  %v2295_v27 = vld [vmem:[#allocation16 + $0x20] sm:$0xff]  ;;  %v2370_v14 = vld [vmem:[#allocation16 + $0x278] sm:$0xff] }
 0x589   :  { %v5171_v43 = vpack.c.bf16 %v2749_v58, %v2741_v32  ;;  %v2305_v32 = vld [vmem:[#allocation16 + $0x70] sm:$0xff]  ;;  %v2312_v58 = vld [vmem:[#allocation16 + $0xa8] sm:$0xff] }
 0x58a   :  { %5028 = vmatpush1.bf16.msra.mxu0 %v5027_v44  ;;  %5156 = vmatpush1.bf16.msra.mxu1 %v5155_v45  ;;  %v2755_v44 = vld [vmem:[#allocation16 + $0xe80] sm:$0xff] }
 0x58b   :  { %5030 = vmatprep.subr.bf16.mxu0 %v5029_v49  ;;  %5158 = vmatprep.subr.bf16.mxu1 %v5157_v50  ;;  %v2763_v45 = vld [vmem:[#allocation16 + $0xec0] sm:$0xff]  ;;  %v2757_v49 = vld [vmem:[#allocation16 + $0xe90] sm:$0xff] }
 0x58c   :  { %v2765_v50 = vld [vmem:[#allocation16 + $0xed0] sm:$0xff]  ;;  %v5047_v56 = vpack.c.bf16 %v2763_v45, %v2755_v44  ;;  %v2319_v44 = vld [vmem:[#allocation16 + $0xe0] sm:$0xff] }
 0x58d   :  { %v5175_v57 = vpack.c.bf16 %v2765_v50, %v2757_v49  ;;  %v2313_v45 = vld [vmem:[#allocation16 + $0xb0] sm:$0xff]  ;;  %v2328_v50 = vld [vmem:[#allocation16 + $0x128] sm:$0xff] }
 0x58e   :  { %5032 = vmatpush1.bf16.msra.mxu0 %v5031_v41  ;;  %5160 = vmatpush1.bf16.msra.mxu1 %v5159_v11  ;;  %v2771_v41 = vld [vmem:[#allocation16 + $0xf00] sm:$0xff]  ;;  %v2321_v49 = vld [vmem:[#allocation16 + $0xf0] sm:$0xff] }
 0x58f   :  { %5034 = vmatprep.subr.bf16.mxu0 %v5033_v18  ;;  %5162 = vmatprep.subr.bf16.mxu1 %v5161_v0  ;;  %v2779_v11 = vld [vmem:[#allocation16 + $0xf40] sm:$0xff]  ;;  %v2773_v18 = vld [vmem:[#allocation16 + $0xf10] sm:$0xff] }
 0x590   :  { %v2781_v0 = vld [vmem:[#allocation16 + $0xf50] sm:$0xff]  ;;  %v5051_v4 = vpack.c.bf16 %v2779_v11, %v2771_v41  ;;  %v2327_v41 = vld [vmem:[#allocation16 + $0x120] sm:$0xff] }
 0x591   :  { %v5179_v5 = vpack.c.bf16 %v2781_v0, %v2773_v18  ;;  %v2335_v11 = vld [vmem:[#allocation16 + $0x160] sm:$0xff]  ;;  %v2337_v18 = vld [vmem:[#allocation16 + $0x170] sm:$0xff]  ;;  %v2344_v0 = vld [vmem:[#allocation16 + $0x1a8] sm:$0xff] }
 0x592   :  { %5036 = vmatpush1.bf16.msra.mxu0 %v5035_v7  ;;  %5164 = vmatpush1.bf16.msra.mxu1 %v5163_v25  ;;  %v2787_v7 = vld [vmem:[#allocation16 + $0xf80] sm:$0xff] }
 0x593   :  { %5038 = vmatprep.subr.bf16.mxu0 %v5037_v10  ;;  %5166 = vmatprep.subr.bf16.mxu1 %v5165_v12  ;;  %v2795_v25 = vld [vmem:[#allocation16 + $0xfc0] sm:$0xff]  ;;  %v5181_v10 = vpack.c.bf16 %v2798_v3, %v2790_v6  ;;  %v2789_v12 = vld [vmem:[#allocation16 + $0xf90] sm:$0xff]  ;;  %v2354_v6 = vld [vmem:[#allocation16 + $0x1f8] sm:$0xff]  ;;  %v5195_v3 = vpack.c.bf16 %v2335_v11, %v2327_v41 }
 0x594   :  { %v5055_v21 = vpack.c.bf16 %v2795_v25, %v2787_v7  ;;  %v2351_v7 = vld [vmem:[#allocation16 + $0x1e0] sm:$0xff]  ;;  %v2345_v25 = vld [vmem:[#allocation16 + $0x1b0] sm:$0xff]  ;;  %v2408_v11 = vld [vmem:[#allocation16 + $0x3a8] sm:$0xff] }
 0x595   :  { %v2401_v41 = vld [vmem:[#allocation16 + $0x370] sm:$0xff] }
 0x596   :  { %5040 = vmatpush1.bf16.msra.mxu0 %v5039_v22  ;;  %5168 = vmatpush1.bf16.msra.mxu1 %v5167_v24  ;;  %v5183_v22 = vpack.c.bf16 %v2797_v13, %v2789_v12  ;;  %v2283_v24 = vadd.f32 %v6607_v30, %v2132_v36  ;;  %v5325_v36 = vpack.c.bf16 %v2354_v6, %v2346_v2  ;;  %v2368_v12 = vld [vmem:[#allocation16 + $0x268] sm:$0xff]  ;;  %v2362_v13 = vld [vmem:[#allocation16 + $0x238] sm:$0xff]  ;;  %v2407_v6 = vld [vmem:[#allocation16 + $0x3a0] sm:$0xff] }
 0x597   :  { %5042 = vmatprep.subr.bf16.mxu0 %v5041_v28  ;;  %5170 = vmatprep.subr.bf16.mxu1 %v5169_v31  ;;  %v2303_v28 = vld [vmem:[#allocation16 + $0x60] sm:$0xff]  ;;  %v2297_v31 = vld [vmem:[#allocation16 + $0x30] sm:$0xff] }
 0x598   :  { %v5187_v40 = vpack.c.bf16 %v2303_v28, %v2295_v27  ;;  %v5315_v30 = vpack.c.bf16 %v2305_v32, %v2297_v31  ;;  %v2376_v27 = vld [vmem:[#allocation16 + $0x2a8] sm:$0xff]  ;;  %v2378_v31 = vld [vmem:[#allocation16 + $0x2b8] sm:$0xff] }
 0x599   :  { %v2384_v28 = vld [vmem:[#allocation16 + $0x2e8] sm:$0xff]  ;;  %v2386_v32 = vld [vmem:[#allocation16 + $0x2f8] sm:$0xff] }
 0x59a   :  { %5044 = vmatpush1.bf16.msra.mxu0 %v5043_v39  ;;  %5172 = vmatpush1.bf16.msra.mxu1 %v5171_v43  ;;  %v6624_v39 = vmax.f32 %v2283_v24, 0.0  ;;  %v2311_v43 = vld [vmem:[#allocation16 + $0xa0] sm:$0xff]  ;;  %v2361_v24 = vld [vmem:[#allocation16 + $0x230] sm:$0xff] }
 0x59b   :  { %5046 = vmatprep.subr.bf16.mxu0 %v5045_v46  ;;  %5174 = vmatprep.subr.bf16.mxu1 %v5173_v47  ;;  %v5189_v46 = vpack.c.bf16 %v2320_v33, %v2312_v58  ;;  %v5317_v47 = vpack.c.bf16 %v2322_v38, %v2314_v35  ;;  %v5191_v55 = vpack.c.bf16 %v2319_v44, %v2311_v43  ;;  %v2375_v38 = vld [vmem:[#allocation16 + $0x2a0] sm:$0xff]  ;;  %v2385_v44 = vld [vmem:[#allocation16 + $0x2f0] sm:$0xff] }
 0x59c   :  { %v5205_v35 = vpack.c.bf16 %v2384_v28, %v2376_v27  ;;  %v5333_v43 = vpack.c.bf16 %v2386_v32, %v2378_v31  ;;  %v2439_v32 = vld [vmem:[#allocation16 + $0x4a0] sm:$0xff] }
 0x59e   :  { %5048 = vmatpush1.bf16.msra.mxu0 %v5047_v56  ;;  %5176 = vmatpush1.bf16.msra.mxu1 %v5175_v57  ;;  %v5319_v56 = vpack.c.bf16 %v2321_v49, %v2313_v45  ;;  %v5193_v57 = vpack.c.bf16 %v2336_v51, %v2328_v50  ;;  %v2392_v45 = vld [vmem:[#allocation16 + $0x328] sm:$0xff]  ;;  %v2402_v49 = vld [vmem:[#allocation16 + $0x378] sm:$0xff] }
 0x59f   :  { %5050 = vmatprep.subr.bf16.mxu0 %v5049_v60  ;;  %5178 = vmatprep.subr.bf16.mxu1 %v5177_v61  ;;  %v2329_v60 = vld [vmem:[#allocation16 + $0x130] sm:$0xff]  ;;  %v5321_v61 = vpack.c.bf16 %v2338_v54, %v2330_v52  ;;  %v2391_v54 = vld [vmem:[#allocation16 + $0x320] sm:$0xff] }
 0x5a2   :  { %5052 = vmatpush1.bf16.msra.mxu0 %v5051_v4  ;;  %5180 = vmatpush1.bf16.msra.mxu1 %v5179_v5  ;;  %v5323_v4 = vpack.c.bf16 %v2337_v18, %v2329_v60  ;;  %v5197_v5 = vpack.c.bf16 %v2352_v1, %v2344_v0  ;;  %v2416_v60 = vld [vmem:[#allocation16 + $0x3e8] sm:$0xff]  ;;  %v2418_v18 = vld [vmem:[#allocation16 + $0x3f8] sm:$0xff] }
 0x5a3   :  { %5054 = vmatprep.subr.bf16.mxu0 %v5053_v8  ;;  %5182 = vmatprep.subr.bf16.mxu1 %v5181_v10  ;;  %v2353_v8 = vld [vmem:[#allocation16 + $0x1f0] sm:$0xff]  ;;  %v2360_v10 = vld [vmem:[#allocation16 + $0x228] sm:$0xff]  ;;  %v5213_v2 = vpack.c.bf16 %v2416_v60, %v2408_v11 }
 0x5a4   :  { %v5327_v17 = vpack.c.bf16 %v2353_v8, %v2345_v25  ;;  %v5201_v20 = vpack.c.bf16 %v2368_v12, %v2360_v10  ;;  %v2432_v25 = vld [vmem:[#allocation16 + $0x468] sm:$0xff]  ;;  %v2434_v8 = vld [vmem:[#allocation16 + $0x478] sm:$0xff] }
 0x5a6   :  { %5056 = vmatpush1.bf16.msra.mxu0 %v5055_v21  ;;  %5184 = vmatpush1.bf16.msra.mxu1 %v5183_v22  ;;  %v2359_v21 = vld [vmem:[#allocation16 + $0x220] sm:$0xff] }
 0x5a7   :  { %5186 = vmatprep.subr.bf16.mxu0 %v5185_v26  ;;  %5314 = vmatprep.subr.bf16.mxu1 %v5313_v23  ;;  %v2367_v22 = vld [vmem:[#allocation16 + $0x260] sm:$0xff]  ;;  %v5329_v26 = vpack.c.bf16 %v2370_v14, %v2362_v13  ;;  %v2369_v23 = vld [vmem:[#allocation16 + $0x270] sm:$0xff] }
 0x5a8   :  { %v5203_v58 = vpack.c.bf16 %v2367_v22, %v2359_v21  ;;  %v5331_v33 = vpack.c.bf16 %v2369_v23, %v2361_v24  ;;  %v2423_v14 = vld [vmem:[#allocation16 + $0x420] sm:$0xff]  ;;  %v2433_v21 = vld [vmem:[#allocation16 + $0x470] sm:$0xff]  ;;  %v2440_v22 = vld [vmem:[#allocation16 + $0x4a8] sm:$0xff] }
 0x5a9   :  { %2981 = vmatmul.mubr.f32.vlgmr.msra.gmra.mrb[6].mxu0 %v6624_v39  ;;  %3123 = vmatmul.mubr.f32.vlgmr.msra.gmra.mrb[14].mxu1 %v6624_v39  ;;  %v2448_v24 = vld [vmem:[#allocation16 + $0x4e8] sm:$0xff]  ;;  %v2450_v23 = vld [vmem:[#allocation16 + $0x4f8] sm:$0xff] }
 0x5aa   :  { %5188 = vmatpush1.bf16.msra.mxu0 %v5187_v40  ;;  %3193 = vmatprep.mubr.f32.mxu0 %v6609_v48  ;;  %v2383_v40 = vld [vmem:[#allocation16 + $0x2e0] sm:$0xff]  ;;  %v5221_v31 = vpack.c.bf16 %v2448_v24, %v2440_v22 }
 0x5ab   :  { %5316 = vmatpush1.bf16.msra.mxu1 %v5315_v30  ;;  %3335 = vmatprep.mubr.f32.mxu1 %v6609_v48  ;;  %v2343_v48 = vld [vmem:[#allocation16 + $0x1a0] sm:$0xff]  ;;  %v2377_v30 = vld [vmem:[#allocation16 + $0x2b0] sm:$0xff]  ;;  %v5207_v50 = vpack.c.bf16 %v2383_v40, %v2375_v38  ;;  %v2456_v40 = vld [vmem:[#allocation16 + $0x528] sm:$0xff] }
 0x5ac   :  { %5190 = vmatprep.subr.bf16.mxu0 %v5189_v46  ;;  %5318 = vmatprep.subr.bf16.mxu1 %v5317_v47  ;;  %v5199_v15 = vpack.c.bf16 %v2351_v7, %v2343_v48  ;;  %v2400_v46 = vld [vmem:[#allocation16 + $0x368] sm:$0xff]  ;;  %v2394_v47 = vld [vmem:[#allocation16 + $0x338] sm:$0xff]  ;;  %v5335_v51 = vpack.c.bf16 %v2385_v44, %v2377_v30  ;;  %v2417_v48 = vld [vmem:[#allocation16 + $0x3f0] sm:$0xff] }
 0x5ad   :  { %v5209_v52 = vpack.c.bf16 %v2400_v46, %v2392_v45  ;;  %v2424_v7 = vld [vmem:[#allocation16 + $0x428] sm:$0xff]  ;;  %v2449_v38 = vld [vmem:[#allocation16 + $0x4f0] sm:$0xff]  ;;  %v2466_v44 = vld [vmem:[#allocation16 + $0x578] sm:$0xff] }
 0x5ae   :  { %5192 = vmatpush1.bf16.msra.mxu0 %v5191_v55  ;;  %v2399_v55 = vld [vmem:[#allocation16 + $0x360] sm:$0xff]  ;;  %v5217_v13 = vpack.c.bf16 %v2432_v25, %v2424_v7  ;;  %v2464_v30 = vld [vmem:[#allocation16 + $0x568] sm:$0xff] }
 0x5af   :  { %5320 = vmatpush1.bf16.msra.mxu1 %v5319_v56  ;;  %5194 = vmatprep.subr.bf16.mxu0 %v5193_v57  ;;  %v2393_v56 = vld [vmem:[#allocation16 + $0x330] sm:$0xff]  ;;  %v5337_v57 = vpack.c.bf16 %v2402_v49, %v2394_v47  ;;  %v5211_v0 = vpack.c.bf16 %v2399_v55, %v2391_v54  ;;  %v5225_v47 = vpack.c.bf16 %v2464_v30, %v2456_v40  ;;  %v2455_v49 = vld [vmem:[#allocation16 + $0x520] sm:$0xff]  ;;  %v2472_v55 = vld [vmem:[#allocation16 + $0x5a8] sm:$0xff] }
 0x5b0   :  { %5322 = vmatprep.subr.bf16.mxu1 %v5321_v61  ;;  %v2410_v61 = vld [vmem:[#allocation16 + $0x3b8] sm:$0xff]  ;;  %v5339_v1 = vpack.c.bf16 %v2401_v41, %v2393_v56  ;;  %v2465_v54 = vld [vmem:[#allocation16 + $0x570] sm:$0xff]  ;;  %v2480_v56 = vld [vmem:[#allocation16 + $0x5e8] sm:$0xff] }
 0x5b1   :  { %v2482_v41 = vld [vmem:[#allocation16 + $0x5f8] sm:$0xff] }
 0x5b2   :  { %5196 = vmatpush1.bf16.msra.mxu0 %v5195_v3  ;;  %v2415_v3 = vld [vmem:[#allocation16 + $0x3e0] sm:$0xff] }
 0x5b3   :  { %5324 = vmatpush1.bf16.msra.mxu1 %v5323_v4  ;;  %5198 = vmatprep.subr.bf16.mxu0 %v5197_v5  ;;  %v2409_v4 = vld [vmem:[#allocation16 + $0x3b0] sm:$0xff]  ;;  %v5341_v5 = vpack.c.bf16 %v2418_v18, %v2410_v61  ;;  %v5215_v10 = vpack.c.bf16 %v2415_v3, %v2407_v6  ;;  %v5229_v61 = vpack.c.bf16 %v2480_v56, %v2472_v55  ;;  %v2471_v18 = vld [vmem:[#allocation16 + $0x5a0] sm:$0xff]  ;;  %v2488_v3 = vld [vmem:[#allocation16 + $0x628] sm:$0xff] }
 0x5b4   :  { %5326 = vmatprep.subr.bf16.mxu1 %v5325_v36  ;;  %v2426_v36 = vld [vmem:[#allocation16 + $0x438] sm:$0xff]  ;;  %v5343_v12 = vpack.c.bf16 %v2417_v48, %v2409_v4  ;;  %v2481_v6 = vld [vmem:[#allocation16 + $0x5f0] sm:$0xff]  ;;  %v2496_v4 = vld [vmem:[#allocation16 + $0x668] sm:$0xff] }
 0x5b5   :  { %v2498_v48 = vld [vmem:[#allocation16 + $0x678] sm:$0xff] }
 0x5b6   :  { %5200 = vmatpush1.bf16.msra.mxu0 %v5199_v15  ;;  %v2431_v15 = vld [vmem:[#allocation16 + $0x460] sm:$0xff] }
 0x5b7   :  { %5328 = vmatpush1.bf16.msra.mxu1 %v5327_v17  ;;  %5202 = vmatprep.subr.bf16.mxu0 %v5201_v20  ;;  %v2425_v17 = vld [vmem:[#allocation16 + $0x430] sm:$0xff]  ;;  %v5345_v20 = vpack.c.bf16 %v2434_v8, %v2426_v36  ;;  %v5219_v27 = vpack.c.bf16 %v2431_v15, %v2423_v14  ;;  %v5233_v36 = vpack.c.bf16 %v2496_v4, %v2488_v3  ;;  %v2487_v8 = vld [vmem:[#allocation16 + $0x620] sm:$0xff]  ;;  %v2504_v15 = vld [vmem:[#allocation16 + $0x6a8] sm:$0xff] }
 0x5b8   :  { %5330 = vmatprep.subr.bf16.mxu1 %v5329_v26  ;;  %v2442_v26 = vld [vmem:[#allocation16 + $0x4b8] sm:$0xff]  ;;  %v5347_v28 = vpack.c.bf16 %v2433_v21, %v2425_v17  ;;  %v2497_v14 = vld [vmem:[#allocation16 + $0x670] sm:$0xff]  ;;  %v2512_v17 = vld [vmem:[#allocation16 + $0x6e8] sm:$0xff] }
 0x5b9   :  { %v2514_v21 = vld [vmem:[#allocation16 + $0x6f8] sm:$0xff] }
 0x5ba   :  { %5204 = vmatpush1.bf16.msra.mxu0 %v5203_v58  ;;  %v2447_v58 = vld [vmem:[#allocation16 + $0x4e0] sm:$0xff] }
 0x5bb   :  { %5332 = vmatpush1.bf16.msra.mxu1 %v5331_v33  ;;  %5206 = vmatprep.subr.bf16.mxu0 %v5205_v35  ;;  %v2441_v33 = vld [vmem:[#allocation16 + $0x4b0] sm:$0xff]  ;;  %v5349_v35 = vpack.c.bf16 %v2450_v23, %v2442_v26  ;;  %v5223_v45 = vpack.c.bf16 %v2447_v58, %v2439_v32  ;;  %v5237_v26 = vpack.c.bf16 %v2512_v17, %v2504_v15  ;;  %v2503_v23 = vld [vmem:[#allocation16 + $0x6a0] sm:$0xff]  ;;  %v2520_v58 = vld [vmem:[#allocation16 + $0x728] sm:$0xff] }
 0x5bc   :  { %5334 = vmatprep.subr.bf16.mxu1 %v5333_v43  ;;  %v2458_v43 = vld [vmem:[#allocation16 + $0x538] sm:$0xff]  ;;  %v5351_v46 = vpack.c.bf16 %v2449_v38, %v2441_v33  ;;  %v2513_v32 = vld [vmem:[#allocation16 + $0x6f0] sm:$0xff]  ;;  %v2528_v33 = vld [vmem:[#allocation16 + $0x768] sm:$0xff] }
 0x5bd   :  { %v2530_v38 = vld [vmem:[#allocation16 + $0x778] sm:$0xff] }
 0x5be   :  { %5208 = vmatpush1.bf16.msra.mxu0 %v5207_v50  ;;  %v2463_v50 = vld [vmem:[#allocation16 + $0x560] sm:$0xff]  ;;  %v2578_v15 = vld [vmem:[#allocation16 + $0x8f8] sm:$0xff] }
 0x5bf   :  { %5336 = vmatpush1.bf16.msra.mxu1 %v5335_v51  ;;  %5210 = vmatprep.subr.bf16.mxu0 %v5209_v52  ;;  %v2457_v51 = vld [vmem:[#allocation16 + $0x530] sm:$0xff]  ;;  %v5353_v52 = vpack.c.bf16 %v2466_v44, %v2458_v43  ;;  %v5227_v11 = vpack.c.bf16 %v2463_v50, %v2455_v49  ;;  %v5241_v43 = vpack.c.bf16 %v2528_v33, %v2520_v58  ;;  %v2519_v44 = vld [vmem:[#allocation16 + $0x720] sm:$0xff]  ;;  %v2536_v50 = vld [vmem:[#allocation16 + $0x7a8] sm:$0xff] }
 0x5c0   :  { %5338 = vmatprep.subr.bf16.mxu1 %v5337_v57  ;;  %v2474_v57 = vld [vmem:[#allocation16 + $0x5b8] sm:$0xff]  ;;  %v5355_v60 = vpack.c.bf16 %v2465_v54, %v2457_v51  ;;  %v2529_v49 = vld [vmem:[#allocation16 + $0x770] sm:$0xff]  ;;  %v2544_v51 = vld [vmem:[#allocation16 + $0x7e8] sm:$0xff] }
 0x5c1   :  { %v2546_v54 = vld [vmem:[#allocation16 + $0x7f8] sm:$0xff] }
 0x5c2   :  { %5212 = vmatpush1.bf16.msra.mxu0 %v5211_v0  ;;  %v2479_v0 = vld [vmem:[#allocation16 + $0x5e0] sm:$0xff] }
 0x5c3   :  { %5340 = vmatpush1.bf16.msra.mxu1 %v5339_v1  ;;  %5214 = vmatprep.subr.bf16.mxu0 %v5213_v2  ;;  %v2473_v1 = vld [vmem:[#allocation16 + $0x5b0] sm:$0xff]  ;;  %v5357_v2 = vpack.c.bf16 %v2482_v41, %v2474_v57  ;;  %v5231_v7 = vpack.c.bf16 %v2479_v0, %v2471_v18  ;;  %v5245_v57 = vpack.c.bf16 %v2544_v51, %v2536_v50  ;;  %v2535_v41 = vld [vmem:[#allocation16 + $0x7a0] sm:$0xff]  ;;  %v2552_v0 = vld [vmem:[#allocation16 + $0x828] sm:$0xff] }
 0x5c4   :  { %5342 = vmatprep.subr.bf16.mxu1 %v5341_v5  ;;  %v2490_v5 = vld [vmem:[#allocation16 + $0x638] sm:$0xff]  ;;  %v5359_v25 = vpack.c.bf16 %v2481_v6, %v2473_v1  ;;  %v2545_v18 = vld [vmem:[#allocation16 + $0x7f0] sm:$0xff]  ;;  %v2560_v1 = vld [vmem:[#allocation16 + $0x868] sm:$0xff] }
 0x5c5   :  { %v2562_v6 = vld [vmem:[#allocation16 + $0x878] sm:$0xff] }
 0x5c6   :  { %5216 = vmatpush1.bf16.msra.mxu0 %v5215_v10  ;;  %v2495_v10 = vld [vmem:[#allocation16 + $0x660] sm:$0xff] }
 0x5c7   :  { %5344 = vmatpush1.bf16.msra.mxu1 %v5343_v12  ;;  %5218 = vmatprep.subr.bf16.mxu0 %v5217_v13  ;;  %v2489_v12 = vld [vmem:[#allocation16 + $0x630] sm:$0xff]  ;;  %v5361_v13 = vpack.c.bf16 %v2498_v48, %v2490_v5  ;;  %v5235_v22 = vpack.c.bf16 %v2495_v10, %v2487_v8  ;;  %v5249_v5 = vpack.c.bf16 %v2560_v1, %v2552_v0  ;;  %v2551_v48 = vld [vmem:[#allocation16 + $0x820] sm:$0xff]  ;;  %v2568_v10 = vld [vmem:[#allocation16 + $0x8a8] sm:$0xff] }
 0x5c8   :  { %5346 = vmatprep.subr.bf16.mxu1 %v5345_v20  ;;  %v2506_v20 = vld [vmem:[#allocation16 + $0x6b8] sm:$0xff]  ;;  %v5363_v24 = vpack.c.bf16 %v2497_v14, %v2489_v12  ;;  %v2561_v8 = vld [vmem:[#allocation16 + $0x870] sm:$0xff]  ;;  %v2576_v12 = vld [vmem:[#allocation16 + $0x8e8] sm:$0xff] }
 0x5c9   :  { %v2570_v14 = vld [vmem:[#allocation16 + $0x8b8] sm:$0xff]  ;;  %v2615_v1 = vld [vmem:[#allocation16 + $0xa20] sm:$0xff] }
 0x5ca   :  { %5220 = vmatpush1.bf16.msra.mxu0 %v5219_v27  ;;  %v2511_v27 = vld [vmem:[#allocation16 + $0x6e0] sm:$0xff] }
 0x5cb   :  { %5348 = vmatpush1.bf16.msra.mxu1 %v5347_v28  ;;  %5222 = vmatprep.subr.bf16.mxu0 %v5221_v31  ;;  %v2505_v28 = vld [vmem:[#allocation16 + $0x6b0] sm:$0xff]  ;;  %v5365_v31 = vpack.c.bf16 %v2514_v21, %v2506_v20  ;;  %v5239_v40 = vpack.c.bf16 %v2511_v27, %v2503_v23  ;;  %v2567_v20 = vld [vmem:[#allocation16 + $0x8a0] sm:$0xff]  ;;  %v2584_v23 = vld [vmem:[#allocation16 + $0x928] sm:$0xff] }
 0x5cc   :  { %5350 = vmatprep.subr.bf16.mxu1 %v5349_v35  ;;  %v2522_v35 = vld [vmem:[#allocation16 + $0x738] sm:$0xff]  ;;  %v5367_v30 = vpack.c.bf16 %v2513_v32, %v2505_v28  ;;  %v2575_v21 = vld [vmem:[#allocation16 + $0x8e0] sm:$0xff]  ;;  %v2592_v27 = vld [vmem:[#allocation16 + $0x968] sm:$0xff]  ;;  %v5381_v28 = vpack.c.bf16 %v2578_v15, %v2570_v14 }
 0x5cd   :  { %v2594_v32 = vld [vmem:[#allocation16 + $0x978] sm:$0xff]  ;;  %v5255_v58 = vpack.c.bf16 %v2575_v21, %v2567_v20  ;;  %v2633_v14 = vld [vmem:[#allocation16 + $0xab0] sm:$0xff]  ;;  %v2648_v20 = vld [vmem:[#allocation16 + $0xb28] sm:$0xff] }
 0x5ce   :  { %5224 = vmatpush1.bf16.msra.mxu0 %v5223_v45  ;;  %v2527_v45 = vld [vmem:[#allocation16 + $0x760] sm:$0xff]  ;;  %v2656_v21 = vld [vmem:[#allocation16 + $0xb68] sm:$0xff] }
 0x5cf   :  { %5352 = vmatpush1.bf16.msra.mxu1 %v5351_v46  ;;  %5226 = vmatprep.subr.bf16.mxu0 %v5225_v47  ;;  %v2521_v46 = vld [vmem:[#allocation16 + $0x730] sm:$0xff]  ;;  %v5369_v47 = vpack.c.bf16 %v2530_v38, %v2522_v35  ;;  %v5243_v55 = vpack.c.bf16 %v2527_v45, %v2519_v44  ;;  %v5257_v35 = vpack.c.bf16 %v2592_v27, %v2584_v23  ;;  %v2583_v38 = vld [vmem:[#allocation16 + $0x920] sm:$0xff]  ;;  %v2600_v45 = vld [vmem:[#allocation16 + $0x9a8] sm:$0xff] }
 0x5d0   :  { %5354 = vmatprep.subr.bf16.mxu1 %v5353_v52  ;;  %v2538_v52 = vld [vmem:[#allocation16 + $0x7b8] sm:$0xff]  ;;  %v5371_v56 = vpack.c.bf16 %v2529_v49, %v2521_v46  ;;  %v2593_v44 = vld [vmem:[#allocation16 + $0x970] sm:$0xff]  ;;  %v2608_v46 = vld [vmem:[#allocation16 + $0x9e8] sm:$0xff]  ;;  %v5273_v27 = vpack.c.bf16 %v2656_v21, %v2648_v20 }
 0x5d1   :  { %v5261_v51 = vpack.c.bf16 %v2608_v46, %v2600_v45  ;;  %v2663_v46 = vld [vmem:[#allocation16 + $0xba0] sm:$0xff] }
 0x5d2   :  { %5228 = vmatpush1.bf16.msra.mxu0 %v5227_v11  ;;  %v2543_v11 = vld [vmem:[#allocation16 + $0x7e0] sm:$0xff] }
 0x5d3   :  { %5356 = vmatpush1.bf16.msra.mxu1 %v5355_v60  ;;  %5230 = vmatprep.subr.bf16.mxu0 %v5229_v61  ;;  %v2537_v60 = vld [vmem:[#allocation16 + $0x7b0] sm:$0xff]  ;;  %v5373_v61 = vpack.c.bf16 %v2546_v54, %v2538_v52  ;;  %v5247_v3 = vpack.c.bf16 %v2543_v11, %v2535_v41  ;;  %v2599_v52 = vld [vmem:[#allocation16 + $0x9a0] sm:$0xff]  ;;  %v2624_v41 = vld [vmem:[#allocation16 + $0xa68] sm:$0xff] }
 0x5d4   :  { %5358 = vmatprep.subr.bf16.mxu1 %v5357_v2  ;;  %v2554_v2 = vld [vmem:[#allocation16 + $0x838] sm:$0xff]  ;;  %v5375_v4 = vpack.c.bf16 %v2545_v18, %v2537_v60  ;;  %v2607_v54 = vld [vmem:[#allocation16 + $0x9e0] sm:$0xff] }
 0x5d5   :  { %v2618_v11 = vld [vmem:[#allocation16 + $0xa38] sm:$0xff]  ;;  %v2711_v21 = vld [vmem:[#allocation16 + $0xd20] sm:$0xff] }
 0x5d6   :  { %5232 = vmatpush1.bf16.msra.mxu0 %v5231_v7  ;;  %v2559_v7 = vld [vmem:[#allocation16 + $0x860] sm:$0xff]  ;;  %v2626_v60 = vld [vmem:[#allocation16 + $0xa78] sm:$0xff] }
 0x5d7   :  { %5360 = vmatpush1.bf16.msra.mxu1 %v5359_v25  ;;  %5234 = vmatprep.subr.bf16.mxu0 %v5233_v36  ;;  %v5377_v25 = vpack.c.bf16 %v2562_v6, %v2554_v2  ;;  %v2553_v36 = vld [vmem:[#allocation16 + $0x830] sm:$0xff]  ;;  %v2623_v2 = vld [vmem:[#allocation16 + $0xa60] sm:$0xff] }
 0x5d8   :  { %5362 = vmatprep.subr.bf16.mxu1 %v5361_v13  ;;  %v5251_v13 = vpack.c.bf16 %v2559_v7, %v2551_v48  ;;  %v5379_v17 = vpack.c.bf16 %v2561_v8, %v2553_v36  ;;  %v2617_v6 = vld [vmem:[#allocation16 + $0xa30] sm:$0xff]  ;;  %v2640_v48 = vld [vmem:[#allocation16 + $0xae8] sm:$0xff]  ;;  %v2634_v7 = vld [vmem:[#allocation16 + $0xab8] sm:$0xff]  ;;  %v5267_v36 = vpack.c.bf16 %v2623_v2, %v2615_v1 }
 0x5d9   :  { %v2704_v1 = vld [vmem:[#allocation16 + $0xce8] sm:$0xff]  ;;  %v2698_v2 = vld [vmem:[#allocation16 + $0xcb8] sm:$0xff] }
 0x5da   :  { %5236 = vmatpush1.bf16.msra.mxu0 %v5235_v22  ;;  %v2569_v22 = vld [vmem:[#allocation16 + $0x8b0] sm:$0xff] }
 0x5db   :  { %5364 = vmatpush1.bf16.msra.mxu1 %v5363_v24  ;;  %5238 = vmatprep.subr.bf16.mxu0 %v5237_v26  ;;  %v5253_v24 = vpack.c.bf16 %v2576_v12, %v2568_v10  ;;  %v2577_v26 = vld [vmem:[#allocation16 + $0x8f0] sm:$0xff]  ;;  %v2631_v12 = vld [vmem:[#allocation16 + $0xaa0] sm:$0xff] }
 0x5dc   :  { %5366 = vmatprep.subr.bf16.mxu1 %v5365_v31  ;;  %v2586_v31 = vld [vmem:[#allocation16 + $0x938] sm:$0xff]  ;;  %v5383_v33 = vpack.c.bf16 %v2577_v26, %v2569_v22 }
 0x5dd   :  { %v2650_v22 = vld [vmem:[#allocation16 + $0xb38] sm:$0xff] }
 0x5de   :  { %5240 = vmatpush1.bf16.msra.mxu0 %v5239_v40  ;;  %v2591_v40 = vld [vmem:[#allocation16 + $0x960] sm:$0xff] }
 0x5df   :  { %5368 = vmatpush1.bf16.msra.mxu1 %v5367_v30  ;;  %5242 = vmatprep.subr.bf16.mxu0 %v5241_v43  ;;  %v2585_v30 = vld [vmem:[#allocation16 + $0x930] sm:$0xff]  ;;  %v5385_v43 = vpack.c.bf16 %v2594_v32, %v2586_v31  ;;  %v5259_v49 = vpack.c.bf16 %v2591_v40, %v2583_v38  ;;  %v2655_v31 = vld [vmem:[#allocation16 + $0xb60] sm:$0xff]  ;;  %v2672_v38 = vld [vmem:[#allocation16 + $0xbe8] sm:$0xff] }
 0x5e0   :  { %5370 = vmatprep.subr.bf16.mxu1 %v5369_v47  ;;  %v2602_v47 = vld [vmem:[#allocation16 + $0x9b8] sm:$0xff]  ;;  %v5387_v50 = vpack.c.bf16 %v2593_v44, %v2585_v30  ;;  %v2649_v32 = vld [vmem:[#allocation16 + $0xb30] sm:$0xff] }
 0x5e1   :  { %v2666_v40 = vld [vmem:[#allocation16 + $0xbb8] sm:$0xff] }
 0x5e2   :  { %5244 = vmatpush1.bf16.msra.mxu0 %v5243_v55  ;;  %v2601_v55 = vld [vmem:[#allocation16 + $0x9b0] sm:$0xff]  ;;  %v2674_v30 = vld [vmem:[#allocation16 + $0xbf8] sm:$0xff] }
 0x5e3   :  { %5372 = vmatpush1.bf16.msra.mxu1 %v5371_v56  ;;  %5246 = vmatprep.subr.bf16.mxu0 %v5245_v57  ;;  %v2616_v57 = vld [vmem:[#allocation16 + $0xa28] sm:$0xff] }
 0x5e4   :  { %5374 = vmatprep.subr.bf16.mxu1 %v5373_v61  ;;  %v5263_v61 = vpack.c.bf16 %v2607_v54, %v2599_v52  ;;  %v5265_v0 = vpack.c.bf16 %v2624_v41, %v2616_v57  ;;  %v2688_v52 = vld [vmem:[#allocation16 + $0xc68] sm:$0xff]  ;;  %v2682_v54 = vld [vmem:[#allocation16 + $0xc38] sm:$0xff]  ;;  %v2679_v41 = vld [vmem:[#allocation16 + $0xc20] sm:$0xff] }
 0x5e6   :  { %5248 = vmatpush1.bf16.msra.mxu0 %v5247_v3  ;;  %v5393_v3 = vpack.c.bf16 %v2626_v60, %v2618_v11  ;;  %v2687_v11 = vld [vmem:[#allocation16 + $0xc60] sm:$0xff]  ;;  %v2681_v60 = vld [vmem:[#allocation16 + $0xc30] sm:$0xff] }
 0x5e7   :  { %5376 = vmatpush1.bf16.msra.mxu1 %v5375_v4  ;;  %5250 = vmatprep.subr.bf16.mxu0 %v5249_v5  ;;  %v2625_v4 = vld [vmem:[#allocation16 + $0xa70] sm:$0xff]  ;;  %v2632_v5 = vld [vmem:[#allocation16 + $0xaa8] sm:$0xff] }
 0x5e8   :  { %5378 = vmatprep.subr.bf16.mxu1 %v5377_v25  ;;  %v2642_v25 = vld [vmem:[#allocation16 + $0xaf8] sm:$0xff]  ;;  %v5395_v8 = vpack.c.bf16 %v2625_v4, %v2617_v6  ;;  %v5269_v10 = vpack.c.bf16 %v2640_v48, %v2632_v5  ;;  %v2695_v48 = vld [vmem:[#allocation16 + $0xca0] sm:$0xff] }
 0x5e9   :  { %3194 = vmatmul.mubr.f32.vlgmr.msra.gmra.mrb[8].mxu0 %v6611_v53  ;;  %v5397_v15 = vpack.c.bf16 %v2642_v25, %v2634_v7  ;;  %v2706_v6 = vld [vmem:[#allocation16 + $0xcf8] sm:$0xff]  ;;  %v2703_v7 = vld [vmem:[#allocation16 + $0xce0] sm:$0xff]  ;;  %v2697_v25 = vld [vmem:[#allocation16 + $0xcb0] sm:$0xff] }
 0x5ea   :  { %3336 = vmatmul.mubr.f32.vlgmr.msra.gmra.mrb[16].mxu1 %v6611_v53  ;;  %5252 = vmatpush1.bf16.msra.mxu0 %v5251_v13  ;;  %v2610_v53 = vld [vmem:[#allocation16 + $0x9f8] sm:$0xff]  ;;  %v2639_v13 = vld [vmem:[#allocation16 + $0xae0] sm:$0xff] }
 0x5eb   :  { %3264 = vmatprep.mubr.f32.mxu0 %v6615_v62  ;;  %5380 = vmatpush1.bf16.msra.mxu1 %v5379_v17  ;;  %v5389_v56 = vpack.c.bf16 %v2610_v53, %v2602_v47  ;;  %v2641_v17 = vld [vmem:[#allocation16 + $0xaf0] sm:$0xff]  ;;  %v5271_v26 = vpack.c.bf16 %v2639_v13, %v2631_v12  ;;  %v2671_v47 = vld [vmem:[#allocation16 + $0xbe0] sm:$0xff]  ;;  %v2720_v12 = vld [vmem:[#allocation16 + $0xd68] sm:$0xff] }
 0x5ec   :  { %3406 = vmatprep.mubr.f32.mxu1 %v6615_v62  ;;  %5254 = vmatprep.subr.bf16.mxu0 %v5253_v24  ;;  %v2609_v62 = vld [vmem:[#allocation16 + $0x9f0] sm:$0xff]  ;;  %v2658_v24 = vld [vmem:[#allocation16 + $0xb78] sm:$0xff]  ;;  %v5399_v23 = vpack.c.bf16 %v2641_v17, %v2633_v14 }
 0x5ed   :  { %5382 = vmatprep.subr.bf16.mxu1 %v5381_v28  ;;  %v5391_v18 = vpack.c.bf16 %v2609_v62, %v2601_v55  ;;  %v2647_v28 = vld [vmem:[#allocation16 + $0xb20] sm:$0xff]  ;;  %v2665_v53 = vld [vmem:[#allocation16 + $0xbb0] sm:$0xff]  ;;  %v2690_v55 = vld [vmem:[#allocation16 + $0xc78] sm:$0xff] }
 0x5ee   :  { %5256 = vmatpush1.bf16.msra.mxu0 %v5255_v58  ;;  %v5401_v58 = vpack.c.bf16 %v2658_v24, %v2650_v22  ;;  %v2714_v13 = vld [vmem:[#allocation16 + $0xd38] sm:$0xff]  ;;  %v2719_v22 = vld [vmem:[#allocation16 + $0xd60] sm:$0xff]  ;;  %v2713_v24 = vld [vmem:[#allocation16 + $0xd30] sm:$0xff] }
 0x5ef   :  { %5384 = vmatpush1.bf16.msra.mxu1 %v5383_v33  ;;  %5258 = vmatprep.subr.bf16.mxu0 %v5257_v35  ;;  %v2657_v33 = vld [vmem:[#allocation16 + $0xb70] sm:$0xff]  ;;  %v2664_v35 = vld [vmem:[#allocation16 + $0xba8] sm:$0xff]  ;;  %v2722_v14 = vld [vmem:[#allocation16 + $0xd78] sm:$0xff] }
 0x5f0   :  { %5386 = vmatprep.subr.bf16.mxu1 %v5385_v43  ;;  %v5275_v43 = vpack.c.bf16 %v2655_v31, %v2647_v28  ;;  %v5403_v44 = vpack.c.bf16 %v2657_v33, %v2649_v32  ;;  %v5277_v45 = vpack.c.bf16 %v2672_v38, %v2664_v35  ;;  %v2736_v28 = vld [vmem:[#allocation16 + $0xde8] sm:$0xff]  ;;  %v2730_v31 = vld [vmem:[#allocation16 + $0xdb8] sm:$0xff]  ;;  %v2727_v38 = vld [vmem:[#allocation16 + $0xda0] sm:$0xff] }
 0x5f1   :  { %v2738_v32 = vld [vmem:[#allocation16 + $0xdf8] sm:$0xff] }
 0x5f2   :  { %5260 = vmatpush1.bf16.msra.mxu0 %v5259_v49  ;;  %v5405_v49 = vpack.c.bf16 %v2674_v30, %v2666_v40  ;;  %v2735_v40 = vld [vmem:[#allocation16 + $0xde0] sm:$0xff]  ;;  %v2729_v30 = vld [vmem:[#allocation16 + $0xdb0] sm:$0xff] }
 0x5f3   :  { %5388 = vmatpush1.bf16.msra.mxu1 %v5387_v50  ;;  %5262 = vmatprep.subr.bf16.mxu0 %v5261_v51  ;;  %v2673_v50 = vld [vmem:[#allocation16 + $0xbf0] sm:$0xff]  ;;  %v2680_v51 = vld [vmem:[#allocation16 + $0xc28] sm:$0xff] }
 0x5f4   :  { %5390 = vmatprep.subr.bf16.mxu1 %v5389_v56  ;;  %v5279_v56 = vpack.c.bf16 %v2671_v47, %v2663_v46  ;;  %v5407_v62 = vpack.c.bf16 %v2673_v50, %v2665_v53  ;;  %v5281_v57 = vpack.c.bf16 %v2688_v52, %v2680_v51  ;;  %v2752_v46 = vld [vmem:[#allocation16 + $0xe68] sm:$0xff]  ;;  %v2746_v47 = vld [vmem:[#allocation16 + $0xe38] sm:$0xff]  ;;  %v2743_v52 = vld [vmem:[#allocation16 + $0xe20] sm:$0xff] }
 0x5f5   :  { %v2754_v53 = vld [vmem:[#allocation16 + $0xe78] sm:$0xff] }
 0x5f6   :  { %5264 = vmatpush1.bf16.msra.mxu0 %v5263_v61  ;;  %v5409_v61 = vpack.c.bf16 %v2690_v55, %v2682_v54  ;;  %v2751_v54 = vld [vmem:[#allocation16 + $0xe60] sm:$0xff]  ;;  %v2745_v55 = vld [vmem:[#allocation16 + $0xe30] sm:$0xff] }
 0x5f7   :  { %5392 = vmatpush1.bf16.msra.mxu1 %v5391_v18  ;;  %5266 = vmatprep.subr.bf16.mxu0 %v5265_v0  ;;  %v2689_v18 = vld [vmem:[#allocation16 + $0xc70] sm:$0xff]  ;;  %v2696_v0 = vld [vmem:[#allocation16 + $0xca8] sm:$0xff] }
 0x5f8   :  { %5394 = vmatprep.subr.bf16.mxu1 %v5393_v3  ;;  %v5283_v3 = vpack.c.bf16 %v2687_v11, %v2679_v41  ;;  %v5411_v4 = vpack.c.bf16 %v2689_v18, %v2681_v60  ;;  %v5285_v5 = vpack.c.bf16 %v2704_v1, %v2696_v0  ;;  %v2768_v41 = vld [vmem:[#allocation16 + $0xee8] sm:$0xff]  ;;  %v2762_v11 = vld [vmem:[#allocation16 + $0xeb8] sm:$0xff]  ;;  %v2759_v1 = vld [vmem:[#allocation16 + $0xea0] sm:$0xff] }
 0x5f9   :  { %v2770_v60 = vld [vmem:[#allocation16 + $0xef8] sm:$0xff] }
 0x5fa   :  { %5268 = vmatpush1.bf16.msra.mxu0 %v5267_v36  ;;  %v5413_v36 = vpack.c.bf16 %v2706_v6, %v2698_v2  ;;  %v2767_v2 = vld [vmem:[#allocation16 + $0xee0] sm:$0xff]  ;;  %v2761_v6 = vld [vmem:[#allocation16 + $0xeb0] sm:$0xff] }
 0x5fb   :  { %5396 = vmatpush1.bf16.msra.mxu1 %v5395_v8  ;;  %5270 = vmatprep.subr.bf16.mxu0 %v5269_v10  ;;  %v2705_v8 = vld [vmem:[#allocation16 + $0xcf0] sm:$0xff]  ;;  %v2712_v10 = vld [vmem:[#allocation16 + $0xd28] sm:$0xff] }
 0x5fc   :  { %5398 = vmatprep.subr.bf16.mxu1 %v5397_v15  ;;  %v5287_v15 = vpack.c.bf16 %v2703_v7, %v2695_v48  ;;  %v5415_v17 = vpack.c.bf16 %v2705_v8, %v2697_v25  ;;  %v5289_v20 = vpack.c.bf16 %v2720_v12, %v2712_v10  ;;  %v2784_v48 = vld [vmem:[#allocation16 + $0xf68] sm:$0xff]  ;;  %v2778_v7 = vld [vmem:[#allocation16 + $0xf38] sm:$0xff]  ;;  %v2775_v12 = vld [vmem:[#allocation16 + $0xf20] sm:$0xff] }
 0x5fd   :  { %v2786_v25 = vld [vmem:[#allocation16 + $0xf78] sm:$0xff] }
 0x5fe   :  { %5272 = vmatpush1.bf16.msra.mxu0 %v5271_v26  ;;  %v5417_v26 = vpack.c.bf16 %v2722_v14, %v2714_v13  ;;  %v2783_v13 = vld [vmem:[#allocation16 + $0xf60] sm:$0xff]  ;;  %v2777_v14 = vld [vmem:[#allocation16 + $0xf30] sm:$0xff] }
 0x5ff   :  { %5400 = vmatpush1.bf16.msra.mxu1 %v5399_v23  ;;  %5274 = vmatprep.subr.bf16.mxu0 %v5273_v27  ;;  %v2721_v23 = vld [vmem:[#allocation16 + $0xd70] sm:$0xff]  ;;  %v2728_v27 = vld [vmem:[#allocation16 + $0xda8] sm:$0xff] }
 0x600   :  { %5402 = vmatprep.subr.bf16.mxu1 %v5401_v58  ;;  %v5291_v58 = vpack.c.bf16 %v2719_v22, %v2711_v21  ;;  %v5419_v33 = vpack.c.bf16 %v2721_v23, %v2713_v24  ;;  %v5293_v35 = vpack.c.bf16 %v2736_v28, %v2728_v27  ;;  %v2800_v21 = vld [vmem:[#allocation16 + $0xfe8] sm:$0xff]  ;;  %v2794_v22 = vld [vmem:[#allocation16 + $0xfb8] sm:$0xff]  ;;  %v2791_v28 = vld [vmem:[#allocation16 + $0xfa0] sm:$0xff] }
 0x601   :  { %v2802_v24 = vld [vmem:[#allocation16 + $0xff8] sm:$0xff] }
 0x602   :  { %5276 = vmatpush1.bf16.msra.mxu0 %v5275_v43  ;;  %v5421_v43 = vpack.c.bf16 %v2738_v32, %v2730_v31  ;;  %v2799_v31 = vld [vmem:[#allocation16 + $0xfe0] sm:$0xff]  ;;  %v2793_v32 = vld [vmem:[#allocation16 + $0xfb0] sm:$0xff] }
 0x603   :  { %5404 = vmatpush1.bf16.msra.mxu1 %v5403_v44  ;;  %5278 = vmatprep.subr.bf16.mxu0 %v5277_v45  ;;  %v2737_v44 = vld [vmem:[#allocation16 + $0xdf0] sm:$0xff]  ;;  %v2744_v45 = vld [vmem:[#allocation16 + $0xe28] sm:$0xff] }
 0x604   :  { %5406 = vmatprep.subr.bf16.mxu1 %v5405_v49  ;;  %v5295_v49 = vpack.c.bf16 %v2735_v40, %v2727_v38  ;;  %v5423_v50 = vpack.c.bf16 %v2737_v44, %v2729_v30  ;;  %v5297_v51 = vpack.c.bf16 %v2752_v46, %v2744_v45  ;;  %v3424_v38 = vld [vmem:[#allocation19 + $0x18] sm:$0xff]  ;;  %v5311_v40 = vpack.c.bf16 %v2799_v31, %v2791_v28  ;;  %v3421_v44 = vld [vmem:[#allocation19] sm:$0xff]  ;;  %v3423_v45 = vld [vmem:[#allocation19 + $0x10] sm:$0xff] }
 0x605   :  { %v3426_v46 = vld [vmem:[#allocation19 + $0x28] sm:$0xff]  ;;  %v3456_v28 = vld [vmem:[#allocation19 + $0x118] sm:$0xff] }
 0x606   :  { %5280 = vmatpush1.bf16.msra.mxu0 %v5279_v56  ;;  %v5425_v56 = vpack.c.bf16 %v2754_v53, %v2746_v47  ;;  %v3428_v47 = vld [vmem:[#allocation19 + $0x38] sm:$0xff]  ;;  %v5443_v53 = vpack.c.bf16 %v3423_v45, %v3421_v44  ;;  %v3459_v44 = vld [vmem:[#allocation19 + $0x130] sm:$0xff]  ;;  %v3462_v45 = vld [vmem:[#allocation19 + $0x148] sm:$0xff] }
 0x607   :  { %5408 = vmatpush1.bf16.msra.mxu1 %v5407_v62  ;;  %5282 = vmatprep.subr.bf16.mxu0 %v5281_v57  ;;  %v2753_v62 = vld [vmem:[#allocation16 + $0xe70] sm:$0xff]  ;;  %v2760_v57 = vld [vmem:[#allocation16 + $0xea8] sm:$0xff] }
 0x608   :  { %5410 = vmatprep.subr.bf16.mxu1 %v5409_v61  ;;  %v5299_v61 = vpack.c.bf16 %v2751_v54, %v2743_v52  ;;  %v5427_v18 = vpack.c.bf16 %v2753_v62, %v2745_v55  ;;  %v5301_v0 = vpack.c.bf16 %v2768_v41, %v2760_v57  ;;  %v3430_v52 = vld [vmem:[#allocation19 + $0x48] sm:$0xff]  ;;  %v3432_v54 = vld [vmem:[#allocation19 + $0x58] sm:$0xff]  ;;  %v3429_v62 = vld [vmem:[#allocation19 + $0x40] sm:$0xff] }
 0x609   :  { %v3431_v57 = vld [vmem:[#allocation19 + $0x50] sm:$0xff]  ;;  %v3434_v41 = vld [vmem:[#allocation19 + $0x68] sm:$0xff] }
 0x60a   :  { %5284 = vmatpush1.bf16.msra.mxu0 %v5283_v3  ;;  %v5429_v3 = vpack.c.bf16 %v2770_v60, %v2762_v11  ;;  %v3436_v11 = vld [vmem:[#allocation19 + $0x78] sm:$0xff]  ;;  %v5451_v60 = vpack.c.bf16 %v3431_v57, %v3429_v62  ;;  %v3467_v62 = vld [vmem:[#allocation19 + $0x170] sm:$0xff]  ;;  %v3470_v57 = vld [vmem:[#allocation19 + $0x188] sm:$0xff] }
 0x60b   :  { %5412 = vmatpush1.bf16.msra.mxu1 %v5411_v4  ;;  %5286 = vmatprep.subr.bf16.mxu0 %v5285_v5  ;;  %v2769_v4 = vld [vmem:[#allocation16 + $0xef0] sm:$0xff]  ;;  %v2776_v5 = vld [vmem:[#allocation16 + $0xf28] sm:$0xff] }
 0x60c   :  { %5414 = vmatprep.subr.bf16.mxu1 %v5413_v36  ;;  %v5303_v36 = vpack.c.bf16 %v2767_v2, %v2759_v1  ;;  %v5431_v8 = vpack.c.bf16 %v2769_v4, %v2761_v6  ;;  %v5305_v10 = vpack.c.bf16 %v2784_v48, %v2776_v5  ;;  %v3438_v1 = vld [vmem:[#allocation19 + $0x88] sm:$0xff]  ;;  %v3440_v2 = vld [vmem:[#allocation19 + $0x98] sm:$0xff]  ;;  %v3439_v4 = vld [vmem:[#allocation19 + $0x90] sm:$0xff] }
 0x60d   :  { %v3442_v5 = vld [vmem:[#allocation19 + $0xa8] sm:$0xff]  ;;  %v3444_v48 = vld [vmem:[#allocation19 + $0xb8] sm:$0xff] }
 0x60e   :  { %5288 = vmatpush1.bf16.msra.mxu0 %v5287_v15  ;;  %v5433_v15 = vpack.c.bf16 %v2786_v25, %v2778_v7  ;;  %v5461_v25 = vpack.c.bf16 %v3444_v48, %v3442_v5  ;;  %v3480_v5 = vld [vmem:[#allocation19 + $0x1d8] sm:$0xff] }
 0x60f   :  { %5416 = vmatpush1.bf16.msra.mxu1 %v5415_v17  ;;  %5290 = vmatprep.subr.bf16.mxu0 %v5289_v20  ;;  %v2785_v17 = vld [vmem:[#allocation16 + $0xf70] sm:$0xff]  ;;  %v2792_v20 = vld [vmem:[#allocation16 + $0xfa8] sm:$0xff] }
 0x610   :  { %5418 = vmatprep.subr.bf16.mxu1 %v5417_v26  ;;  %v5307_v26 = vpack.c.bf16 %v2783_v13, %v2775_v12  ;;  %v5435_v23 = vpack.c.bf16 %v2785_v17, %v2777_v14  ;;  %v5309_v27 = vpack.c.bf16 %v2800_v21, %v2792_v20  ;;  %v3448_v12 = vld [vmem:[#allocation19 + $0xd8] sm:$0xff]  ;;  %v3447_v17 = vld [vmem:[#allocation19 + $0xd0] sm:$0xff]  ;;  %v3450_v20 = vld [vmem:[#allocation19 + $0xe8] sm:$0xff] }
 0x611   :  { %v3452_v21 = vld [vmem:[#allocation19 + $0xf8] sm:$0xff] }
 0x612   :  { %5292 = vmatpush1.bf16.msra.mxu0 %v5291_v58  ;;  %v5437_v58 = vpack.c.bf16 %v2802_v24, %v2794_v22  ;;  %v5469_v24 = vpack.c.bf16 %v3452_v21, %v3450_v20  ;;  %v3488_v20 = vld [vmem:[#allocation19 + $0x218] sm:$0xff] }
 0x613   :  { %5420 = vmatpush1.bf16.msra.mxu1 %v5419_v33  ;;  %5294 = vmatprep.subr.bf16.mxu0 %v5293_v35  ;;  %v2801_v33 = vld [vmem:[#allocation16 + $0xff0] sm:$0xff] }
 0x614   :  { %5422 = vmatprep.subr.bf16.mxu1 %v5421_v43  ;;  %v3422_v35 = vld [vmem:[#allocation19 + $0x8] sm:$0xff]  ;;  %v5439_v30 = vpack.c.bf16 %v2801_v33, %v2793_v32  ;;  %v3455_v33 = vld [vmem:[#allocation19 + $0x110] sm:$0xff] }
 0x615   :  { %v5441_v43 = vpack.c.bf16 %v3424_v38, %v3422_v35  ;;  %v3458_v35 = vld [vmem:[#allocation19 + $0x128] sm:$0xff]  ;;  %v3460_v38 = vld [vmem:[#allocation19 + $0x138] sm:$0xff] }
 0x616   :  { %5296 = vmatpush1.bf16.msra.mxu0 %v5295_v49  ;;  %v5445_v49 = vpack.c.bf16 %v3428_v47, %v3426_v46  ;;  %v3464_v46 = vld [vmem:[#allocation19 + $0x158] sm:$0xff] }
 0x617   :  { %5424 = vmatpush1.bf16.msra.mxu1 %v5423_v50  ;;  %5298 = vmatprep.subr.bf16.mxu0 %v5297_v51  ;;  %v3425_v50 = vld [vmem:[#allocation19 + $0x20] sm:$0xff]  ;;  %v3427_v51 = vld [vmem:[#allocation19 + $0x30] sm:$0xff] }
 0x618   :  { %5426 = vmatprep.subr.bf16.mxu1 %v5425_v56  ;;  %v5447_v55 = vpack.c.bf16 %v3427_v51, %v3425_v50  ;;  %v5449_v56 = vpack.c.bf16 %v3432_v54, %v3430_v52  ;;  %v3463_v50 = vld [vmem:[#allocation19 + $0x150] sm:$0xff]  ;;  %v3466_v51 = vld [vmem:[#allocation19 + $0x168] sm:$0xff]  ;;  %v3468_v52 = vld [vmem:[#allocation19 + $0x178] sm:$0xff] }
 0x61a   :  { %5300 = vmatpush1.bf16.msra.mxu0 %v5299_v61  ;;  %v5453_v61 = vpack.c.bf16 %v3436_v11, %v3434_v41  ;;  %v3472_v41 = vld [vmem:[#allocation19 + $0x198] sm:$0xff] }
 0x61b   :  { %5428 = vmatpush1.bf16.msra.mxu1 %v5427_v18  ;;  %5302 = vmatprep.subr.bf16.mxu0 %v5301_v0  ;;  %v3433_v18 = vld [vmem:[#allocation19 + $0x60] sm:$0xff]  ;;  %v3435_v0 = vld [vmem:[#allocation19 + $0x70] sm:$0xff] }
 0x61c   :  { %5430 = vmatprep.subr.bf16.mxu1 %v5429_v3  ;;  %v5455_v6 = vpack.c.bf16 %v3435_v0, %v3433_v18  ;;  %v3437_v3 = vld [vmem:[#allocation19 + $0x80] sm:$0xff]  ;;  %v3471_v18 = vld [vmem:[#allocation19 + $0x190] sm:$0xff]  ;;  %v3474_v0 = vld [vmem:[#allocation19 + $0x1a8] sm:$0xff] }
 0x61d   :  { %v5459_v7 = vpack.c.bf16 %v3439_v4, %v3437_v3  ;;  %v3475_v3 = vld [vmem:[#allocation19 + $0x1b0] sm:$0xff]  ;;  %v3478_v4 = vld [vmem:[#allocation19 + $0x1c8] sm:$0xff] }
 0x61e   :  { %5304 = vmatpush1.bf16.msra.mxu0 %v5303_v36  ;;  %v3441_v36 = vld [vmem:[#allocation19 + $0xa0] sm:$0xff] }
 0x61f   :  { %5432 = vmatpush1.bf16.msra.mxu1 %v5431_v8  ;;  %5306 = vmatprep.subr.bf16.mxu0 %v5305_v10  ;;  %v3443_v8 = vld [vmem:[#allocation19 + $0xb0] sm:$0xff]  ;;  %v3446_v10 = vld [vmem:[#allocation19 + $0xc8] sm:$0xff] }
 0x620   :  { %5434 = vmatprep.subr.bf16.mxu1 %v5433_v15  ;;  %v5463_v13 = vpack.c.bf16 %v3443_v8, %v3441_v36  ;;  %v5465_v14 = vpack.c.bf16 %v3448_v12, %v3446_v10  ;;  %v3445_v15 = vld [vmem:[#allocation19 + $0xc0] sm:$0xff]  ;;  %v3479_v36 = vld [vmem:[#allocation19 + $0x1d0] sm:$0xff]  ;;  %v3482_v8 = vld [vmem:[#allocation19 + $0x1e8] sm:$0xff] }
 0x621   :  { %v5467_v22 = vpack.c.bf16 %v3447_v17, %v3445_v15  ;;  %v3484_v10 = vld [vmem:[#allocation19 + $0x1f8] sm:$0xff]  ;;  %v3483_v15 = vld [vmem:[#allocation19 + $0x1f0] sm:$0xff]  ;;  %v3486_v17 = vld [vmem:[#allocation19 + $0x208] sm:$0xff] }
 0x622   :  { %5308 = vmatpush1.bf16.msra.mxu0 %v5307_v26  ;;  %v3449_v26 = vld [vmem:[#allocation19 + $0xe0] sm:$0xff] }
 0x623   :  { %5436 = vmatpush1.bf16.msra.mxu1 %v5435_v23  ;;  %5310 = vmatprep.subr.bf16.mxu0 %v5309_v27  ;;  %v3451_v23 = vld [vmem:[#allocation19 + $0xf0] sm:$0xff]  ;;  %v3454_v27 = vld [vmem:[#allocation19 + $0x108] sm:$0xff] }
 0x624   :  { %5438 = vmatprep.subr.bf16.mxu1 %v5437_v58  ;;  %v5471_v31 = vpack.c.bf16 %v3451_v23, %v3449_v26  ;;  %v5473_v32 = vpack.c.bf16 %v3456_v28, %v3454_v27  ;;  %v3453_v58 = vld [vmem:[#allocation19 + $0x100] sm:$0xff] }
 0x626   :  { %5312 = vmatpush1.bf16.msra.mxu0 %v5311_v40  ;;  %v5475_v40 = vpack.c.bf16 %v3455_v33, %v3453_v58 }
 0x627   :  { %5440 = vmatpush1.bf16.msra.mxu1 %v5439_v30  ;;  %5442 = vmatprep.subr.bf16.mxu0 %v5441_v43  ;;  %v5477_v30 = vpack.c.bf16 %v3460_v38, %v3458_v35  ;;  %v3457_v43 = vld [vmem:[#allocation19 + $0x120] sm:$0xff]  ;;  %v3487_v38 = vld [vmem:[#allocation19 + $0x210] sm:$0xff] }
 0x628   :  { %v5479_v47 = vpack.c.bf16 %v3459_v44, %v3457_v43  ;;  %v3485_v35 = vld [vmem:[#allocation19 + $0x200] sm:$0xff]  ;;  %v3490_v43 = vld [vmem:[#allocation19 + $0x228] sm:$0xff]  ;;  %v3492_v44 = vld [vmem:[#allocation19 + $0x238] sm:$0xff] }
 0x629   :  { %3265 = vmatmul.mubr.f32.vlgmr.msra.gmra.mrb[8].mxu0 %v6624_v39 }
 0x62a   :  { %3407 = vmatmul.mubr.f32.vlgmr.msra.gmra.mrb[16].mxu1 %v6624_v39  ;;  %5444 = vmatpush1.bf16.msra.mxu0 %v5443_v53  ;;  %v5457_v39 = vpack.c.bf16 %v3440_v2, %v3438_v1  ;;  %v5481_v53 = vpack.c.bf16 %v3464_v46, %v3462_v45  ;;  %v3476_v1 = vld [vmem:[#allocation19 + $0x1b8] sm:$0xff]  ;;  %v5507_v46 = vpack.c.bf16 %v3487_v38, %v3485_v35  ;;  %v3519_v35 = vld [vmem:[#allocation19 + $0x310] sm:$0xff]  ;;  %v3522_v38 = vld [vmem:[#allocation19 + $0x328] sm:$0xff] }
 0x62b   :  { %5446 = vmatprep.subr.bf16.mxu0 %v5445_v49  ;;  %v3461_v49 = vld [vmem:[#allocation19 + $0x140] sm:$0xff] }
 0x62c   :  { %v5483_v54 = vpack.c.bf16 %v3463_v50, %v3461_v49  ;;  %v3489_v49 = vld [vmem:[#allocation19 + $0x220] sm:$0xff]  ;;  %v3491_v50 = vld [vmem:[#allocation19 + $0x230] sm:$0xff] }
 0x62e   :  { %5448 = vmatpush1.bf16.msra.mxu0 %v5447_v55  ;;  %v5485_v55 = vpack.c.bf16 %v3468_v52, %v3466_v51  ;;  %v3496_v52 = vld [vmem:[#allocation19 + $0x258] sm:$0xff] }
 0x62f   :  { %5450 = vmatprep.subr.bf16.mxu0 %v5449_v56  ;;  %v3465_v56 = vld [vmem:[#allocation19 + $0x160] sm:$0xff] }
 0x630   :  { %v5487_v11 = vpack.c.bf16 %v3467_v62, %v3465_v56  ;;  %v3493_v56 = vld [vmem:[#allocation19 + $0x240] sm:$0xff]  ;;  %v3495_v62 = vld [vmem:[#allocation19 + $0x250] sm:$0xff] }
 0x632   :  { %5452 = vmatpush1.bf16.msra.mxu0 %v5451_v60  ;;  %v5489_v60 = vpack.c.bf16 %v3472_v41, %v3470_v57  ;;  %v3498_v57 = vld [vmem:[#allocation19 + $0x268] sm:$0xff]  ;;  %v3500_v41 = vld [vmem:[#allocation19 + $0x278] sm:$0xff] }
 0x633   :  { %5454 = vmatprep.subr.bf16.mxu0 %v5453_v61  ;;  %v3469_v61 = vld [vmem:[#allocation19 + $0x180] sm:$0xff] }
 0x634   :  { %v5491_v2 = vpack.c.bf16 %v3471_v18, %v3469_v61  ;;  %v3497_v61 = vld [vmem:[#allocation19 + $0x260] sm:$0xff]  ;;  %v3499_v18 = vld [vmem:[#allocation19 + $0x270] sm:$0xff] }
 0x636   :  { %5456 = vmatpush1.bf16.msra.mxu0 %v5455_v6  ;;  %v5493_v6 = vpack.c.bf16 %v3476_v1, %v3474_v0  ;;  %v3502_v0 = vld [vmem:[#allocation19 + $0x288] sm:$0xff]  ;;  %v3504_v1 = vld [vmem:[#allocation19 + $0x298] sm:$0xff] }
 0x637   :  { %5458 = vmatprep.subr.bf16.mxu0 %v5457_v39  ;;  %v3473_v39 = vld [vmem:[#allocation19 + $0x1a0] sm:$0xff] }
 0x638   :  { %v5495_v48 = vpack.c.bf16 %v3475_v3, %v3473_v39  ;;  %v3501_v39 = vld [vmem:[#allocation19 + $0x280] sm:$0xff]  ;;  %v3503_v3 = vld [vmem:[#allocation19 + $0x290] sm:$0xff] }
 0x63a   :  { %5460 = vmatpush1.bf16.msra.mxu0 %v5459_v7  ;;  %v5497_v7 = vpack.c.bf16 %v3480_v5, %v3478_v4  ;;  %v3506_v4 = vld [vmem:[#allocation19 + $0x2a8] sm:$0xff]  ;;  %v3508_v5 = vld [vmem:[#allocation19 + $0x2b8] sm:$0xff] }
 0x63b   :  { %5462 = vmatprep.subr.bf16.mxu0 %v5461_v25  ;;  %v3477_v25 = vld [vmem:[#allocation19 + $0x1c0] sm:$0xff] }
 0x63c   :  { %v5499_v12 = vpack.c.bf16 %v3479_v36, %v3477_v25  ;;  %v3505_v25 = vld [vmem:[#allocation19 + $0x2a0] sm:$0xff]  ;;  %v3507_v36 = vld [vmem:[#allocation19 + $0x2b0] sm:$0xff] }
 0x63e   :  { %5464 = vmatpush1.bf16.msra.mxu0 %v5463_v13  ;;  %v5501_v13 = vpack.c.bf16 %v3484_v10, %v3482_v8  ;;  %v3510_v8 = vld [vmem:[#allocation19 + $0x2c8] sm:$0xff]  ;;  %v3512_v10 = vld [vmem:[#allocation19 + $0x2d8] sm:$0xff] }
 0x63f   :  { %5466 = vmatprep.subr.bf16.mxu0 %v5465_v14  ;;  %v3481_v14 = vld [vmem:[#allocation19 + $0x1e0] sm:$0xff] }
 0x640   :  { %v5503_v21 = vpack.c.bf16 %v3483_v15, %v3481_v14  ;;  %v3509_v14 = vld [vmem:[#allocation19 + $0x2c0] sm:$0xff]  ;;  %v3511_v15 = vld [vmem:[#allocation19 + $0x2d0] sm:$0xff] }
 0x642   :  { %5468 = vmatpush1.bf16.msra.mxu0 %v5467_v22  ;;  %v5505_v22 = vpack.c.bf16 %v3488_v20, %v3486_v17  ;;  %v3514_v17 = vld [vmem:[#allocation19 + $0x2e8] sm:$0xff]  ;;  %v3516_v20 = vld [vmem:[#allocation19 + $0x2f8] sm:$0xff] }
 0x643   :  { %5470 = vmatprep.subr.bf16.mxu0 %v5469_v24  ;;  %v6636_v24 = vld [vmem:[#allocation17] sm:$0xff] }
 0x644   :  { %v2808_v26 = vrot.slane %v6636_v24, %v6336_v16  ;;  %v2812_v23 = vrot.slane %v6636_v24, %v6341_v19  ;;  %v2820_v27 = vrot.slane %v6636_v24, %v6358_v34  ;;  %v3494_v34 = vld [vmem:[#allocation19 + $0x248] sm:$0xff] }
 0x646   :  { %5472 = vmatpush1.bf16.msra.mxu0 %v5471_v31 }
 0x647   :  { %5474 = vmatprep.subr.bf16.mxu0 %v5473_v32 }
 0x64a   :  { %5476 = vmatpush1.bf16.msra.mxu0 %v5475_v40 }
 0x64b   :  { %5478 = vmatprep.subr.bf16.mxu0 %v5477_v30 }
 0x64e   :  { %5480 = vmatpush1.bf16.msra.mxu0 %v5479_v47 }
 0x64f   :  { %5482 = vmatprep.subr.bf16.mxu0 %v5481_v53  ;;  %v5509_v53 = vpack.c.bf16 %v3492_v44, %v3490_v43  ;;  %v3521_v44 = vld [vmem:[#allocation19 + $0x320] sm:$0xff] }
 0x652   :  { %5484 = vmatpush1.bf16.msra.mxu0 %v5483_v54  ;;  %v5511_v54 = vpack.c.bf16 %v3491_v50, %v3489_v49  ;;  %v3525_v50 = vld [vmem:[#allocation19 + $0x340] sm:$0xff] }
 0x653   :  { %5486 = vmatprep.subr.bf16.mxu0 %v5485_v55  ;;  %v5513_v55 = vpack.c.bf16 %v3496_v52, %v3494_v34  ;;  %v3530_v34 = vld [vmem:[#allocation19 + $0x368] sm:$0xff]  ;;  %v3532_v52 = vld [vmem:[#allocation19 + $0x378] sm:$0xff] }
 0x656   :  { %5488 = vmatpush1.bf16.msra.mxu0 %v5487_v11  ;;  %v5515_v11 = vpack.c.bf16 %v3495_v62, %v3493_v56  ;;  %v3529_v56 = vld [vmem:[#allocation19 + $0x360] sm:$0xff]  ;;  %v3531_v62 = vld [vmem:[#allocation19 + $0x370] sm:$0xff] }
 0x657   :  { %5490 = vmatprep.subr.bf16.mxu0 %v5489_v60  ;;  %v5517_v60 = vpack.c.bf16 %v3500_v41, %v3498_v57  ;;  %v3534_v57 = vld [vmem:[#allocation19 + $0x388] sm:$0xff]  ;;  %v3536_v41 = vld [vmem:[#allocation19 + $0x398] sm:$0xff] }
 0x65a   :  { %5492 = vmatpush1.bf16.msra.mxu0 %v5491_v2  ;;  %v5519_v2 = vpack.c.bf16 %v3499_v18, %v3497_v61  ;;  %v3533_v61 = vld [vmem:[#allocation19 + $0x380] sm:$0xff]  ;;  %v3535_v18 = vld [vmem:[#allocation19 + $0x390] sm:$0xff] }
 0x65b   :  { %5494 = vmatprep.subr.bf16.mxu0 %v5493_v6  ;;  %v5521_v6 = vpack.c.bf16 %v3504_v1, %v3502_v0  ;;  %v3538_v0 = vld [vmem:[#allocation19 + $0x3a8] sm:$0xff]  ;;  %v3540_v1 = vld [vmem:[#allocation19 + $0x3b8] sm:$0xff] }
 0x65e   :  { %5496 = vmatpush1.bf16.msra.mxu0 %v5495_v48  ;;  %v5523_v48 = vpack.c.bf16 %v3503_v3, %v3501_v39  ;;  %v3537_v39 = vld [vmem:[#allocation19 + $0x3a0] sm:$0xff]  ;;  %v3539_v3 = vld [vmem:[#allocation19 + $0x3b0] sm:$0xff] }
 0x65f   :  { %5498 = vmatprep.subr.bf16.mxu0 %v5497_v7  ;;  %v5525_v7 = vpack.c.bf16 %v3508_v5, %v3506_v4  ;;  %v3542_v4 = vld [vmem:[#allocation19 + $0x3c8] sm:$0xff]  ;;  %v3544_v5 = vld [vmem:[#allocation19 + $0x3d8] sm:$0xff] }
 0x662   :  { %5500 = vmatpush1.bf16.msra.mxu0 %v5499_v12  ;;  %v5527_v12 = vpack.c.bf16 %v3507_v36, %v3505_v25  ;;  %v3541_v25 = vld [vmem:[#allocation19 + $0x3c0] sm:$0xff]  ;;  %v3543_v36 = vld [vmem:[#allocation19 + $0x3d0] sm:$0xff] }
 0x663   :  { %5502 = vmatprep.subr.bf16.mxu0 %v5501_v13  ;;  %v5529_v13 = vpack.c.bf16 %v3512_v10, %v3510_v8  ;;  %v3546_v8 = vld [vmem:[#allocation19 + $0x3e8] sm:$0xff]  ;;  %v3548_v10 = vld [vmem:[#allocation19 + $0x3f8] sm:$0xff] }
 0x666   :  { %5504 = vmatpush1.bf16.msra.mxu0 %v5503_v21  ;;  %v5531_v21 = vpack.c.bf16 %v3511_v15, %v3509_v14  ;;  %v5565_v14 = vpack.c.bf16 %v3548_v10, %v3546_v8  ;;  %v3545_v15 = vld [vmem:[#allocation19 + $0x3e0] sm:$0xff]  ;;  %v3579_v8 = vld [vmem:[#allocation19 + $0x4f0] sm:$0xff]  ;;  %v3582_v10 = vld [vmem:[#allocation19 + $0x508] sm:$0xff] }
 0x667   :  { %5506 = vmatprep.subr.bf16.mxu0 %v5505_v22  ;;  %v5533_v22 = vpack.c.bf16 %v3516_v20, %v3514_v17  ;;  %v3547_v17 = vld [vmem:[#allocation19 + $0x3f0] sm:$0xff]  ;;  %v3550_v20 = vld [vmem:[#allocation19 + $0x408] sm:$0xff] }
 0x67c   :  { %v2982_v28 = vpop.f32.mrb[6].mxu0  ;;  %v6644_v31 = vpop.f32.mrb[14].mxu1 }
 0x67d   :  { %v5701_v32 = vadd.f32 %v2982_v28, %v2808_v26  ;;  %v2984_v58 = vpop.f32.mrb[7].mxu0  ;;  %v3126_v33 = vpop.f32.mrb[15].mxu1  ;;  %v3513_v26 = vld [vmem:[#allocation19 + $0x2e0] sm:$0xff]  ;;  %v3520_v28 = vld [vmem:[#allocation19 + $0x318] sm:$0xff] }
 0x67e   :  { %v5702_v40 = vadd.f32 %v2984_v58, %v2812_v23  ;;  %v5704_v30 = vadd.f32 %v3126_v33, %v2820_v27  ;;  %v3515_v23 = vld [vmem:[#allocation19 + $0x2f0] sm:$0xff]  ;;  %v3518_v27 = vld [vmem:[#allocation19 + $0x308] sm:$0xff]  ;;  %v3517_v33 = vld [vmem:[#allocation19 + $0x300] sm:$0xff] }
 0x67f   :  { %v3413_v47 = vmax.f32 %v5701_v32, 0.0  ;;  %v5535_v32 = vpack.c.bf16 %v3515_v23, %v3513_v26  ;;  %v5537_v58 = vpack.c.bf16 %v3520_v28, %v3518_v27  ;;  %v3549_v27 = vld [vmem:[#allocation19 + $0x400] sm:$0xff]  ;;  %v3551_v28 = vld [vmem:[#allocation19 + $0x410] sm:$0xff] }
 0x680   :  { %v3414_v45 = vmax.f32 %v5702_v40, 0.0  ;;  %v3416_v51 = vmax.f32 %v5704_v30, 0.0  ;;  %v3524_v40 = vld [vmem:[#allocation19 + $0x338] sm:$0xff]  ;;  %v5539_v30 = vpack.c.bf16 %v3519_v35, %v3517_v33  ;;  %v5571_v33 = vpack.c.bf16 %v3551_v28, %v3549_v27  ;;  %v3587_v27 = vld [vmem:[#allocation19 + $0x530] sm:$0xff]  ;;  %v3590_v28 = vld [vmem:[#allocation19 + $0x548] sm:$0xff] }
 0x681   :  { %v5541_v43 = vpack.c.bf16 %v3524_v40, %v3522_v38  ;;  %v3553_v38 = vld [vmem:[#allocation19 + $0x420] sm:$0xff]  ;;  %v3555_v40 = vld [vmem:[#allocation19 + $0x430] sm:$0xff] }
 0x682   :  { %3753 = vmatprep.mubr.f32.mxu0 %v3414_v45  ;;  %v3523_v45 = vld [vmem:[#allocation19 + $0x330] sm:$0xff] }
 0x683   :  { %3754 = vmatmul.mubr.f32.vlgmr.msra.gmra.mrb[10].mxu0 %v3413_v47  ;;  %v3528_v47 = vld [vmem:[#allocation19 + $0x358] sm:$0xff] }
 0x684   :  { %5508 = vmatpush1.bf16.msra.mxu0 %v5507_v46  ;;  %3824 = vmatprep.mubr.f32.mxu0 %v3416_v51  ;;  %v3526_v46 = vld [vmem:[#allocation19 + $0x348] sm:$0xff]  ;;  %v3527_v51 = vld [vmem:[#allocation19 + $0x350] sm:$0xff] }
 0x685   :  { %5510 = vmatprep.subr.bf16.mxu0 %v5509_v53  ;;  %v5543_v53 = vpack.c.bf16 %v3523_v45, %v3521_v44  ;;  %v5545_v49 = vpack.c.bf16 %v3528_v47, %v3526_v46  ;;  %v5575_v44 = vpack.c.bf16 %v3555_v40, %v3553_v38  ;;  %v3557_v45 = vld [vmem:[#allocation19 + $0x440] sm:$0xff]  ;;  %v3559_v46 = vld [vmem:[#allocation19 + $0x450] sm:$0xff]  ;;  %v3562_v47 = vld [vmem:[#allocation19 + $0x468] sm:$0xff] }
 0x686   :  { %v3594_v38 = vld [vmem:[#allocation19 + $0x568] sm:$0xff]  ;;  %v3596_v40 = vld [vmem:[#allocation19 + $0x578] sm:$0xff] }
 0x688   :  { %5512 = vmatpush1.bf16.msra.mxu0 %v5511_v54  ;;  %v5547_v54 = vpack.c.bf16 %v3527_v51, %v3525_v50  ;;  %v3561_v51 = vld [vmem:[#allocation19 + $0x460] sm:$0xff] }
 0x689   :  { %5514 = vmatprep.subr.bf16.mxu0 %v5513_v55  ;;  %v5549_v55 = vpack.c.bf16 %v3532_v52, %v3530_v34  ;;  %v3563_v34 = vld [vmem:[#allocation19 + $0x470] sm:$0xff]  ;;  %v3566_v52 = vld [vmem:[#allocation19 + $0x488] sm:$0xff] }
 0x68c   :  { %5516 = vmatpush1.bf16.msra.mxu0 %v5515_v11  ;;  %v5551_v11 = vpack.c.bf16 %v3531_v62, %v3529_v56  ;;  %v3565_v62 = vld [vmem:[#allocation19 + $0x480] sm:$0xff] }
 0x68d   :  { %5518 = vmatprep.subr.bf16.mxu0 %v5517_v60  ;;  %v5553_v60 = vpack.c.bf16 %v3536_v41, %v3534_v57  ;;  %v3567_v57 = vld [vmem:[#allocation19 + $0x490] sm:$0xff]  ;;  %v3570_v41 = vld [vmem:[#allocation19 + $0x4a8] sm:$0xff] }
 0x690   :  { %5520 = vmatpush1.bf16.msra.mxu0 %v5519_v2  ;;  %v5555_v2 = vpack.c.bf16 %v3535_v18, %v3533_v61  ;;  %v3569_v18 = vld [vmem:[#allocation19 + $0x4a0] sm:$0xff] }
 0x691   :  { %5522 = vmatprep.subr.bf16.mxu0 %v5521_v6  ;;  %v5557_v6 = vpack.c.bf16 %v3540_v1, %v3538_v0  ;;  %v3571_v0 = vld [vmem:[#allocation19 + $0x4b0] sm:$0xff]  ;;  %v3574_v1 = vld [vmem:[#allocation19 + $0x4c8] sm:$0xff] }
 0x694   :  { %5524 = vmatpush1.bf16.msra.mxu0 %v5523_v48  ;;  %v5559_v48 = vpack.c.bf16 %v3539_v3, %v3537_v39  ;;  %v3573_v3 = vld [vmem:[#allocation19 + $0x4c0] sm:$0xff] }
 0x695   :  { %5526 = vmatprep.subr.bf16.mxu0 %v5525_v7  ;;  %v5561_v7 = vpack.c.bf16 %v3544_v5, %v3542_v4  ;;  %v3575_v4 = vld [vmem:[#allocation19 + $0x4d0] sm:$0xff]  ;;  %v3578_v5 = vld [vmem:[#allocation19 + $0x4e8] sm:$0xff] }
 0x698   :  { %5528 = vmatpush1.bf16.msra.mxu0 %v5527_v12  ;;  %v5563_v12 = vpack.c.bf16 %v3543_v36, %v3541_v25  ;;  %v3577_v36 = vld [vmem:[#allocation19 + $0x4e0] sm:$0xff] }
 0x699   :  { %5530 = vmatprep.subr.bf16.mxu0 %v5529_v13  ;;  %v2816_v13 = vrot.slane %v6636_v24, %v6355_v29 }
 0x69b   :  { %v5703_v26 = vadd.f32 %v6644_v31, %v2816_v13  ;;  %v5599_v13 = vpack.c.bf16 %v3579_v8, %v3577_v36 }
 0x69c   :  { %5532 = vmatpush1.bf16.msra.mxu0 %v5531_v21  ;;  %v3552_v21 = vld [vmem:[#allocation19 + $0x418] sm:$0xff] }
 0x69d   :  { %5534 = vmatprep.subr.bf16.mxu0 %v5533_v22  ;;  %v5567_v22 = vpack.c.bf16 %v3547_v17, %v3545_v15  ;;  %v5569_v23 = vpack.c.bf16 %v3552_v21, %v3550_v20  ;;  %v3415_v35 = vmax.f32 %v5703_v26, 0.0  ;;  %v3581_v15 = vld [vmem:[#allocation19 + $0x500] sm:$0xff]  ;;  %v3583_v17 = vld [vmem:[#allocation19 + $0x510] sm:$0xff]  ;;  %v3586_v20 = vld [vmem:[#allocation19 + $0x528] sm:$0xff] }
 0x69e   :  { %v3588_v21 = vld [vmem:[#allocation19 + $0x538] sm:$0xff] }
 0x69f   :  { %v5605_v26 = vpack.c.bf16 %v3588_v21, %v3586_v20  ;;  %v3620_v20 = vld [vmem:[#allocation19 + $0x638] sm:$0xff] }
 0x6a0   :  { %5536 = vmatpush1.bf16.msra.mxu0 %v5535_v32  ;;  %v3554_v32 = vld [vmem:[#allocation19 + $0x428] sm:$0xff] }
 0x6a1   :  { %5538 = vmatprep.subr.bf16.mxu0 %v5537_v58  ;;  %v3556_v58 = vld [vmem:[#allocation19 + $0x438] sm:$0xff] }
 0x6a2   :  { %v5573_v29 = vpack.c.bf16 %v3556_v58, %v3554_v32  ;;  %v3592_v32 = vld [vmem:[#allocation19 + $0x558] sm:$0xff] }
 0x6a4   :  { %5540 = vmatpush1.bf16.msra.mxu0 %v5539_v30  ;;  %v3558_v30 = vld [vmem:[#allocation19 + $0x448] sm:$0xff] }
 0x6a5   :  { %5542 = vmatprep.subr.bf16.mxu0 %v5541_v43  ;;  %v3560_v43 = vld [vmem:[#allocation19 + $0x458] sm:$0xff] }
 0x6a6   :  { %v5577_v31 = vpack.c.bf16 %v3560_v43, %v3558_v30  ;;  %v5613_v43 = vpack.c.bf16 %v3596_v40, %v3594_v38  ;;  %v3621_v38 = vld [vmem:[#allocation19 + $0x640] sm:$0xff]  ;;  %v3623_v40 = vld [vmem:[#allocation19 + $0x650] sm:$0xff] }
 0x6a8   :  { %5544 = vmatpush1.bf16.msra.mxu0 %v5543_v53  ;;  %v3564_v53 = vld [vmem:[#allocation19 + $0x478] sm:$0xff] }
 0x6a9   :  { %5546 = vmatprep.subr.bf16.mxu0 %v5545_v49  ;;  %v5579_v49 = vpack.c.bf16 %v3559_v46, %v3557_v45  ;;  %v5581_v50 = vpack.c.bf16 %v3564_v53, %v3562_v47  ;;  %v3598_v45 = vld [vmem:[#allocation19 + $0x588] sm:$0xff]  ;;  %v3600_v46 = vld [vmem:[#allocation19 + $0x598] sm:$0xff] }
 0x6aa   :  { %v5617_v53 = vpack.c.bf16 %v3600_v46, %v3598_v45  ;;  %v3625_v45 = vld [vmem:[#allocation19 + $0x660] sm:$0xff]  ;;  %v3627_v46 = vld [vmem:[#allocation19 + $0x670] sm:$0xff] }
 0x6ac   :  { %5548 = vmatpush1.bf16.msra.mxu0 %v5547_v54  ;;  %v3568_v54 = vld [vmem:[#allocation19 + $0x498] sm:$0xff] }
 0x6ad   :  { %5550 = vmatprep.subr.bf16.mxu0 %v5549_v55  ;;  %v5583_v55 = vpack.c.bf16 %v3563_v34, %v3561_v51  ;;  %v5585_v56 = vpack.c.bf16 %v3568_v54, %v3566_v52  ;;  %v3602_v51 = vld [vmem:[#allocation19 + $0x5a8] sm:$0xff]  ;;  %v3604_v34 = vld [vmem:[#allocation19 + $0x5b8] sm:$0xff] }
 0x6ae   :  { %v5621_v54 = vpack.c.bf16 %v3604_v34, %v3602_v51  ;;  %v3629_v51 = vld [vmem:[#allocation19 + $0x680] sm:$0xff]  ;;  %v3631_v34 = vld [vmem:[#allocation19 + $0x690] sm:$0xff] }
 0x6b0   :  { %5552 = vmatpush1.bf16.msra.mxu0 %v5551_v11  ;;  %v3572_v11 = vld [vmem:[#allocation19 + $0x4b8] sm:$0xff] }
 0x6b1   :  { %5554 = vmatprep.subr.bf16.mxu0 %v5553_v60  ;;  %v5587_v60 = vpack.c.bf16 %v3567_v57, %v3565_v62  ;;  %v5589_v61 = vpack.c.bf16 %v3572_v11, %v3570_v41  ;;  %v3606_v62 = vld [vmem:[#allocation19 + $0x5c8] sm:$0xff]  ;;  %v3608_v57 = vld [vmem:[#allocation19 + $0x5d8] sm:$0xff] }
 0x6b2   :  { %v5625_v11 = vpack.c.bf16 %v3608_v57, %v3606_v62  ;;  %v3633_v62 = vld [vmem:[#allocation19 + $0x6a0] sm:$0xff]  ;;  %v3635_v57 = vld [vmem:[#allocation19 + $0x6b0] sm:$0xff] }
 0x6b4   :  { %5556 = vmatpush1.bf16.msra.mxu0 %v5555_v2  ;;  %v3576_v2 = vld [vmem:[#allocation19 + $0x4d8] sm:$0xff] }
 0x6b5   :  { %5558 = vmatprep.subr.bf16.mxu0 %v5557_v6  ;;  %v5591_v6 = vpack.c.bf16 %v3571_v0, %v3569_v18  ;;  %v5593_v39 = vpack.c.bf16 %v3576_v2, %v3574_v1  ;;  %v3610_v18 = vld [vmem:[#allocation19 + $0x5e8] sm:$0xff]  ;;  %v3612_v0 = vld [vmem:[#allocation19 + $0x5f8] sm:$0xff]  ;;  %v2824_v2 = vrot.slane %v6636_v24, %v472_v59 }
 0x6b8   :  { %5560 = vmatpush1.bf16.msra.mxu0 %v5559_v48  ;;  %v3580_v48 = vld [vmem:[#allocation19 + $0x4f8] sm:$0xff] }
 0x6b9   :  { %5562 = vmatprep.subr.bf16.mxu0 %v5561_v7  ;;  %v5595_v7 = vpack.c.bf16 %v3575_v4, %v3573_v3  ;;  %v5597_v25 = vpack.c.bf16 %v3580_v48, %v3578_v5  ;;  %v3611_v3 = vld [vmem:[#allocation19 + $0x5f0] sm:$0xff]  ;;  %v2828_v4 = vrot.slane %v6636_v24, %v476_v63  ;;  %v3614_v5 = vld [vmem:[#allocation19 + $0x608] sm:$0xff]  ;;  %v3616_v48 = vld [vmem:[#allocation19 + $0x618] sm:$0xff] }
 0x6ba   :  { %v3618_v63 = vld [vmem:[#allocation19 + $0x628] sm:$0xff] }
 0x6bc   :  { %5564 = vmatpush1.bf16.msra.mxu0 %v5563_v12  ;;  %v3584_v12 = vld [vmem:[#allocation19 + $0x518] sm:$0xff] }
 0x6bd   :  { %5566 = vmatprep.subr.bf16.mxu0 %v5565_v14  ;;  %v5601_v14 = vpack.c.bf16 %v3584_v12, %v3582_v10  ;;  %v5633_v12 = vpack.c.bf16 %v3616_v48, %v3614_v5  ;;  %v3646_v5 = vld [vmem:[#allocation19 + $0x708] sm:$0xff]  ;;  %v3648_v48 = vld [vmem:[#allocation19 + $0x718] sm:$0xff] }
 0x6c0   :  { %5568 = vmatpush1.bf16.msra.mxu0 %v5567_v22  ;;  %v5603_v22 = vpack.c.bf16 %v3583_v17, %v3581_v15 }
 0x6c1   :  { %5570 = vmatprep.subr.bf16.mxu0 %v5569_v23  ;;  %v3585_v23 = vld [vmem:[#allocation19 + $0x520] sm:$0xff] }
 0x6c2   :  { %v5607_v58 = vpack.c.bf16 %v3587_v27, %v3585_v23  ;;  %v5637_v23 = vpack.c.bf16 %v3620_v20, %v3618_v63  ;;  %v3617_v27 = vld [vmem:[#allocation19 + $0x620] sm:$0xff]  ;;  %v3654_v63 = vld [vmem:[#allocation19 + $0x748] sm:$0xff]  ;;  %v3656_v20 = vld [vmem:[#allocation19 + $0x758] sm:$0xff] }
 0x6c3   :  { %3825 = vmatmul.mubr.f32.vlgmr.msra.gmra.mrb[10].mxu0 %v3415_v35  ;;  %v3589_v35 = vld [vmem:[#allocation19 + $0x540] sm:$0xff] }
 0x6c4   :  { %5572 = vmatpush1.bf16.msra.mxu0 %v5571_v33  ;;  %v5609_v33 = vpack.c.bf16 %v3592_v32, %v3590_v28  ;;  %v3619_v28 = vld [vmem:[#allocation19 + $0x630] sm:$0xff] }
 0x6c5   :  { %5574 = vmatprep.subr.bf16.mxu0 %v5573_v29  ;;  %v3591_v29 = vld [vmem:[#allocation19 + $0x550] sm:$0xff] }
 0x6c6   :  { %v5611_v30 = vpack.c.bf16 %v3591_v29, %v3589_v35  ;;  %v5639_v35 = vpack.c.bf16 %v3619_v28, %v3617_v27  ;;  %v3660_v27 = vld [vmem:[#allocation19 + $0x778] sm:$0xff] }
 0x6c8   :  { %5576 = vmatpush1.bf16.msra.mxu0 %v5575_v44  ;;  %v3593_v44 = vld [vmem:[#allocation19 + $0x560] sm:$0xff] }
 0x6c9   :  { %5578 = vmatprep.subr.bf16.mxu0 %v5577_v31  ;;  %v3595_v31 = vld [vmem:[#allocation19 + $0x570] sm:$0xff] }
 0x6ca   :  { %v5615_v47 = vpack.c.bf16 %v3595_v31, %v3593_v44  ;;  %v5643_v44 = vpack.c.bf16 %v3623_v40, %v3621_v38 }
 0x6cc   :  { %5580 = vmatpush1.bf16.msra.mxu0 %v5579_v49  ;;  %v3597_v49 = vld [vmem:[#allocation19 + $0x580] sm:$0xff] }
 0x6cd   :  { %5582 = vmatprep.subr.bf16.mxu0 %v5581_v50  ;;  %v3599_v50 = vld [vmem:[#allocation19 + $0x590] sm:$0xff] }
 0x6ce   :  { %v5619_v52 = vpack.c.bf16 %v3599_v50, %v3597_v49  ;;  %v5647_v49 = vpack.c.bf16 %v3627_v46, %v3625_v45 }
 0x6d0   :  { %5584 = vmatpush1.bf16.msra.mxu0 %v5583_v55  ;;  %v3601_v55 = vld [vmem:[#allocation19 + $0x5a0] sm:$0xff] }
 0x6d1   :  { %5586 = vmatprep.subr.bf16.mxu0 %v5585_v56  ;;  %v3603_v56 = vld [vmem:[#allocation19 + $0x5b0] sm:$0xff] }
 0x6d2   :  { %v5623_v41 = vpack.c.bf16 %v3603_v56, %v3601_v55  ;;  %v5651_v55 = vpack.c.bf16 %v3631_v34, %v3629_v51 }
 0x6d4   :  { %5588 = vmatpush1.bf16.msra.mxu0 %v5587_v60  ;;  %v3605_v60 = vld [vmem:[#allocation19 + $0x5c0] sm:$0xff] }
 0x6d5   :  { %5590 = vmatprep.subr.bf16.mxu0 %v5589_v61  ;;  %v3607_v61 = vld [vmem:[#allocation19 + $0x5d0] sm:$0xff] }
 0x6d6   :  { %v5627_v1 = vpack.c.bf16 %v3607_v61, %v3605_v60  ;;  %v5655_v60 = vpack.c.bf16 %v3635_v57, %v3633_v62  ;;  %v2832_v57 = vrot.slane %v6636_v24, %v480_v37 }
 0x6d8   :  { %5592 = vmatpush1.bf16.msra.mxu0 %v5591_v6  ;;  %v5629_v6 = vpack.c.bf16 %v3612_v0, %v3610_v18  ;;  %v3637_v18 = vld [vmem:[#allocation19 + $0x6c0] sm:$0xff]  ;;  %v3639_v0 = vld [vmem:[#allocation19 + $0x6d0] sm:$0xff] }
 0x6d9   :  { %5594 = vmatprep.subr.bf16.mxu0 %v5593_v39  ;;  %v3609_v39 = vld [vmem:[#allocation19 + $0x5e0] sm:$0xff] }
 0x6da   :  { %v5631_v36 = vpack.c.bf16 %v3611_v3, %v3609_v39  ;;  %v3641_v3 = vld [vmem:[#allocation19 + $0x6e0] sm:$0xff] }
 0x6dc   :  { %5596 = vmatpush1.bf16.msra.mxu0 %v5595_v7  ;;  %v2836_v7 = vrot.slane %v6636_v24, %v484_v42 }
 0x6dd   :  { %5598 = vmatprep.subr.bf16.mxu0 %v5597_v25 }
 0x6e0   :  { %5600 = vmatpush1.bf16.msra.mxu0 %v5599_v13  ;;  %v3613_v13 = vld [vmem:[#allocation19 + $0x600] sm:$0xff] }
 0x6e1   :  { %5602 = vmatprep.subr.bf16.mxu0 %v5601_v14  ;;  %v3615_v14 = vld [vmem:[#allocation19 + $0x610] sm:$0xff] }
 0x6e4   :  { %5604 = vmatpush1.bf16.msra.mxu0 %v5603_v22 }
 0x6e5   :  { %5606 = vmatprep.subr.bf16.mxu0 %v5605_v26  ;;  %v5635_v26 = vpack.c.bf16 %v3615_v14, %v3613_v13 }
 0x6e8   :  { %5608 = vmatpush1.bf16.msra.mxu0 %v5607_v58  ;;  %v3622_v58 = vld [vmem:[#allocation19 + $0x648] sm:$0xff] }
 0x6e9   :  { %5610 = vmatprep.subr.bf16.mxu0 %v5609_v33  ;;  %v3624_v33 = vld [vmem:[#allocation19 + $0x658] sm:$0xff] }
 0x6ea   :  { %v5641_v29 = vpack.c.bf16 %v3624_v33, %v3622_v58  ;;  %v3657_v58 = vld [vmem:[#allocation19 + $0x760] sm:$0xff]  ;;  %v3659_v33 = vld [vmem:[#allocation19 + $0x770] sm:$0xff] }
 0x6eb   :  { %v5679_v38 = vpack.c.bf16 %v3659_v33, %v3657_v58 }
 0x6ec   :  { %5612 = vmatpush1.bf16.msra.mxu0 %v5611_v30  ;;  %v3626_v30 = vld [vmem:[#allocation19 + $0x668] sm:$0xff] }
 0x6ed   :  { %5614 = vmatprep.subr.bf16.mxu0 %v5613_v43  ;;  %v3628_v43 = vld [vmem:[#allocation19 + $0x678] sm:$0xff] }
 0x6ee   :  { %v5645_v31 = vpack.c.bf16 %v3628_v43, %v3626_v30  ;;  %v3661_v30 = vld [vmem:[#allocation19 + $0x780] sm:$0xff]  ;;  %v3663_v43 = vld [vmem:[#allocation19 + $0x790] sm:$0xff] }
 0x6ef   :  { %v5683_v45 = vpack.c.bf16 %v3663_v43, %v3661_v30 }
 0x6f0   :  { %5616 = vmatpush1.bf16.msra.mxu0 %v5615_v47  ;;  %v3630_v47 = vld [vmem:[#allocation19 + $0x688] sm:$0xff] }
 0x6f1   :  { %5618 = vmatprep.subr.bf16.mxu0 %v5617_v53  ;;  %v3632_v53 = vld [vmem:[#allocation19 + $0x698] sm:$0xff] }
 0x6f2   :  { %v5649_v50 = vpack.c.bf16 %v3632_v53, %v3630_v47  ;;  %v3665_v47 = vld [vmem:[#allocation19 + $0x7a0] sm:$0xff]  ;;  %v3667_v53 = vld [vmem:[#allocation19 + $0x7b0] sm:$0xff] }
 0x6f3   :  { %v5687_v51 = vpack.c.bf16 %v3667_v53, %v3665_v47 }
 0x6f4   :  { %5620 = vmatpush1.bf16.msra.mxu0 %v5619_v52  ;;  %v3634_v52 = vld [vmem:[#allocation19 + $0x6a8] sm:$0xff] }
 0x6f5   :  { %5622 = vmatprep.subr.bf16.mxu0 %v5621_v54  ;;  %v3636_v54 = vld [vmem:[#allocation19 + $0x6b8] sm:$0xff] }
 0x6f6   :  { %v5653_v56 = vpack.c.bf16 %v3636_v54, %v3634_v52  ;;  %v3669_v52 = vld [vmem:[#allocation19 + $0x7c0] sm:$0xff]  ;;  %v3671_v54 = vld [vmem:[#allocation19 + $0x7d0] sm:$0xff] }
 0x6f7   :  { %v5691_v62 = vpack.c.bf16 %v3671_v54, %v3669_v52 }
 0x6f8   :  { %5624 = vmatpush1.bf16.msra.mxu0 %v5623_v41  ;;  %v3638_v41 = vld [vmem:[#allocation19 + $0x6c8] sm:$0xff] }
 0x6f9   :  { %5626 = vmatprep.subr.bf16.mxu0 %v5625_v11  ;;  %v3640_v11 = vld [vmem:[#allocation19 + $0x6d8] sm:$0xff] }
 0x6fa   :  { %v5657_v61 = vpack.c.bf16 %v3640_v11, %v3638_v41  ;;  %v3673_v11 = vld [vmem:[#allocation19 + $0x7e0] sm:$0xff] }
 0x6fc   :  { %5628 = vmatpush1.bf16.msra.mxu0 %v5627_v1  ;;  %v3266_v25 = vpop.f32.mrb[8].mxu0  ;;  %v3642_v1 = vld [vmem:[#allocation19 + $0x6e8] sm:$0xff] }
 0x6fd   :  { %v5705_v8 = vadd.f32 %v3266_v25, %v2824_v2  ;;  %v6658_v10 = vpop.f32.mrb[16].mxu1  ;;  %v3268_v59 = vpop.f32.mrb[9].mxu0  ;;  %5630 = vmatprep.subr.bf16.mxu0 %v5629_v6  ;;  %v3644_v2 = vld [vmem:[#allocation19 + $0x6f8] sm:$0xff]  ;;  %v5659_v6 = vpack.c.bf16 %v3639_v0, %v3637_v18  ;;  %v5665_v25 = vpack.c.bf16 %v3648_v48, %v3646_v5 }
 0x6fe   :  { %v5706_v15 = vadd.f32 %v3268_v59, %v2828_v4  ;;  %v3410_v17 = vpop.f32.mrb[17].mxu1  ;;  %v5661_v39 = vpack.c.bf16 %v3644_v2, %v3642_v1  ;;  %v3643_v4 = vld [vmem:[#allocation19 + $0x6f0] sm:$0xff]  ;;  %v3650_v59 = vld [vmem:[#allocation19 + $0x728] sm:$0xff]  ;;  %v5707_v18 = vadd.f32 %v6658_v10, %v2832_v57  ;;  %v3677_v1 = vld [vmem:[#allocation20] sm:$0x3] }
 0x6ff   :  { %v5708_v21 = vadd.f32 %v3410_v17, %v2836_v7  ;;  %v3417_v42 = vmax.f32 %v5705_v8, 0.0  ;;  %v5663_v7 = vpack.c.bf16 %v3643_v4, %v3641_v3  ;;  %v3647_v8 = vld [vmem:[#allocation19 + $0x710] sm:$0xff]  ;;  %v3682_v2 = vrot.slane %v3677_v1, %v6336_v16 }
 0x700   :  { %v3418_v22 = vmax.f32 %v5706_v15, 0.0  ;;  %5632 = vmatpush1.bf16.msra.mxu0 %v5631_v36  ;;  %v3645_v36 = vld [vmem:[#allocation19 + $0x700] sm:$0xff]  ;;  %v3651_v17 = vld [vmem:[#allocation19 + $0x730] sm:$0xff]  ;;  %v3419_v0 = vmax.f32 %v5707_v18, 0.0 }
 0x701   :  { %5634 = vmatprep.subr.bf16.mxu0 %v5633_v12  ;;  %v3420_v32 = vmax.f32 %v5708_v21, 0.0  ;;  %v3652_v12 = vld [vmem:[#allocation19 + $0x738] sm:$0xff]  ;;  %v5667_v13 = vpack.c.bf16 %v3647_v8, %v3645_v36  ;;  %v3649_v15 = vld [vmem:[#allocation19 + $0x720] sm:$0xff] }
 0x702   :  { %3895 = vmatprep.mubr.f32.mxu0 %v3418_v22  ;;  %v5669_v14 = vpack.c.bf16 %v3652_v12, %v3650_v59  ;;  %v5671_v21 = vpack.c.bf16 %v3651_v17, %v3649_v15  ;;  %v5673_v22 = vpack.c.bf16 %v3656_v20, %v3654_v63 }
 0x703   :  { %3896 = vmatmul.mubr.f32.vlgmr.msra.gmra.mrb[10].mxu0 %v3417_v42  ;;  %v3655_v42 = vld [vmem:[#allocation19 + $0x750] sm:$0xff] }
 0x704   :  { %5636 = vmatpush1.bf16.msra.mxu0 %v5635_v26  ;;  %3966 = vmatprep.mubr.f32.mxu0 %v3420_v32  ;;  %v3653_v26 = vld [vmem:[#allocation19 + $0x740] sm:$0xff] }
 0x705   :  { %5638 = vmatprep.subr.bf16.mxu0 %v5637_v23  ;;  %v3658_v23 = vld [vmem:[#allocation19 + $0x768] sm:$0xff]  ;;  %v5675_v28 = vpack.c.bf16 %v3655_v42, %v3653_v26 }
 0x706   :  { %v5677_v32 = vpack.c.bf16 %v3660_v27, %v3658_v23 }
 0x708   :  { %5640 = vmatpush1.bf16.msra.mxu0 %v5639_v35  ;;  %v3662_v35 = vld [vmem:[#allocation19 + $0x788] sm:$0xff] }
 0x709   :  { %5642 = vmatprep.subr.bf16.mxu0 %v5641_v29  ;;  %v3664_v29 = vld [vmem:[#allocation19 + $0x798] sm:$0xff] }
 0x70a   :  { %v5681_v40 = vpack.c.bf16 %v3664_v29, %v3662_v35 }
 0x70c   :  { %5644 = vmatpush1.bf16.msra.mxu0 %v5643_v44  ;;  %v3666_v44 = vld [vmem:[#allocation19 + $0x7a8] sm:$0xff] }
 0x70d   :  { %5646 = vmatprep.subr.bf16.mxu0 %v5645_v31  ;;  %v3668_v31 = vld [vmem:[#allocation19 + $0x7b8] sm:$0xff] }
 0x70e   :  { %v5685_v46 = vpack.c.bf16 %v3668_v31, %v3666_v44 }
 0x710   :  { %5648 = vmatpush1.bf16.msra.mxu0 %v5647_v49  ;;  %v3670_v49 = vld [vmem:[#allocation19 + $0x7c8] sm:$0xff] }
 0x711   :  { %5650 = vmatprep.subr.bf16.mxu0 %v5649_v50  ;;  %v3672_v50 = vld [vmem:[#allocation19 + $0x7d8] sm:$0xff] }
 0x712   :  { %v5689_v34 = vpack.c.bf16 %v3672_v50, %v3670_v49 }
 0x714   :  { %5652 = vmatpush1.bf16.msra.mxu0 %v5651_v55  ;;  %v3674_v55 = vld [vmem:[#allocation19 + $0x7e8] sm:$0xff] }
 0x715   :  { %5654 = vmatprep.subr.bf16.mxu0 %v5653_v56  ;;  %v3676_v56 = vld [vmem:[#allocation19 + $0x7f8] sm:$0xff] }
 0x716   :  { %v5693_v41 = vpack.c.bf16 %v3676_v56, %v3674_v55 }
 0x718   :  { %5656 = vmatpush1.bf16.msra.mxu0 %v5655_v60  ;;  %v3675_v60 = vld [vmem:[#allocation19 + $0x7f0] sm:$0xff] }
 0x719   :  { %5658 = vmatprep.subr.bf16.mxu0 %v5657_v61  ;;  %v5695_v61 = vpack.c.bf16 %v3675_v60, %v3673_v11 }
 0x71c   :  { %5660 = vmatpush1.bf16.msra.mxu0 %v5659_v6  ;;  %v3686_v6 = vrot.slane %v3677_v1, %v6341_v19 }
 0x71d   :  { %5662 = vmatprep.subr.bf16.mxu0 %v5661_v39 }
 0x720   :  { %5664 = vmatpush1.bf16.msra.mxu0 %v5663_v7 }
 0x721   :  { %5666 = vmatprep.subr.bf16.mxu0 %v5665_v25 }
 0x724   :  { %5668 = vmatpush1.bf16.msra.mxu0 %v5667_v13 }
 0x725   :  { %5670 = vmatprep.subr.bf16.mxu0 %v5669_v14 }
 0x728   :  { %5672 = vmatpush1.bf16.msra.mxu0 %v5671_v21 }
 0x729   :  { %5674 = vmatprep.subr.bf16.mxu0 %v5673_v22 }
 0x72c   :  { %5676 = vmatpush1.bf16.msra.mxu0 %v5675_v28 }
 0x72d   :  { %5678 = vmatprep.subr.bf16.mxu0 %v5677_v32 }
 0x730   :  { %5680 = vmatpush1.bf16.msra.mxu0 %v5679_v38 }
 0x731   :  { %5682 = vmatprep.subr.bf16.mxu0 %v5681_v40 }
 0x734   :  { %5684 = vmatpush1.bf16.msra.mxu0 %v5683_v45 }
 0x735   :  { %5686 = vmatprep.subr.bf16.mxu0 %v5685_v46 }
 0x738   :  { %5688 = vmatpush1.bf16.msra.mxu0 %v5687_v51 }
 0x739   :  { %5690 = vmatprep.subr.bf16.mxu0 %v5689_v34 }
 0x73c   :  { %5692 = vmatpush1.bf16.msra.mxu0 %v5691_v62 }
 0x73d   :  { %5694 = vmatprep.subr.bf16.mxu0 %v5693_v41 }
 0x740   :  { %5696 = vmatpush1.bf16.msra.mxu0 %v5695_v61 }
 0x743   :  { %3967 = vmatmul.mubr.f32.vlgmr.msra.gmra.mrb[10].mxu0 %v3419_v0 }
 0x816   :  { %v3968_v9 = vpop.f32.mrb[10].mxu0 }
 0x817   :  { %v5709_v39 = vadd.f32 %v3968_v9, %v3682_v2  ;;  %v3970_v37 = vpop.f32.mrb[11].mxu0 }
 0x818   :  { %v5710_v24 = vadd.f32 %v3970_v37, %v3686_v6 }
 0x819   :  { %v3973_v3 = vsub.f32 0.0, %v5709_v39 }
 0x81a   :  { %v3974_v4 = vsub.f32 0.0, %v5710_v24 }
 0x81b   :  { %v3975_v5 = vmul.f32 1.442695, %v3973_v3 }
 0x81c   :  { %v3977_v48 = vmul.f32 1.442695, %v3974_v4 }
 0x81d   :  { %5757 = vpow2.f32 %v3975_v5 }
 0x81e   :  { %5759 = vpow2.f32 %v3977_v48 }
 0x827   :  { %v5758_v10 = vpop.eup %5757 }
 0x828   :  { %v5760_v7 = vpop.eup %5759  ;;  %v3979_v25 = vadd.f32 1.0, %v5758_v10 }
 0x829   :  { %v3980_v36 = vadd.f32 1.0, %v5760_v7 }
 0x82a   :  { %5761 = vrcp.f32 %v3979_v25 }
 0x82b   :  { %5763 = vrcp.f32 %v3980_v36 }
 0x834   :  { %v5762_v16 = vpop.eup %5761 }
 0x835   :  { %v5764_v19 = vpop.eup %5763  ;;  %3985 = vst [vmem:[#allocation22] sm:$0xff] %v5762_v16 }
 0x836   :  { %3986 = vst [vmem:[#allocation22 + $0x8] sm:$0xff] %v5764_v19 }
 0x837   :  { %6042 = shalt.err (!%p6039_p2)
}
 0x838   :  { %s6043_s6 = scalar_lea.hbm %s6691_s13, 256 }
 0x839   :  { %p6044_p3 = scmp.ne.s32.totalorder %s6691_s13, %s6043_s6  ;;  %p6047_p4 = scmp.lt.u32.totalorder %s6043_s6, %s6691_s13 }
 0x83b   :  { %p6049_p5 = pnand %p6047_p4, %p6044_p3 }
 0x83d   :  { %6052 = shalt.err (!%p6049_p5)
}
 0x83e   :  { %3996 = dma.vmem_to_hbm [thread:$0]  %s3994_s20, 256, %s6691_s13, [#allocation4]  }
 0x83f   :  { %6067 = dma.done.wait [#allocation4], 256  }
 0x840   :  { %6068 = vsyncadd [#allocation4], 4294967040 }
 0x841   :  { %4000 = vsyncpa [#allocation3], 1 }
 0x842   :  { %4001 = vsyncpa [#allocation6], 1 }
 0x843   :  { %4002 = vsyncpa [#allocation9], 1 }
 0x844   :  { %4003 = vsyncpa [#allocation12], 1 }
 0x845   :  { %4004 = vsyncpa [#allocation15], 1 }
 0x846   :  { %4005 = vsyncpa [#allocation18], 1 }
 0x847   :  { %4006 = vsyncpa [#allocation21], 1 }
 0x848   :  { %4007 = vsyncpa [#allocation4], 1 }

</bundles_post_ra>
